<compile_context>
chip_gen: v6e
topology: v6e:2x2x1
jax: 0.10.0
libtpu: 0.0.40
codegen_flags: <defaults>
</compile_context>

<pallas_src>
import functools
import math

import jax
import jax.numpy as jnp
from jax.experimental import pallas as pl
from jax.experimental.pallas import tpu as pltpu

GRID_SIZE = 5
SPLINE_ORDER = 3
N_COEFF = GRID_SIZE + SPLINE_ORDER             # 8 basis functions per input feature
N_GRID = GRID_SIZE + 2 * SPLINE_ORDER + 1      # 12 knots
H = 2.0 / GRID_SIZE                            # uniform knot spacing (grid_range=[-1,1])
KNOTS = tuple((j - SPLINE_ORDER) * H - 1.0 for j in range(N_GRID))
BN_EPS = 1e-5
_VMEM_LIMIT = 48 * 1024 * 1024                 # < v7x 64 MiB physical, > default scoped


def _round_up(a, m):
    return ((a + m - 1) // m) * m


def _spline_bases(x):
    """Cox-de Boor recursion unrolled over the knot axis (compile-time knots).

    All denominators are constants (multiply by reciprocal); every intermediate
    stays a lane-dense 2-D (rows, Din) f32 array.  Returns N_COEFF arrays.
    """
    bs = [jnp.where((x >= KNOTS[j]) & (x < KNOTS[j + 1]), 1.0, 0.0).astype(jnp.float32)
          for j in range(N_GRID - 1)]
    for k in range(1, SPLINE_ORDER + 1):
        inv = 1.0 / (k * H)
        bs = [(x - KNOTS[j]) * inv * bs[j] + (KNOTS[j + k + 1] - x) * inv * bs[j + 1]
              for j in range(N_GRID - 1 - k)]
    return bs                                   # N_COEFF x (rows, Din)


# ----------------------------- Pallas kernels -----------------------------

def kan_linear_kernel(x_ref, wb_ref, ws_ref, o_ref, *, apply_softmax):
    x = x_ref[...].astype(jnp.float32)                       # (tn, Din), lane-dense

    # base branch: SiLU(x) @ Wb^T   (sigmoid via exp + EUP approx reciprocal)
    silu = x * pl.reciprocal(1.0 + jnp.exp(-x), approx=True)
    acc = jax.lax.dot_general(
        silu.astype(jnp.bfloat16), wb_ref[...],
        (((1,), (1,)), ((), ())), preferred_element_type=jnp.float32)

    # spline branch: coeff-major weights (N_COEFF, Dout, Din) -> 8 accumulated
    # MXU matmuls, no (tn, Din*8) reshape / relayout.
    bs = _spline_bases(x)
    for c in range(N_COEFF):
        acc = acc + jax.lax.dot_general(
            bs[c].astype(jnp.bfloat16), ws_ref[c],
            (((1,), (1,)), ((), ())), preferred_element_type=jnp.float32)

    if apply_softmax:                                        # nn.Softmax(dim=1)
        acc = acc - jnp.max(acc, axis=1, keepdims=True)
        e = jnp.exp(acc)
        acc = e * pl.reciprocal(jnp.sum(e, axis=1, keepdims=True), approx=True)
    o_ref[...] = acc.astype(o_ref.dtype)


def gcn_agg_bn_fused_kernel(a_ref, h_ref, b_ref, g_ref, be_ref, o_ref, *, n_valid):
    # Single-tile path: Â @ h + bias, batch statistics and normalize, fused.
    agg = jnp.dot(a_ref[...], h_ref[...], preferred_element_type=jnp.float32)
    agg = agg + b_ref[...]

    rows = jax.lax.broadcasted_iota(jnp.int32, (agg.shape[0], 1), 0)
    valid = (rows < n_valid).astype(jnp.float32)             # mask padded rows
    aggv = agg * valid
    mean = jnp.sum(aggv, axis=0, keepdims=True) * (1.0 / n_valid)
    var = jnp.maximum(
        jnp.sum(aggv * agg, axis=0, keepdims=True) * (1.0 / n_valid) - mean * mean, 0.0)
    scale = g_ref[...] * jax.lax.rsqrt(var + BN_EPS)          # (1, d)
    shift = be_ref[...] - mean * scale
    o_ref[...] = (agg * scale + shift).astype(o_ref.dtype)


def gcn_agg_stats_kernel(a_ref, h_ref, b_ref, agg_ref, stats_ref, *, tile_m, n_valid):
    # Pass 1: Â_tile @ h + GCN bias, plus one-pass per-tile BN stats (sum, sum-sq).
    agg = jnp.dot(a_ref[...], h_ref[...], preferred_element_type=jnp.float32)
    agg = agg + b_ref[...]
    agg_ref[...] = agg.astype(agg_ref.dtype)

    row0 = pl.program_id(0) * tile_m
    rows = row0 + jax.lax.broadcasted_iota(jnp.int32, (tile_m, 1), 0)
    valid = (rows < n_valid).astype(jnp.float32)             # (tile_m, 1)
    aggv = agg * valid
    ssum = jnp.sum(aggv, axis=0, keepdims=True)              # (1, d)
    ssq = jnp.sum(aggv * agg, axis=0, keepdims=True)         # (1, d)
    stats_ref[0] = jnp.concatenate([ssum, ssq], axis=0)      # (2, d)


def bn_affine_kernel(agg_ref, scale_ref, shift_ref, o_ref):
    o_ref[...] = (agg_ref[...] * scale_ref[...] + shift_ref[...]).astype(o_ref.dtype)


# ----------------------------- wrappers -----------------------------------

def kan_linear(x, base_w, ws_stack, *, apply_softmax=False, tile_n=256):
    n, din = x.shape
    dout = base_w.shape[0]
    tile_n = min(tile_n, _round_up(n, 8))
    n_pad = _round_up(n, tile_n)
    if n_pad != n:
        x = jnp.pad(x, ((0, n_pad - n), (0, 0)))

    kern = functools.partial(kan_linear_kernel, apply_softmax=apply_softmax)
    out = pl.pallas_call(
        kern,
        out_shape=jax.ShapeDtypeStruct((n_pad, dout), jnp.float32),
        grid=(n_pad // tile_n,),
        in_specs=[
            pl.BlockSpec((tile_n, din), lambda i: (i, 0)),
            # grid-invariant weights: whole-array VMEM residents (single-buffered)
            pl.BlockSpec(memory_space=pltpu.MemorySpace.VMEM),
            pl.BlockSpec(memory_space=pltpu.MemorySpace.VMEM),
        ],
        out_specs=pl.BlockSpec((tile_n, dout), lambda i: (i, 0)),
        compiler_params=pltpu.CompilerParams(
            dimension_semantics=("parallel",),
            vmem_limit_bytes=_VMEM_LIMIT),
    )(x, base_w, ws_stack)
    return out[:n] if n_pad != n else out


def gcn_agg_bn(a_hat, h, bias, gamma, beta, *, tile_m=256):
    n, d = h.shape
    tile_m = min(tile_m, _round_up(n, 8))
    n_pad = _round_up(n, tile_m)
    a_p = jnp.pad(a_hat, ((0, n_pad - n), (0, 0))) if n_pad != n else a_hat
    n_tiles = n_pad // tile_m

    if n_tiles == 1:
        # Fused single-kernel path: no intermediate agg round-trip, one launch.
        out = pl.pallas_call(
            functools.partial(gcn_agg_bn_fused_kernel, n_valid=n),
            out_shape=jax.ShapeDtypeStruct((n_pad, d), jnp.float32),
            in_specs=[pl.BlockSpec(memory_space=pltpu.MemorySpace.VMEM)] * 5,
            out_specs=pl.BlockSpec(memory_space=pltpu.MemorySpace.VMEM),
            compiler_params=pltpu.CompilerParams(vmem_limit_bytes=_VMEM_LIMIT),
        )(a_p, h, bias, gamma, beta)
        return out[:n] if n_pad != n else out

    # pass 1: row-tiled Â @ h + bias, with one-pass per-tile sum / sum-of-squares
    agg_kern = functools.partial(gcn_agg_stats_kernel, tile_m=tile_m, n_valid=n)
    agg, stats = pl.pallas_call(
        agg_kern,
        out_shape=(jax.ShapeDtypeStruct((n_pad, d), jnp.float32),
                   jax.ShapeDtypeStruct((n_tiles, 2, d), jnp.float32)),
        grid=(n_tiles,),
        in_specs=[
            pl.BlockSpec((tile_m, n), lambda i: (i, 0)),
            pl.BlockSpec(memory_space=pltpu.MemorySpace.VMEM),   # h resident
            pl.BlockSpec(memory_space=pltpu.MemorySpace.VMEM),   # bias resident
        ],
        out_specs=(pl.BlockSpec((tile_m, d), lambda i: (i, 0)),
                   pl.BlockSpec((1, 2, d), lambda i: (i, 0, 0))),
        compiler_params=pltpu.CompilerParams(
            dimension_semantics=("parallel",),
            vmem_limit_bytes=_VMEM_LIMIT),
    )(a_p, h, bias)

    # tiny cross-tile combine (training-mode biased statistics, like torch BN forward)
    tot = jnp.sum(stats, axis=0)                        # (2, d)
    mean = tot[0] / n
    var = jnp.maximum(tot[1] / n - mean * mean, 0.0)
    scale = (gamma[0] * jax.lax.rsqrt(var + BN_EPS))[None, :]   # (1, d)
    shift = (beta[0] - mean * scale[0])[None, :]                # (1, d)

    # pass 2: cheap fused normalize
    out = pl.pallas_call(
        bn_affine_kernel,
        out_shape=jax.ShapeDtypeStruct((n_pad, d), jnp.float32),
        grid=(n_tiles,),
        in_specs=[
            pl.BlockSpec((tile_m, d), lambda i: (i, 0)),
            pl.BlockSpec(memory_space=pltpu.MemorySpace.VMEM),
            pl.BlockSpec(memory_space=pltpu.MemorySpace.VMEM),
        ],
        out_specs=pl.BlockSpec((tile_m, d), lambda i: (i, 0)),
        compiler_params=pltpu.CompilerParams(
            dimension_semantics=("parallel",),
            vmem_limit_bytes=_VMEM_LIMIT),
    )(agg, scale, shift)
    return out[:n] if n_pad != n else out


# ----------------------------- glue (plain JAX) ----------------------------

def init_kan_params(key, in_dim, out_dim):
    """Deterministic stand-in for KANLinear.reset_parameters()."""
    k1, k2, k3 = jax.random.split(key, 3)
    base_w = jax.random.normal(k1, (out_dim, in_dim), jnp.float32) / math.sqrt(in_dim)
    spline_w = jax.random.normal(k2, (out_dim, in_dim, N_COEFF), jnp.float32) * 0.1
    scaler = jax.random.normal(k3, (out_dim, in_dim), jnp.float32) / math.sqrt(in_dim)
    # coeff-major (N_COEFF, out, in) so the kernel can do 8 accumulated matmuls
    ws = (spline_w * scaler[:, :, None]).transpose(2, 0, 1)
    return base_w.astype(jnp.bfloat16), ws.astype(jnp.bfloat16)


def build_gcn_adj(edge_index, num_nodes):
    """Dense symmetric-normalized adjacency with self loops (gcn_norm)."""
    # TODO(synk): dense Â is O(N^2); a sparse segment-sum aggregation would scale better.
    loops = jnp.arange(num_nodes)
    src = jnp.concatenate([edge_index[0], loops])
    dst = jnp.concatenate([edge_index[1], loops])
    a = jnp.zeros((num_nodes, num_nodes), jnp.float32).at[dst, src].add(1.0)
    deg = a.sum(axis=1)
    dinv = jnp.where(deg > 0, 1.0 / jnp.sqrt(deg), 0.0)
    return dinv[:, None] * a * dinv[None, :]


def gkan_forward(x, a_hat, params):
    skips = [x]
    h = x
    for layer in params["convs"]:
        h_lin = kan_linear(h, layer["base_w"], layer["ws"])
        h = gcn_agg_bn(a_hat, h_lin, layer["bias"], layer["gamma"], layer["beta"])
        # Dropout(p=0.0) == identity
        skips.append(h)
    # skip=True concat
    # TODO(synk): direct lane-aligned slab writes would save one HBM pass.
    h = jnp.concatenate(skips, axis=1)
    return kan_linear(h, params["out"]["base_w"], params["out"]["ws"],
                      apply_softmax=True)


# ----------------------------- demo ----------------------------------------

if __name__ == "__main__":
    N, FEAT, HID, CLS, LAYERS = 64, 16, 32, 8, 2   # small shapes

    key = jax.random.PRNGKey(0)
    kx, kp = jax.random.split(key, 2)
    x = jax.random.normal(kx, (N, FEAT), jnp.float32)

    # deterministic undirected ring graph
    src = jnp.arange(N)
    dst = (src + 1) % N
    edge_index = jnp.stack([jnp.concatenate([src, dst]),
                            jnp.concatenate([dst, src])])
    a_hat = build_gcn_adj(edge_index, N)

    keys = jax.random.split(kp, LAYERS + 1)
    params = {"convs": [], "out": None}
    din = FEAT
    for i in range(LAYERS):
        bw, ws = init_kan_params(keys[i], din, HID)
        params["convs"].append(dict(
            base_w=bw, ws=ws,
            bias=jnp.zeros((1, HID), jnp.float32),     # GCNConv bias init = zeros
            gamma=jnp.ones((1, HID), jnp.float32),     # BatchNorm1d affine defaults
            beta=jnp.zeros((1, HID), jnp.float32),
        ))
        din = HID
    bw, ws = init_kan_params(keys[LAYERS], FEAT + LAYERS * HID, CLS)
    params["out"] = dict(base_w=bw, ws=ws)

    out = gkan_forward(x, a_hat, params)
    out = jax.block_until_ready(out)

    assert out.shape == (N, CLS)
    assert bool(jnp.all(jnp.isfinite(out)))
    # softmax rows sum to ~1 (bf16 MXU operands + EUP approx reciprocal)
    assert bool(jnp.allclose(out.sum(axis=1), 1.0, atol=1e-2))
    print("KERNEL_OK")
</pallas_src>

<mosaic_0001>
module attributes {stable_mosaic.version = 11 : i64} {
  func.func @kan_linear_kernel(%arg0: i32, %arg1: memref<64x16xf32, #tpu.memory_space<vmem>>, %arg2: memref<32x16xbf16, #tpu.memory_space<vmem>>, %arg3: memref<8x32x16xbf16, #tpu.memory_space<vmem>>, %arg4: memref<64x32xf32, #tpu.memory_space<vmem>>) attributes {dimension_semantics = [#tpu.dimension_semantics<parallel>], iteration_bounds = array<i64: 1>, scalar_prefetch = 0 : i64, scratch_operands = 0 : i64, tpu.core_type = #tpu.core_type<tc>, window_params = [{transform_indices = @transform_0, window_bounds = array<i64: 64, 16>}, {pipeline_mode = #tpu.pipeline_mode<synchronous>, transform_indices = @transform_1, window_bounds = array<i64: 32, 16>}, {pipeline_mode = #tpu.pipeline_mode<synchronous>, transform_indices = @transform_2, window_bounds = array<i64: 8, 32, 16>}, {transform_indices = @transform_3, window_bounds = array<i64: 64, 32>}]} {
    %c0 = arith.constant 0 : index
    %c0_0 = arith.constant 0 : index
    %0 = vector.load %arg1[%c0, %c0_0] : memref<64x16xf32, #tpu.memory_space<vmem>>, vector<64x16xf32>
    %cst = arith.constant 0.000000e+00 : f32
    %1 = vector.broadcast %cst : f32 to vector<64x16xf32>
    %2 = arith.subf %1, %0 : vector<64x16xf32>
    %3 = math.exp %2 : vector<64x16xf32>
    %cst_1 = arith.constant 1.000000e+00 : f32
    %4 = vector.broadcast %cst_1 : f32 to vector<64x16xf32>
    %5 = arith.addf %4, %3 : vector<64x16xf32>
    %6 = tpu.reciprocal %5 {approx = true} : vector<64x16xf32> -> vector<64x16xf32>
    %7 = arith.mulf %0, %6 : vector<64x16xf32>
    %8 = arith.truncf %7 : vector<64x16xf32> to vector<64x16xbf16>
    %c0_2 = arith.constant 0 : index
    %c0_3 = arith.constant 0 : index
    %9 = vector.load %arg2[%c0_2, %c0_3] : memref<32x16xbf16, #tpu.memory_space<vmem>>, vector<32x16xbf16>
    %cst_4 = arith.constant dense<0.000000e+00> : vector<64x32xf32>
    %10 = tpu.matmul %8, %9, %cst_4 {dimension_numbers = #tpu.dot_dimension_numbers<[1], [1], [0], [0], [0, 0, 1, 0], [], []>} : vector<64x16xbf16>, vector<32x16xbf16>, vector<64x32xf32> -> vector<64x32xf32>
    %cst_5 = arith.constant -2.200000e+00 : f32
    %11 = vector.broadcast %cst_5 : f32 to vector<64x16xf32>
    %12 = arith.cmpf oge, %0, %11 : vector<64x16xf32>
    %cst_6 = arith.constant -1.800000e+00 : f32
    %13 = vector.broadcast %cst_6 : f32 to vector<64x16xf32>
    %14 = arith.cmpf olt, %0, %13 : vector<64x16xf32>
    %15 = arith.andi %12, %14 : vector<64x16xi1>
    %cst_7 = arith.constant 1.000000e+00 : f32
    %cst_8 = arith.constant 0.000000e+00 : f32
    %16 = vector.broadcast %cst_7 : f32 to vector<64x16xf32>
    %17 = vector.broadcast %cst_8 : f32 to vector<64x16xf32>
    %18 = arith.select %15, %16, %17 : vector<64x16xi1>, vector<64x16xf32>
    %cst_9 = arith.constant -1.800000e+00 : f32
    %19 = vector.broadcast %cst_9 : f32 to vector<64x16xf32>
    %20 = arith.cmpf oge, %0, %19 : vector<64x16xf32>
    %cst_10 = arith.constant -1.400000e+00 : f32
    %21 = vector.broadcast %cst_10 : f32 to vector<64x16xf32>
    %22 = arith.cmpf olt, %0, %21 : vector<64x16xf32>
    %23 = arith.andi %20, %22 : vector<64x16xi1>
    %cst_11 = arith.constant 1.000000e+00 : f32
    %cst_12 = arith.constant 0.000000e+00 : f32
    %24 = vector.broadcast %cst_11 : f32 to vector<64x16xf32>
    %25 = vector.broadcast %cst_12 : f32 to vector<64x16xf32>
    %26 = arith.select %23, %24, %25 : vector<64x16xi1>, vector<64x16xf32>
    %cst_13 = arith.constant -1.400000e+00 : f32
    %27 = vector.broadcast %cst_13 : f32 to vector<64x16xf32>
    %28 = arith.cmpf oge, %0, %27 : vector<64x16xf32>
    %cst_14 = arith.constant -1.000000e+00 : f32
    %29 = vector.broadcast %cst_14 : f32 to vector<64x16xf32>
    %30 = arith.cmpf olt, %0, %29 : vector<64x16xf32>
    %31 = arith.andi %28, %30 : vector<64x16xi1>
    %cst_15 = arith.constant 1.000000e+00 : f32
    %cst_16 = arith.constant 0.000000e+00 : f32
    %32 = vector.broadcast %cst_15 : f32 to vector<64x16xf32>
    %33 = vector.broadcast %cst_16 : f32 to vector<64x16xf32>
    %34 = arith.select %31, %32, %33 : vector<64x16xi1>, vector<64x16xf32>
    %cst_17 = arith.constant -1.000000e+00 : f32
    %35 = vector.broadcast %cst_17 : f32 to vector<64x16xf32>
    %36 = arith.cmpf oge, %0, %35 : vector<64x16xf32>
    %cst_18 = arith.constant -6.000000e-01 : f32
    %37 = vector.broadcast %cst_18 : f32 to vector<64x16xf32>
    %38 = arith.cmpf olt, %0, %37 : vector<64x16xf32>
    %39 = arith.andi %36, %38 : vector<64x16xi1>
    %cst_19 = arith.constant 1.000000e+00 : f32
    %cst_20 = arith.constant 0.000000e+00 : f32
    %40 = vector.broadcast %cst_19 : f32 to vector<64x16xf32>
    %41 = vector.broadcast %cst_20 : f32 to vector<64x16xf32>
    %42 = arith.select %39, %40, %41 : vector<64x16xi1>, vector<64x16xf32>
    %cst_21 = arith.constant -6.000000e-01 : f32
    %43 = vector.broadcast %cst_21 : f32 to vector<64x16xf32>
    %44 = arith.cmpf oge, %0, %43 : vector<64x16xf32>
    %cst_22 = arith.constant -2.000000e-01 : f32
    %45 = vector.broadcast %cst_22 : f32 to vector<64x16xf32>
    %46 = arith.cmpf olt, %0, %45 : vector<64x16xf32>
    %47 = arith.andi %44, %46 : vector<64x16xi1>
    %cst_23 = arith.constant 1.000000e+00 : f32
    %cst_24 = arith.constant 0.000000e+00 : f32
    %48 = vector.broadcast %cst_23 : f32 to vector<64x16xf32>
    %49 = vector.broadcast %cst_24 : f32 to vector<64x16xf32>
    %50 = arith.select %47, %48, %49 : vector<64x16xi1>, vector<64x16xf32>
    %cst_25 = arith.constant -2.000000e-01 : f32
    %51 = vector.broadcast %cst_25 : f32 to vector<64x16xf32>
    %52 = arith.cmpf oge, %0, %51 : vector<64x16xf32>
    %cst_26 = arith.constant 2.000000e-01 : f32
    %53 = vector.broadcast %cst_26 : f32 to vector<64x16xf32>
    %54 = arith.cmpf olt, %0, %53 : vector<64x16xf32>
    %55 = arith.andi %52, %54 : vector<64x16xi1>
    %cst_27 = arith.constant 1.000000e+00 : f32
    %cst_28 = arith.constant 0.000000e+00 : f32
    %56 = vector.broadcast %cst_27 : f32 to vector<64x16xf32>
    %57 = vector.broadcast %cst_28 : f32 to vector<64x16xf32>
    %58 = arith.select %55, %56, %57 : vector<64x16xi1>, vector<64x16xf32>
    %cst_29 = arith.constant 2.000000e-01 : f32
    %59 = vector.broadcast %cst_29 : f32 to vector<64x16xf32>
    %60 = arith.cmpf oge, %0, %59 : vector<64x16xf32>
    %cst_30 = arith.constant 6.000000e-01 : f32
    %61 = vector.broadcast %cst_30 : f32 to vector<64x16xf32>
    %62 = arith.cmpf olt, %0, %61 : vector<64x16xf32>
    %63 = arith.andi %60, %62 : vector<64x16xi1>
    %cst_31 = arith.constant 1.000000e+00 : f32
    %cst_32 = arith.constant 0.000000e+00 : f32
    %64 = vector.broadcast %cst_31 : f32 to vector<64x16xf32>
    %65 = vector.broadcast %cst_32 : f32 to vector<64x16xf32>
    %66 = arith.select %63, %64, %65 : vector<64x16xi1>, vector<64x16xf32>
    %cst_33 = arith.constant 6.000000e-01 : f32
    %67 = vector.broadcast %cst_33 : f32 to vector<64x16xf32>
    %68 = arith.cmpf oge, %0, %67 : vector<64x16xf32>
    %cst_34 = arith.constant 1.000000e+00 : f32
    %69 = vector.broadcast %cst_34 : f32 to vector<64x16xf32>
    %70 = arith.cmpf olt, %0, %69 : vector<64x16xf32>
    %71 = arith.andi %68, %70 : vector<64x16xi1>
    %cst_35 = arith.constant 1.000000e+00 : f32
    %cst_36 = arith.constant 0.000000e+00 : f32
    %72 = vector.broadcast %cst_35 : f32 to vector<64x16xf32>
    %73 = vector.broadcast %cst_36 : f32 to vector<64x16xf32>
    %74 = arith.select %71, %72, %73 : vector<64x16xi1>, vector<64x16xf32>
    %cst_37 = arith.constant 1.000000e+00 : f32
    %75 = vector.broadcast %cst_37 : f32 to vector<64x16xf32>
    %76 = arith.cmpf oge, %0, %75 : vector<64x16xf32>
    %cst_38 = arith.constant 1.400000e+00 : f32
    %77 = vector.broadcast %cst_38 : f32 to vector<64x16xf32>
    %78 = arith.cmpf olt, %0, %77 : vector<64x16xf32>
    %79 = arith.andi %76, %78 : vector<64x16xi1>
    %cst_39 = arith.constant 1.000000e+00 : f32
    %cst_40 = arith.constant 0.000000e+00 : f32
    %80 = vector.broadcast %cst_39 : f32 to vector<64x16xf32>
    %81 = vector.broadcast %cst_40 : f32 to vector<64x16xf32>
    %82 = arith.select %79, %80, %81 : vector<64x16xi1>, vector<64x16xf32>
    %cst_41 = arith.constant 1.400000e+00 : f32
    %83 = vector.broadcast %cst_41 : f32 to vector<64x16xf32>
    %84 = arith.cmpf oge, %0, %83 : vector<64x16xf32>
    %cst_42 = arith.constant 1.800000e+00 : f32
    %85 = vector.broadcast %cst_42 : f32 to vector<64x16xf32>
    %86 = arith.cmpf olt, %0, %85 : vector<64x16xf32>
    %87 = arith.andi %84, %86 : vector<64x16xi1>
    %cst_43 = arith.constant 1.000000e+00 : f32
    %cst_44 = arith.constant 0.000000e+00 : f32
    %88 = vector.broadcast %cst_43 : f32 to vector<64x16xf32>
    %89 = vector.broadcast %cst_44 : f32 to vector<64x16xf32>
    %90 = arith.select %87, %88, %89 : vector<64x16xi1>, vector<64x16xf32>
    %cst_45 = arith.constant 1.800000e+00 : f32
    %91 = vector.broadcast %cst_45 : f32 to vector<64x16xf32>
    %92 = arith.cmpf oge, %0, %91 : vector<64x16xf32>
    %cst_46 = arith.constant 2.200000e+00 : f32
    %93 = vector.broadcast %cst_46 : f32 to vector<64x16xf32>
    %94 = arith.cmpf olt, %0, %93 : vector<64x16xf32>
    %95 = arith.andi %92, %94 : vector<64x16xi1>
    %cst_47 = arith.constant 1.000000e+00 : f32
    %cst_48 = arith.constant 0.000000e+00 : f32
    %96 = vector.broadcast %cst_47 : f32 to vector<64x16xf32>
    %97 = vector.broadcast %cst_48 : f32 to vector<64x16xf32>
    %98 = arith.select %95, %96, %97 : vector<64x16xi1>, vector<64x16xf32>
    %cst_49 = arith.constant -2.200000e+00 : f32
    %99 = vector.broadcast %cst_49 : f32 to vector<64x16xf32>
    %100 = arith.subf %0, %99 : vector<64x16xf32>
    %cst_50 = arith.constant 2.500000e+00 : f32
    %101 = vector.broadcast %cst_50 : f32 to vector<64x16xf32>
    %102 = arith.mulf %100, %101 : vector<64x16xf32>
    %103 = arith.mulf %102, %18 : vector<64x16xf32>
    %cst_51 = arith.constant -1.400000e+00 : f32
    %104 = vector.broadcast %cst_51 : f32 to vector<64x16xf32>
    %105 = arith.subf %104, %0 : vector<64x16xf32>
    %cst_52 = arith.constant 2.500000e+00 : f32
    %106 = vector.broadcast %cst_52 : f32 to vector<64x16xf32>
    %107 = arith.mulf %105, %106 : vector<64x16xf32>
    %108 = arith.mulf %107, %26 : vector<64x16xf32>
    %109 = arith.addf %103, %108 : vector<64x16xf32>
    %cst_53 = arith.constant -1.800000e+00 : f32
    %110 = vector.broadcast %cst_53 : f32 to vector<64x16xf32>
    %111 = arith.subf %0, %110 : vector<64x16xf32>
    %cst_54 = arith.constant 2.500000e+00 : f32
    %112 = vector.broadcast %cst_54 : f32 to vector<64x16xf32>
    %113 = arith.mulf %111, %112 : vector<64x16xf32>
    %114 = arith.mulf %113, %26 : vector<64x16xf32>
    %cst_55 = arith.constant -1.000000e+00 : f32
    %115 = vector.broadcast %cst_55 : f32 to vector<64x16xf32>
    %116 = arith.subf %115, %0 : vector<64x16xf32>
    %cst_56 = arith.constant 2.500000e+00 : f32
    %117 = vector.broadcast %cst_56 : f32 to vector<64x16xf32>
    %118 = arith.mulf %116, %117 : vector<64x16xf32>
    %119 = arith.mulf %118, %34 : vector<64x16xf32>
    %120 = arith.addf %114, %119 : vector<64x16xf32>
    %cst_57 = arith.constant -1.400000e+00 : f32
    %121 = vector.broadcast %cst_57 : f32 to vector<64x16xf32>
    %122 = arith.subf %0, %121 : vector<64x16xf32>
    %cst_58 = arith.constant 2.500000e+00 : f32
    %123 = vector.broadcast %cst_58 : f32 to vector<64x16xf32>
    %124 = arith.mulf %122, %123 : vector<64x16xf32>
    %125 = arith.mulf %124, %34 : vector<64x16xf32>
    %cst_59 = arith.constant -6.000000e-01 : f32
    %126 = vector.broadcast %cst_59 : f32 to vector<64x16xf32>
    %127 = arith.subf %126, %0 : vector<64x16xf32>
    %cst_60 = arith.constant 2.500000e+00 : f32
    %128 = vector.broadcast %cst_60 : f32 to vector<64x16xf32>
    %129 = arith.mulf %127, %128 : vector<64x16xf32>
    %130 = arith.mulf %129, %42 : vector<64x16xf32>
    %131 = arith.addf %125, %130 : vector<64x16xf32>
    %cst_61 = arith.constant -1.000000e+00 : f32
    %132 = vector.broadcast %cst_61 : f32 to vector<64x16xf32>
    %133 = arith.subf %0, %132 : vector<64x16xf32>
    %cst_62 = arith.constant 2.500000e+00 : f32
    %134 = vector.broadcast %cst_62 : f32 to vector<64x16xf32>
    %135 = arith.mulf %133, %134 : vector<64x16xf32>
    %136 = arith.mulf %135, %42 : vector<64x16xf32>
    %cst_63 = arith.constant -2.000000e-01 : f32
    %137 = vector.broadcast %cst_63 : f32 to vector<64x16xf32>
    %138 = arith.subf %137, %0 : vector<64x16xf32>
    %cst_64 = arith.constant 2.500000e+00 : f32
    %139 = vector.broadcast %cst_64 : f32 to vector<64x16xf32>
    %140 = arith.mulf %138, %139 : vector<64x16xf32>
    %141 = arith.mulf %140, %50 : vector<64x16xf32>
    %142 = arith.addf %136, %141 : vector<64x16xf32>
    %cst_65 = arith.constant -6.000000e-01 : f32
    %143 = vector.broadcast %cst_65 : f32 to vector<64x16xf32>
    %144 = arith.subf %0, %143 : vector<64x16xf32>
    %cst_66 = arith.constant 2.500000e+00 : f32
    %145 = vector.broadcast %cst_66 : f32 to vector<64x16xf32>
    %146 = arith.mulf %144, %145 : vector<64x16xf32>
    %147 = arith.mulf %146, %50 : vector<64x16xf32>
    %cst_67 = arith.constant 2.000000e-01 : f32
    %148 = vector.broadcast %cst_67 : f32 to vector<64x16xf32>
    %149 = arith.subf %148, %0 : vector<64x16xf32>
    %cst_68 = arith.constant 2.500000e+00 : f32
    %150 = vector.broadcast %cst_68 : f32 to vector<64x16xf32>
    %151 = arith.mulf %149, %150 : vector<64x16xf32>
    %152 = arith.mulf %151, %58 : vector<64x16xf32>
    %153 = arith.addf %147, %152 : vector<64x16xf32>
    %cst_69 = arith.constant -2.000000e-01 : f32
    %154 = vector.broadcast %cst_69 : f32 to vector<64x16xf32>
    %155 = arith.subf %0, %154 : vector<64x16xf32>
    %cst_70 = arith.constant 2.500000e+00 : f32
    %156 = vector.broadcast %cst_70 : f32 to vector<64x16xf32>
    %157 = arith.mulf %155, %156 : vector<64x16xf32>
    %158 = arith.mulf %157, %58 : vector<64x16xf32>
    %cst_71 = arith.constant 6.000000e-01 : f32
    %159 = vector.broadcast %cst_71 : f32 to vector<64x16xf32>
    %160 = arith.subf %159, %0 : vector<64x16xf32>
    %cst_72 = arith.constant 2.500000e+00 : f32
    %161 = vector.broadcast %cst_72 : f32 to vector<64x16xf32>
    %162 = arith.mulf %160, %161 : vector<64x16xf32>
    %163 = arith.mulf %162, %66 : vector<64x16xf32>
    %164 = arith.addf %158, %163 : vector<64x16xf32>
    %cst_73 = arith.constant 2.000000e-01 : f32
    %165 = vector.broadcast %cst_73 : f32 to vector<64x16xf32>
    %166 = arith.subf %0, %165 : vector<64x16xf32>
    %cst_74 = arith.constant 2.500000e+00 : f32
    %167 = vector.broadcast %cst_74 : f32 to vector<64x16xf32>
    %168 = arith.mulf %166, %167 : vector<64x16xf32>
    %169 = arith.mulf %168, %66 : vector<64x16xf32>
    %cst_75 = arith.constant 1.000000e+00 : f32
    %170 = vector.broadcast %cst_75 : f32 to vector<64x16xf32>
    %171 = arith.subf %170, %0 : vector<64x16xf32>
    %cst_76 = arith.constant 2.500000e+00 : f32
    %172 = vector.broadcast %cst_76 : f32 to vector<64x16xf32>
    %173 = arith.mulf %171, %172 : vector<64x16xf32>
    %174 = arith.mulf %173, %74 : vector<64x16xf32>
    %175 = arith.addf %169, %174 : vector<64x16xf32>
    %cst_77 = arith.constant 6.000000e-01 : f32
    %176 = vector.broadcast %cst_77 : f32 to vector<64x16xf32>
    %177 = arith.subf %0, %176 : vector<64x16xf32>
    %cst_78 = arith.constant 2.500000e+00 : f32
    %178 = vector.broadcast %cst_78 : f32 to vector<64x16xf32>
    %179 = arith.mulf %177, %178 : vector<64x16xf32>
    %180 = arith.mulf %179, %74 : vector<64x16xf32>
    %cst_79 = arith.constant 1.400000e+00 : f32
    %181 = vector.broadcast %cst_79 : f32 to vector<64x16xf32>
    %182 = arith.subf %181, %0 : vector<64x16xf32>
    %cst_80 = arith.constant 2.500000e+00 : f32
    %183 = vector.broadcast %cst_80 : f32 to vector<64x16xf32>
    %184 = arith.mulf %182, %183 : vector<64x16xf32>
    %185 = arith.mulf %184, %82 : vector<64x16xf32>
    %186 = arith.addf %180, %185 : vector<64x16xf32>
    %cst_81 = arith.constant 1.000000e+00 : f32
    %187 = vector.broadcast %cst_81 : f32 to vector<64x16xf32>
    %188 = arith.subf %0, %187 : vector<64x16xf32>
    %cst_82 = arith.constant 2.500000e+00 : f32
    %189 = vector.broadcast %cst_82 : f32 to vector<64x16xf32>
    %190 = arith.mulf %188, %189 : vector<64x16xf32>
    %191 = arith.mulf %190, %82 : vector<64x16xf32>
    %cst_83 = arith.constant 1.800000e+00 : f32
    %192 = vector.broadcast %cst_83 : f32 to vector<64x16xf32>
    %193 = arith.subf %192, %0 : vector<64x16xf32>
    %cst_84 = arith.constant 2.500000e+00 : f32
    %194 = vector.broadcast %cst_84 : f32 to vector<64x16xf32>
    %195 = arith.mulf %193, %194 : vector<64x16xf32>
    %196 = arith.mulf %195, %90 : vector<64x16xf32>
    %197 = arith.addf %191, %196 : vector<64x16xf32>
    %cst_85 = arith.constant 1.400000e+00 : f32
    %198 = vector.broadcast %cst_85 : f32 to vector<64x16xf32>
    %199 = arith.subf %0, %198 : vector<64x16xf32>
    %cst_86 = arith.constant 2.500000e+00 : f32
    %200 = vector.broadcast %cst_86 : f32 to vector<64x16xf32>
    %201 = arith.mulf %199, %200 : vector<64x16xf32>
    %202 = arith.mulf %201, %90 : vector<64x16xf32>
    %cst_87 = arith.constant 2.200000e+00 : f32
    %203 = vector.broadcast %cst_87 : f32 to vector<64x16xf32>
    %204 = arith.subf %203, %0 : vector<64x16xf32>
    %cst_88 = arith.constant 2.500000e+00 : f32
    %205 = vector.broadcast %cst_88 : f32 to vector<64x16xf32>
    %206 = arith.mulf %204, %205 : vector<64x16xf32>
    %207 = arith.mulf %206, %98 : vector<64x16xf32>
    %208 = arith.addf %202, %207 : vector<64x16xf32>
    %cst_89 = arith.constant -2.200000e+00 : f32
    %209 = vector.broadcast %cst_89 : f32 to vector<64x16xf32>
    %210 = arith.subf %0, %209 : vector<64x16xf32>
    %cst_90 = arith.constant 1.250000e+00 : f32
    %211 = vector.broadcast %cst_90 : f32 to vector<64x16xf32>
    %212 = arith.mulf %210, %211 : vector<64x16xf32>
    %213 = arith.mulf %212, %109 : vector<64x16xf32>
    %cst_91 = arith.constant -1.000000e+00 : f32
    %214 = vector.broadcast %cst_91 : f32 to vector<64x16xf32>
    %215 = arith.subf %214, %0 : vector<64x16xf32>
    %cst_92 = arith.constant 1.250000e+00 : f32
    %216 = vector.broadcast %cst_92 : f32 to vector<64x16xf32>
    %217 = arith.mulf %215, %216 : vector<64x16xf32>
    %218 = arith.mulf %217, %120 : vector<64x16xf32>
    %219 = arith.addf %213, %218 : vector<64x16xf32>
    %cst_93 = arith.constant -1.800000e+00 : f32
    %220 = vector.broadcast %cst_93 : f32 to vector<64x16xf32>
    %221 = arith.subf %0, %220 : vector<64x16xf32>
    %cst_94 = arith.constant 1.250000e+00 : f32
    %222 = vector.broadcast %cst_94 : f32 to vector<64x16xf32>
    %223 = arith.mulf %221, %222 : vector<64x16xf32>
    %224 = arith.mulf %223, %120 : vector<64x16xf32>
    %cst_95 = arith.constant -6.000000e-01 : f32
    %225 = vector.broadcast %cst_95 : f32 to vector<64x16xf32>
    %226 = arith.subf %225, %0 : vector<64x16xf32>
    %cst_96 = arith.constant 1.250000e+00 : f32
    %227 = vector.broadcast %cst_96 : f32 to vector<64x16xf32>
    %228 = arith.mulf %226, %227 : vector<64x16xf32>
    %229 = arith.mulf %228, %131 : vector<64x16xf32>
    %230 = arith.addf %224, %229 : vector<64x16xf32>
    %cst_97 = arith.constant -1.400000e+00 : f32
    %231 = vector.broadcast %cst_97 : f32 to vector<64x16xf32>
    %232 = arith.subf %0, %231 : vector<64x16xf32>
    %cst_98 = arith.constant 1.250000e+00 : f32
    %233 = vector.broadcast %cst_98 : f32 to vector<64x16xf32>
    %234 = arith.mulf %232, %233 : vector<64x16xf32>
    %235 = arith.mulf %234, %131 : vector<64x16xf32>
    %cst_99 = arith.constant -2.000000e-01 : f32
    %236 = vector.broadcast %cst_99 : f32 to vector<64x16xf32>
    %237 = arith.subf %236, %0 : vector<64x16xf32>
    %cst_100 = arith.constant 1.250000e+00 : f32
    %238 = vector.broadcast %cst_100 : f32 to vector<64x16xf32>
    %239 = arith.mulf %237, %238 : vector<64x16xf32>
    %240 = arith.mulf %239, %142 : vector<64x16xf32>
    %241 = arith.addf %235, %240 : vector<64x16xf32>
    %cst_101 = arith.constant -1.000000e+00 : f32
    %242 = vector.broadcast %cst_101 : f32 to vector<64x16xf32>
    %243 = arith.subf %0, %242 : vector<64x16xf32>
    %cst_102 = arith.constant 1.250000e+00 : f32
    %244 = vector.broadcast %cst_102 : f32 to vector<64x16xf32>
    %245 = arith.mulf %243, %244 : vector<64x16xf32>
    %246 = arith.mulf %245, %142 : vector<64x16xf32>
    %cst_103 = arith.constant 2.000000e-01 : f32
    %247 = vector.broadcast %cst_103 : f32 to vector<64x16xf32>
    %248 = arith.subf %247, %0 : vector<64x16xf32>
    %cst_104 = arith.constant 1.250000e+00 : f32
    %249 = vector.broadcast %cst_104 : f32 to vector<64x16xf32>
    %250 = arith.mulf %248, %249 : vector<64x16xf32>
    %251 = arith.mulf %250, %153 : vector<64x16xf32>
    %252 = arith.addf %246, %251 : vector<64x16xf32>
    %cst_105 = arith.constant -6.000000e-01 : f32
    %253 = vector.broadcast %cst_105 : f32 to vector<64x16xf32>
    %254 = arith.subf %0, %253 : vector<64x16xf32>
    %cst_106 = arith.constant 1.250000e+00 : f32
    %255 = vector.broadcast %cst_106 : f32 to vector<64x16xf32>
    %256 = arith.mulf %254, %255 : vector<64x16xf32>
    %257 = arith.mulf %256, %153 : vector<64x16xf32>
    %cst_107 = arith.constant 6.000000e-01 : f32
    %258 = vector.broadcast %cst_107 : f32 to vector<64x16xf32>
    %259 = arith.subf %258, %0 : vector<64x16xf32>
    %cst_108 = arith.constant 1.250000e+00 : f32
    %260 = vector.broadcast %cst_108 : f32 to vector<64x16xf32>
    %261 = arith.mulf %259, %260 : vector<64x16xf32>
    %262 = arith.mulf %261, %164 : vector<64x16xf32>
    %263 = arith.addf %257, %262 : vector<64x16xf32>
    %cst_109 = arith.constant -2.000000e-01 : f32
    %264 = vector.broadcast %cst_109 : f32 to vector<64x16xf32>
    %265 = arith.subf %0, %264 : vector<64x16xf32>
    %cst_110 = arith.constant 1.250000e+00 : f32
    %266 = vector.broadcast %cst_110 : f32 to vector<64x16xf32>
    %267 = arith.mulf %265, %266 : vector<64x16xf32>
    %268 = arith.mulf %267, %164 : vector<64x16xf32>
    %cst_111 = arith.constant 1.000000e+00 : f32
    %269 = vector.broadcast %cst_111 : f32 to vector<64x16xf32>
    %270 = arith.subf %269, %0 : vector<64x16xf32>
    %cst_112 = arith.constant 1.250000e+00 : f32
    %271 = vector.broadcast %cst_112 : f32 to vector<64x16xf32>
    %272 = arith.mulf %270, %271 : vector<64x16xf32>
    %273 = arith.mulf %272, %175 : vector<64x16xf32>
    %274 = arith.addf %268, %273 : vector<64x16xf32>
    %cst_113 = arith.constant 2.000000e-01 : f32
    %275 = vector.broadcast %cst_113 : f32 to vector<64x16xf32>
    %276 = arith.subf %0, %275 : vector<64x16xf32>
    %cst_114 = arith.constant 1.250000e+00 : f32
    %277 = vector.broadcast %cst_114 : f32 to vector<64x16xf32>
    %278 = arith.mulf %276, %277 : vector<64x16xf32>
    %279 = arith.mulf %278, %175 : vector<64x16xf32>
    %cst_115 = arith.constant 1.400000e+00 : f32
    %280 = vector.broadcast %cst_115 : f32 to vector<64x16xf32>
    %281 = arith.subf %280, %0 : vector<64x16xf32>
    %cst_116 = arith.constant 1.250000e+00 : f32
    %282 = vector.broadcast %cst_116 : f32 to vector<64x16xf32>
    %283 = arith.mulf %281, %282 : vector<64x16xf32>
    %284 = arith.mulf %283, %186 : vector<64x16xf32>
    %285 = arith.addf %279, %284 : vector<64x16xf32>
    %cst_117 = arith.constant 6.000000e-01 : f32
    %286 = vector.broadcast %cst_117 : f32 to vector<64x16xf32>
    %287 = arith.subf %0, %286 : vector<64x16xf32>
    %cst_118 = arith.constant 1.250000e+00 : f32
    %288 = vector.broadcast %cst_118 : f32 to vector<64x16xf32>
    %289 = arith.mulf %287, %288 : vector<64x16xf32>
    %290 = arith.mulf %289, %186 : vector<64x16xf32>
    %cst_119 = arith.constant 1.800000e+00 : f32
    %291 = vector.broadcast %cst_119 : f32 to vector<64x16xf32>
    %292 = arith.subf %291, %0 : vector<64x16xf32>
    %cst_120 = arith.constant 1.250000e+00 : f32
    %293 = vector.broadcast %cst_120 : f32 to vector<64x16xf32>
    %294 = arith.mulf %292, %293 : vector<64x16xf32>
    %295 = arith.mulf %294, %197 : vector<64x16xf32>
    %296 = arith.addf %290, %295 : vector<64x16xf32>
    %cst_121 = arith.constant 1.000000e+00 : f32
    %297 = vector.broadcast %cst_121 : f32 to vector<64x16xf32>
    %298 = arith.subf %0, %297 : vector<64x16xf32>
    %cst_122 = arith.constant 1.250000e+00 : f32
    %299 = vector.broadcast %cst_122 : f32 to vector<64x16xf32>
    %300 = arith.mulf %298, %299 : vector<64x16xf32>
    %301 = arith.mulf %300, %197 : vector<64x16xf32>
    %cst_123 = arith.constant 2.200000e+00 : f32
    %302 = vector.broadcast %cst_123 : f32 to vector<64x16xf32>
    %303 = arith.subf %302, %0 : vector<64x16xf32>
    %cst_124 = arith.constant 1.250000e+00 : f32
    %304 = vector.broadcast %cst_124 : f32 to vector<64x16xf32>
    %305 = arith.mulf %303, %304 : vector<64x16xf32>
    %306 = arith.mulf %305, %208 : vector<64x16xf32>
    %307 = arith.addf %301, %306 : vector<64x16xf32>
    %cst_125 = arith.constant -2.200000e+00 : f32
    %308 = vector.broadcast %cst_125 : f32 to vector<64x16xf32>
    %309 = arith.subf %0, %308 : vector<64x16xf32>
    %cst_126 = arith.constant 0.833333313 : f32
    %310 = vector.broadcast %cst_126 : f32 to vector<64x16xf32>
    %311 = arith.mulf %309, %310 : vector<64x16xf32>
    %312 = arith.mulf %311, %219 : vector<64x16xf32>
    %cst_127 = arith.constant -6.000000e-01 : f32
    %313 = vector.broadcast %cst_127 : f32 to vector<64x16xf32>
    %314 = arith.subf %313, %0 : vector<64x16xf32>
    %cst_128 = arith.constant 0.833333313 : f32
    %315 = vector.broadcast %cst_128 : f32 to vector<64x16xf32>
    %316 = arith.mulf %314, %315 : vector<64x16xf32>
    %317 = arith.mulf %316, %230 : vector<64x16xf32>
    %318 = arith.addf %312, %317 : vector<64x16xf32>
    %cst_129 = arith.constant -1.800000e+00 : f32
    %319 = vector.broadcast %cst_129 : f32 to vector<64x16xf32>
    %320 = arith.subf %0, %319 : vector<64x16xf32>
    %cst_130 = arith.constant 0.833333313 : f32
    %321 = vector.broadcast %cst_130 : f32 to vector<64x16xf32>
    %322 = arith.mulf %320, %321 : vector<64x16xf32>
    %323 = arith.mulf %322, %230 : vector<64x16xf32>
    %cst_131 = arith.constant -2.000000e-01 : f32
    %324 = vector.broadcast %cst_131 : f32 to vector<64x16xf32>
    %325 = arith.subf %324, %0 : vector<64x16xf32>
    %cst_132 = arith.constant 0.833333313 : f32
    %326 = vector.broadcast %cst_132 : f32 to vector<64x16xf32>
    %327 = arith.mulf %325, %326 : vector<64x16xf32>
    %328 = arith.mulf %327, %241 : vector<64x16xf32>
    %329 = arith.addf %323, %328 : vector<64x16xf32>
    %cst_133 = arith.constant -1.400000e+00 : f32
    %330 = vector.broadcast %cst_133 : f32 to vector<64x16xf32>
    %331 = arith.subf %0, %330 : vector<64x16xf32>
    %cst_134 = arith.constant 0.833333313 : f32
    %332 = vector.broadcast %cst_134 : f32 to vector<64x16xf32>
    %333 = arith.mulf %331, %332 : vector<64x16xf32>
    %334 = arith.mulf %333, %241 : vector<64x16xf32>
    %cst_135 = arith.constant 2.000000e-01 : f32
    %335 = vector.broadcast %cst_135 : f32 to vector<64x16xf32>
    %336 = arith.subf %335, %0 : vector<64x16xf32>
    %cst_136 = arith.constant 0.833333313 : f32
    %337 = vector.broadcast %cst_136 : f32 to vector<64x16xf32>
    %338 = arith.mulf %336, %337 : vector<64x16xf32>
    %339 = arith.mulf %338, %252 : vector<64x16xf32>
    %340 = arith.addf %334, %339 : vector<64x16xf32>
    %cst_137 = arith.constant -1.000000e+00 : f32
    %341 = vector.broadcast %cst_137 : f32 to vector<64x16xf32>
    %342 = arith.subf %0, %341 : vector<64x16xf32>
    %cst_138 = arith.constant 0.833333313 : f32
    %343 = vector.broadcast %cst_138 : f32 to vector<64x16xf32>
    %344 = arith.mulf %342, %343 : vector<64x16xf32>
    %345 = arith.mulf %344, %252 : vector<64x16xf32>
    %cst_139 = arith.constant 6.000000e-01 : f32
    %346 = vector.broadcast %cst_139 : f32 to vector<64x16xf32>
    %347 = arith.subf %346, %0 : vector<64x16xf32>
    %cst_140 = arith.constant 0.833333313 : f32
    %348 = vector.broadcast %cst_140 : f32 to vector<64x16xf32>
    %349 = arith.mulf %347, %348 : vector<64x16xf32>
    %350 = arith.mulf %349, %263 : vector<64x16xf32>
    %351 = arith.addf %345, %350 : vector<64x16xf32>
    %cst_141 = arith.constant -6.000000e-01 : f32
    %352 = vector.broadcast %cst_141 : f32 to vector<64x16xf32>
    %353 = arith.subf %0, %352 : vector<64x16xf32>
    %cst_142 = arith.constant 0.833333313 : f32
    %354 = vector.broadcast %cst_142 : f32 to vector<64x16xf32>
    %355 = arith.mulf %353, %354 : vector<64x16xf32>
    %356 = arith.mulf %355, %263 : vector<64x16xf32>
    %cst_143 = arith.constant 1.000000e+00 : f32
    %357 = vector.broadcast %cst_143 : f32 to vector<64x16xf32>
    %358 = arith.subf %357, %0 : vector<64x16xf32>
    %cst_144 = arith.constant 0.833333313 : f32
    %359 = vector.broadcast %cst_144 : f32 to vector<64x16xf32>
    %360 = arith.mulf %358, %359 : vector<64x16xf32>
    %361 = arith.mulf %360, %274 : vector<64x16xf32>
    %362 = arith.addf %356, %361 : vector<64x16xf32>
    %cst_145 = arith.constant -2.000000e-01 : f32
    %363 = vector.broadcast %cst_145 : f32 to vector<64x16xf32>
    %364 = arith.subf %0, %363 : vector<64x16xf32>
    %cst_146 = arith.constant 0.833333313 : f32
    %365 = vector.broadcast %cst_146 : f32 to vector<64x16xf32>
    %366 = arith.mulf %364, %365 : vector<64x16xf32>
    %367 = arith.mulf %366, %274 : vector<64x16xf32>
    %cst_147 = arith.constant 1.400000e+00 : f32
    %368 = vector.broadcast %cst_147 : f32 to vector<64x16xf32>
    %369 = arith.subf %368, %0 : vector<64x16xf32>
    %cst_148 = arith.constant 0.833333313 : f32
    %370 = vector.broadcast %cst_148 : f32 to vector<64x16xf32>
    %371 = arith.mulf %369, %370 : vector<64x16xf32>
    %372 = arith.mulf %371, %285 : vector<64x16xf32>
    %373 = arith.addf %367, %372 : vector<64x16xf32>
    %cst_149 = arith.constant 2.000000e-01 : f32
    %374 = vector.broadcast %cst_149 : f32 to vector<64x16xf32>
    %375 = arith.subf %0, %374 : vector<64x16xf32>
    %cst_150 = arith.constant 0.833333313 : f32
    %376 = vector.broadcast %cst_150 : f32 to vector<64x16xf32>
    %377 = arith.mulf %375, %376 : vector<64x16xf32>
    %378 = arith.mulf %377, %285 : vector<64x16xf32>
    %cst_151 = arith.constant 1.800000e+00 : f32
    %379 = vector.broadcast %cst_151 : f32 to vector<64x16xf32>
    %380 = arith.subf %379, %0 : vector<64x16xf32>
    %cst_152 = arith.constant 0.833333313 : f32
    %381 = vector.broadcast %cst_152 : f32 to vector<64x16xf32>
    %382 = arith.mulf %380, %381 : vector<64x16xf32>
    %383 = arith.mulf %382, %296 : vector<64x16xf32>
    %384 = arith.addf %378, %383 : vector<64x16xf32>
    %cst_153 = arith.constant 6.000000e-01 : f32
    %385 = vector.broadcast %cst_153 : f32 to vector<64x16xf32>
    %386 = arith.subf %0, %385 : vector<64x16xf32>
    %cst_154 = arith.constant 0.833333313 : f32
    %387 = vector.broadcast %cst_154 : f32 to vector<64x16xf32>
    %388 = arith.mulf %386, %387 : vector<64x16xf32>
    %389 = arith.mulf %388, %296 : vector<64x16xf32>
    %cst_155 = arith.constant 2.200000e+00 : f32
    %390 = vector.broadcast %cst_155 : f32 to vector<64x16xf32>
    %391 = arith.subf %390, %0 : vector<64x16xf32>
    %cst_156 = arith.constant 0.833333313 : f32
    %392 = vector.broadcast %cst_156 : f32 to vector<64x16xf32>
    %393 = arith.mulf %391, %392 : vector<64x16xf32>
    %394 = arith.mulf %393, %307 : vector<64x16xf32>
    %395 = arith.addf %389, %394 : vector<64x16xf32>
    %396 = arith.truncf %318 : vector<64x16xf32> to vector<64x16xbf16>
    %c0_157 = arith.constant 0 : index
    %c0_158 = arith.constant 0 : index
    %c0_159 = arith.constant 0 : index
    %397 = vector.load %arg3[%c0_157, %c0_158, %c0_159] : memref<8x32x16xbf16, #tpu.memory_space<vmem>>, vector<1x32x16xbf16>
    %398 = vector.shape_cast %397 : vector<1x32x16xbf16> to vector<32x16xbf16>
    %cst_160 = arith.constant dense<0.000000e+00> : vector<64x32xf32>
    %399 = tpu.matmul %396, %398, %cst_160 {dimension_numbers = #tpu.dot_dimension_numbers<[1], [1], [0], [0], [0, 0, 1, 0], [], []>} : vector<64x16xbf16>, vector<32x16xbf16>, vector<64x32xf32> -> vector<64x32xf32>
    %400 = arith.addf %10, %399 : vector<64x32xf32>
    %401 = arith.truncf %329 : vector<64x16xf32> to vector<64x16xbf16>
    %c1 = arith.constant 1 : index
    %c0_161 = arith.constant 0 : index
    %c0_162 = arith.constant 0 : index
    %402 = vector.load %arg3[%c1, %c0_161, %c0_162] : memref<8x32x16xbf16, #tpu.memory_space<vmem>>, vector<1x32x16xbf16>
    %403 = vector.shape_cast %402 : vector<1x32x16xbf16> to vector<32x16xbf16>
    %cst_163 = arith.constant dense<0.000000e+00> : vector<64x32xf32>
    %404 = tpu.matmul %401, %403, %cst_163 {dimension_numbers = #tpu.dot_dimension_numbers<[1], [1], [0], [0], [0, 0, 1, 0], [], []>} : vector<64x16xbf16>, vector<32x16xbf16>, vector<64x32xf32> -> vector<64x32xf32>
    %405 = arith.addf %400, %404 : vector<64x32xf32>
    %406 = arith.truncf %340 : vector<64x16xf32> to vector<64x16xbf16>
    %c2 = arith.constant 2 : index
    %c0_164 = arith.constant 0 : index
    %c0_165 = arith.constant 0 : index
    %407 = vector.load %arg3[%c2, %c0_164, %c0_165] : memref<8x32x16xbf16, #tpu.memory_space<vmem>>, vector<1x32x16xbf16>
    %408 = vector.shape_cast %407 : vector<1x32x16xbf16> to vector<32x16xbf16>
    %cst_166 = arith.constant dense<0.000000e+00> : vector<64x32xf32>
    %409 = tpu.matmul %406, %408, %cst_166 {dimension_numbers = #tpu.dot_dimension_numbers<[1], [1], [0], [0], [0, 0, 1, 0], [], []>} : vector<64x16xbf16>, vector<32x16xbf16>, vector<64x32xf32> -> vector<64x32xf32>
    %410 = arith.addf %405, %409 : vector<64x32xf32>
    %411 = arith.truncf %351 : vector<64x16xf32> to vector<64x16xbf16>
    %c3 = arith.constant 3 : index
    %c0_167 = arith.constant 0 : index
    %c0_168 = arith.constant 0 : index
    %412 = vector.load %arg3[%c3, %c0_167, %c0_168] : memref<8x32x16xbf16, #tpu.memory_space<vmem>>, vector<1x32x16xbf16>
    %413 = vector.shape_cast %412 : vector<1x32x16xbf16> to vector<32x16xbf16>
    %cst_169 = arith.constant dense<0.000000e+00> : vector<64x32xf32>
    %414 = tpu.matmul %411, %413, %cst_169 {dimension_numbers = #tpu.dot_dimension_numbers<[1], [1], [0], [0], [0, 0, 1, 0], [], []>} : vector<64x16xbf16>, vector<32x16xbf16>, vector<64x32xf32> -> vector<64x32xf32>
    %415 = arith.addf %410, %414 : vector<64x32xf32>
    %416 = arith.truncf %362 : vector<64x16xf32> to vector<64x16xbf16>
    %c4 = arith.constant 4 : index
    %c0_170 = arith.constant 0 : index
    %c0_171 = arith.constant 0 : index
    %417 = vector.load %arg3[%c4, %c0_170, %c0_171] : memref<8x32x16xbf16, #tpu.memory_space<vmem>>, vector<1x32x16xbf16>
    %418 = vector.shape_cast %417 : vector<1x32x16xbf16> to vector<32x16xbf16>
    %cst_172 = arith.constant dense<0.000000e+00> : vector<64x32xf32>
    %419 = tpu.matmul %416, %418, %cst_172 {dimension_numbers = #tpu.dot_dimension_numbers<[1], [1], [0], [0], [0, 0, 1, 0], [], []>} : vector<64x16xbf16>, vector<32x16xbf16>, vector<64x32xf32> -> vector<64x32xf32>
    %420 = arith.addf %415, %419 : vector<64x32xf32>
    %421 = arith.truncf %373 : vector<64x16xf32> to vector<64x16xbf16>
    %c5 = arith.constant 5 : index
    %c0_173 = arith.constant 0 : index
    %c0_174 = arith.constant 0 : index
    %422 = vector.load %arg3[%c5, %c0_173, %c0_174] : memref<8x32x16xbf16, #tpu.memory_space<vmem>>, vector<1x32x16xbf16>
    %423 = vector.shape_cast %422 : vector<1x32x16xbf16> to vector<32x16xbf16>
    %cst_175 = arith.constant dense<0.000000e+00> : vector<64x32xf32>
    %424 = tpu.matmul %421, %423, %cst_175 {dimension_numbers = #tpu.dot_dimension_numbers<[1], [1], [0], [0], [0, 0, 1, 0], [], []>} : vector<64x16xbf16>, vector<32x16xbf16>, vector<64x32xf32> -> vector<64x32xf32>
    %425 = arith.addf %420, %424 : vector<64x32xf32>
    %426 = arith.truncf %384 : vector<64x16xf32> to vector<64x16xbf16>
    %c6 = arith.constant 6 : index
    %c0_176 = arith.constant 0 : index
    %c0_177 = arith.constant 0 : index
    %427 = vector.load %arg3[%c6, %c0_176, %c0_177] : memref<8x32x16xbf16, #tpu.memory_space<vmem>>, vector<1x32x16xbf16>
    %428 = vector.shape_cast %427 : vector<1x32x16xbf16> to vector<32x16xbf16>
    %cst_178 = arith.constant dense<0.000000e+00> : vector<64x32xf32>
    %429 = tpu.matmul %426, %428, %cst_178 {dimension_numbers = #tpu.dot_dimension_numbers<[1], [1], [0], [0], [0, 0, 1, 0], [], []>} : vector<64x16xbf16>, vector<32x16xbf16>, vector<64x32xf32> -> vector<64x32xf32>
    %430 = arith.addf %425, %429 : vector<64x32xf32>
    %431 = arith.truncf %395 : vector<64x16xf32> to vector<64x16xbf16>
    %c7 = arith.constant 7 : index
    %c0_179 = arith.constant 0 : index
    %c0_180 = arith.constant 0 : index
    %432 = vector.load %arg3[%c7, %c0_179, %c0_180] : memref<8x32x16xbf16, #tpu.memory_space<vmem>>, vector<1x32x16xbf16>
    %433 = vector.shape_cast %432 : vector<1x32x16xbf16> to vector<32x16xbf16>
    %cst_181 = arith.constant dense<0.000000e+00> : vector<64x32xf32>
    %434 = tpu.matmul %431, %433, %cst_181 {dimension_numbers = #tpu.dot_dimension_numbers<[1], [1], [0], [0], [0, 0, 1, 0], [], []>} : vector<64x16xbf16>, vector<32x16xbf16>, vector<64x32xf32> -> vector<64x32xf32>
    %435 = arith.addf %430, %434 : vector<64x32xf32>
    %c0_182 = arith.constant 0 : index
    %c0_183 = arith.constant 0 : index
    %436 = vector.load %arg4[%c0_182, %c0_183] : memref<64x32xf32, #tpu.memory_space<vmem>>, vector<64x32xf32>
    tpu.vector_store %arg4[%c0_182, %c0_183], %435 {strides = array<i32>} : memref<64x32xf32, #tpu.memory_space<vmem>>, vector<64x32xf32>,
    return
  }
  func.func @transform_0(%arg0: i32) -> (i32, i32) {
    %c0_i32 = arith.constant 0 : i32
    %c0_i32_0 = arith.constant 0 : i32
    return %arg0, %c0_i32 : i32, i32
  }
  func.func @transform_1(%arg0: i32) -> (i32, i32) {
    %c0_i32 = arith.constant 0 : i32
    %c0_i32_0 = arith.constant 0 : i32
    %c0_i32_1 = arith.constant 0 : i32
    return %c0_i32, %c0_i32_0 : i32, i32
  }
  func.func @transform_2(%arg0: i32) -> (i32, i32, i32) {
    %c0_i32 = arith.constant 0 : i32
    %c0_i32_0 = arith.constant 0 : i32
    %c0_i32_1 = arith.constant 0 : i32
    %c0_i32_2 = arith.constant 0 : i32
    return %c0_i32, %c0_i32_0, %c0_i32_1 : i32, i32, i32
  }
  func.func @transform_3(%arg0: i32) -> (i32, i32) {
    %c0_i32 = arith.constant 0 : i32
    %c0_i32_0 = arith.constant 0 : i32
    return %arg0, %c0_i32 : i32, i32
  }
}

</mosaic_0001>

<bundles_post_ra>
// kernel: tpu_custom_call.1
= control target key start
LH: loop header
LB: loop body
LE: loop exit
PB: predicated region body
PF: predicated region fallthrough
CT: control target
= control target key end

     0   :  { %vm4975_vm0 = vcmask 130048   ;;  %v4976_v8 = vmov 0.0   ;;  %s4971_s2 = inlined_call_operand.vmem [shape: bf16[8,32,16], index: 2, kind: input, shape index: {}]   ;;  %s4972_s1 = inlined_call_operand.vmem [shape: bf16[32,16], index: 1, kind: input, shape index: {}]   ;;  %s4973_s0 = inlined_call_operand.vmem [shape: f32[64,16], index: 0, kind: input, shape index: {}]   ;;  %s4974_s3 = inlined_call_operand.vmem [shape: f32[64,32], index: 3, kind: output, shape index: {}]  }
   0x1   :  { %v2998_v0 = vld [vmem:[%s4971_s2 + $0x8] sm:$0xff]   ;;  %v2999_v1 = vld [vmem:[%s4971_s2] sm:$0xff]   ;;  %v3163_v26 = vld [vmem:[%s4971_s2 + $0x18] sm:$0xff]  }
   0x2   :  { %2977 = vmatprep.subr.msk.bf16.mxu0 %vm4975_vm0, %v2998_v0  ;;  %v1706_v2 = vsel %vm4975_vm0, %v2998_v0, 0  ;;  %v3000_v3 = vld [vmem:[%s4972_s1 + $0x8] sm:$0xff]   ;;  %v1703_v4 = vsel %vm4975_vm0, %v2999_v1, 0  ;;  %v3100_v5 = vld [vmem:[%s4973_s0] sm:$0xff] }
   0x3   :  { %2866 = vmatpush3.bf16.xpose.msra.mxu0 %v1706_v2  ;;  %v3105_v6 = vld [vmem:[%s4973_s0 + $0x8] sm:$0xff]  ;;  %2979 = vmatprep.subr.msk.bf16.mxu1 %vm4975_vm0, %v3000_v3  ;;  %v1799_v7 = vsel %vm4975_vm0, %v3000_v3, 0  ;;  %vm79_vm1 = vcmp.ge.f32.partialorder %v3100_v5, -2.2  ;;  %vm87_vm4 = vcmp.lt.f32.partialorder %v3100_v5, -1.8 }
   0x4   :  { %2978 = vmatprep.subr.msk.bf16.mxu0 %vm4975_vm0, %v2999_v1  ;;  %vm80_vm2 = vcmp.ge.f32.partialorder %v3105_v6, -2.2  ;;  %2878 = vmatpush3.bf16.xpose.msra.mxu1 %v1799_v7  ;;  %vm88_vm5 = vcmp.lt.f32.partialorder %v3105_v6, -1.8  ;;  %vm111_vm6 = vcmp.ge.f32.partialorder %v3100_v5, -1.8  ;;  %vm95_vm7 = vmand %vm79_vm1, %vm87_vm4 }
   0x5   :  { %vm112_vm8 = vcmp.ge.f32.partialorder %v3105_v6, -1.8  ;;  %vm119_vm9 = vcmp.lt.f32.partialorder %v3100_v5, -1.4  ;;  %vm120_vm10 = vcmp.lt.f32.partialorder %v3105_v6, -1.4  ;;  %vm96_vm11 = vmand %vm80_vm2, %vm88_vm5 }
   0x6   :  { %v103_v9 = vsel %vm95_vm7, 1.0, %v4976_v8  ;;  %vm143_vm12 = vcmp.ge.f32.partialorder %v3100_v5, -1.4  ;;  %vm144_vm13 = vcmp.ge.f32.partialorder %v3105_v6, -1.4  ;;  %vm152_vm14 = vcmp.lt.f32.partialorder %v3105_v6, -1.0  ;;  %vm127_vm15 = vmand %vm111_vm6, %vm119_vm9 }
   0x7   :  { %v104_v10 = vsel %vm96_vm11, 1.0, %v4976_v8  ;;  %vm175_vm1 = vcmp.ge.f32.partialorder %v3100_v5, -1.0  ;;  %vm176_vm4 = vcmp.ge.f32.partialorder %v3105_v6, -1.0  ;;  %vm183_vm0 = vcmp.lt.f32.partialorder %v3100_v5, -0.6  ;;  %vm128_vm3 = vmand %vm112_vm8, %vm120_vm10  ;;  %v3174_v31 = vld [vmem:[%s4972_s1] sm:$0xff]  }
   0x8   :  { %v135_v11 = vsel %vm127_vm15, 1.0, %v4976_v8  ;;  %vm184_vm2 = vcmp.lt.f32.partialorder %v3105_v6, -0.6  ;;  %v3130_v12 = vadd.f32 2.2, %v3100_v5  ;;  %v511_v13 = vsub.f32 -1.0, %v3100_v5  ;;  %vm160_vm7 = vmand %vm144_vm13, %vm152_vm14 }
   0x9   :  { %v136_v14 = vsel %vm128_vm3, 1.0, %v4976_v8  ;;  %vm5054_vm5 = vcmp.lt.f32.partialorder %v3100_v5, -1.0  ;;  %v3137_v15 = vadd.f32 2.2, %v3105_v6  ;;  %v455_v16 = vsub.f32 -1.4, %v3100_v5  ;;  %vm191_vm3 = vmand %vm175_vm1, %vm183_vm0 }
   0xa   :  { %vm159_vm6 = vmand %vm143_vm12, %vm5054_vm5  ;;  %v512_v17 = vsub.f32 -1.0, %v3105_v6  ;;  %v439_v19 = vmul.f32 2.5, %v3130_v12  ;;  %v456_v20 = vsub.f32 -1.4, %v3105_v6  ;;  %v3149_v21 = vadd.f32 1.8, %v3100_v5 }
   0xb   :  { %2868 = vmatpush3.bf16.xpose.msra.mxu0 %v1703_v4  ;;  %v167_v18 = vsel %vm159_vm6, 1.0, %v4976_v8  ;;  %v168_v22 = vsel %vm160_vm7, 1.0, %v4976_v8  ;;  %v440_v23 = vmul.f32 2.5, %v3137_v15  ;;  %v463_v24 = vmul.f32 2.5, %v455_v16  ;;  %vm192_vm8 = vmand %vm176_vm4, %vm184_vm2 }
   0xc   :  { %v3158_v25 = vadd.f32 1.8, %v3105_v6  ;;  %v199_v27 = vsel %vm191_vm3, 1.0, %v4976_v8  ;;  %v447_v28 = vmul.f32 %v439_v19, %v103_v9  ;;  %v464_v29 = vmul.f32 2.5, %v456_v20 }
   0xd   :  { %v495_v30 = vmul.f32 2.5, %v3149_v21  ;;  %v200_v32 = vsel %vm192_vm8, 1.0, %v4976_v8  ;;  %v448_v33 = vmul.f32 %v440_v23, %v104_v10  ;;  %v471_v34 = vmul.f32 %v463_v24, %v135_v11 }
   0xe   :  { %v496_v35 = vmul.f32 2.5, %v3158_v25  ;;  %vm5055_vm0 = vcmask 130048   ;;  %v472_v36 = vmul.f32 %v464_v29, %v136_v14  ;;  %v519_v38 = vmul.f32 2.5, %v511_v13 }
   0xf   :  { %2981 = vmatprep.subr.msk.bf16.mxu0 %vm5055_vm0, %v3163_v26  ;;  %v503_v37 = vmul.f32 %v495_v30, %v135_v11  ;;  %v520_v39 = vmul.f32 2.5, %v512_v17  ;;  %vm5056_vm9 = vmmov %vm5055_vm0  ;;  %v479_v40 = vadd.f32 %v471_v34, %v447_v28  ;;  %v3183_v42 = vadd.f32 1.4, %v3100_v5 }
  0x10   :  { %2980 = vmatprep.subr.msk.bf16.mxu1 %vm5056_vm9, %v3174_v31  ;;  %v504_v41 = vmul.f32 %v496_v35, %v136_v14  ;;  %v3186_v43 = vadd.f32 1.4, %v3105_v6  ;;  %v480_v44 = vadd.f32 %v472_v36, %v448_v33  ;;  %v527_v45 = vmul.f32 %v519_v38, %v167_v18 }
  0x11   :  { %5057 = vst [vmem:[#allocation2_spill] sm:$0xff] %v3183_v42  ;;  %v528_v46 = vmul.f32 %v520_v39, %v168_v22  ;;  %v567_v47 = vsub.f32 -0.6, %v3100_v5  ;;  %v551_v48 = vmul.f32 2.5, %v3183_v42  ;;  %v568_v50 = vsub.f32 -0.6, %v3105_v6 }
  0x12   :  { %5058 = vst [vmem:[#allocation3_spill] sm:$0xff] %v3186_v43  ;;  %v552_v49 = vmul.f32 2.5, %v3186_v43  ;;  %v3193_v51 = vadd.f32 1.0, %v3100_v5  ;;  %v535_v52 = vadd.f32 %v527_v45, %v503_v37  ;;  %v3196_v55 = vadd.f32 1.0, %v3105_v6  ;;  %v3223_v39 = vld [vmem:[%s4973_s0 + $0x18] sm:$0xff] }
  0x13   :  { %v536_v53 = vadd.f32 %v528_v46, %v504_v41  ;;  %v575_v54 = vmul.f32 2.5, %v567_v47  ;;  %v559_v56 = vmul.f32 %v551_v48, %v167_v18  ;;  %v576_v58 = vmul.f32 2.5, %v568_v50 }
  0x14   :  { %5059 = vst [vmem:[#allocation4_spill] sm:$0xff] %v3193_v51  ;;  %5060 = vst [vmem:[#allocation5_spill] sm:$0xff] %v3196_v55  ;;  %v560_v57 = vmul.f32 %v552_v49, %v168_v22  ;;  %v607_v59 = vmul.f32 2.5, %v3193_v51  ;;  %v608_v61 = vmul.f32 2.5, %v3196_v55  ;;  %v991_v62 = vmul.f32 1.25, %v3130_v12 }
  0x15   :  { %v583_v60 = vmul.f32 %v575_v54, %v199_v27  ;;  %v992_v63 = vmul.f32 1.25, %v3137_v15  ;;  %v584_v0 = vmul.f32 %v576_v58, %v200_v32  ;;  %v1007_v1 = vmul.f32 1.25, %v511_v13 }
  0x16   :  { %v1008_v2 = vmul.f32 1.25, %v512_v17  ;;  %v3202_v4 = vmul.f32 %v607_v59, %v199_v27  ;;  %v999_v5 = vmul.f32 %v991_v62, %v479_v40  ;;  %v1031_v11 = vmul.f32 1.25, %v3149_v21 }
  0x17   :  { %v591_v3 = vadd.f32 %v583_v60, %v559_v56  ;;  %v1000_v6 = vmul.f32 %v992_v63, %v480_v44  ;;  %v592_v7 = vadd.f32 %v584_v0, %v560_v57  ;;  %v1015_v9 = vmul.f32 %v1007_v1, %v535_v52 }
  0x18   :  { %v1016_v10 = vmul.f32 %v1008_v2, %v536_v53  ;;  %v1032_v14 = vmul.f32 1.25, %v3158_v25  ;;  %v1047_v16 = vmul.f32 1.25, %v567_v47  ;;  %v1048_v18 = vmul.f32 1.25, %v568_v50 }
  0x19   :  { %v1071_v19 = vmul.f32 1.25, %v3183_v42  ;;  %v1023_v20 = vadd.f32 %v1015_v9, %v999_v5  ;;  %v1039_v13 = vmul.f32 %v1031_v11, %v535_v52  ;;  %v1072_v17 = vmul.f32 1.25, %v3186_v43 }
  0x1a   :  { %v1024_v22 = vadd.f32 %v1016_v10, %v1000_v6  ;;  %v3208_v23 = vmul.f32 %v608_v61, %v200_v32  ;;  %v1040_v24 = vmul.f32 %v1032_v14, %v536_v53  ;;  %v1055_v27 = vmul.f32 %v1047_v16, %v591_v3  ;;  %v3218_v32 = vld [vmem:[%s4973_s0 + $0x10] sm:$0xff] }
  0x1b   :  { %v1056_v28 = vmul.f32 %v1048_v18, %v592_v7  ;;  %v3210_v29 = vmul.f32 %v1071_v19, %v591_v3  ;;  %v1351_v30 = vmul.f32 0.8333333, %v3130_v12  ;;  %v1352_v33 = vmul.f32 0.8333333, %v3137_v15 }
  0x1c   :  { %v1367_v34 = vmul.f32 0.8333333, %v567_v47  ;;  %v1063_v35 = vadd.f32 %v1055_v27, %v1039_v13  ;;  %v1368_v37 = vmul.f32 0.8333333, %v568_v50  ;;  %v1391_v38 = vmul.f32 0.8333333, %v3149_v21 }
  0x1d   :  { %v1064_v36 = vadd.f32 %v1056_v28, %v1040_v24  ;;  %v1359_v40 = vmul.f32 %v1351_v30, %v1023_v20  ;;  %v1360_v12 = vmul.f32 %v1352_v33, %v1024_v22  ;;  %v1392_v15 = vmul.f32 0.8333333, %v3158_v25 }
  0x1e   :  { %vm81_vm10 = vcmp.ge.f32.partialorder %v3218_v32, -2.2  ;;  %v1375_v41 = vmul.f32 %v1367_v34, %v1063_v35  ;;  %v3227_v45 = vmul.f32 %v1391_v38, %v1063_v35  ;;  %vm82_vm11 = vcmp.ge.f32.partialorder %v3223_v39, -2.2 }
  0x1f   :  { %v1376_v44 = vmul.f32 %v1368_v37, %v1064_v36  ;;  %v3230_v21 = vmul.f32 %v1392_v15, %v1064_v36  ;;  %vm89_vm12 = vcmp.lt.f32.partialorder %v3218_v32, -1.8  ;;  %vm90_vm13 = vcmp.lt.f32.partialorder %v3223_v39, -1.8 }
  0x20   :  { %vm113_vm14 = vcmp.ge.f32.partialorder %v3218_v32, -1.8  ;;  %v1383_v46 = vadd.f32 %v1375_v41, %v1359_v40  ;;  %vm97_vm15 = vmand %vm81_vm10, %vm89_vm12  ;;  %vm114_vm1 = vcmp.ge.f32.partialorder %v3223_v39, -1.8  ;;  %vm121_vm4 = vcmp.lt.f32.partialorder %v3218_v32, -1.4 }
  0x21   :  { %v1384_v47 = vadd.f32 %v1376_v44, %v1360_v12  ;;  %v3237_v25 = vmul.f32 %v1072_v17, %v592_v7  ;;  %vm98_vm2 = vmand %vm82_vm11, %vm90_vm13  ;;  %vm122_vm5 = vcmp.lt.f32.partialorder %v3223_v39, -1.4  ;;  %vm145_vm6 = vcmp.ge.f32.partialorder %v3218_v32, -1.4 }
  0x22   :  { %vm153_vm7 = vcmp.lt.f32.partialorder %v3218_v32, -1.0  ;;  %v105_v49 = vsel %vm97_vm15, 1.0, %v4976_v8  ;;  %vm129_vm3 = vmand %vm113_vm14, %vm121_vm4  ;;  %vm146_vm8 = vcmp.ge.f32.partialorder %v3223_v39, -1.4  ;;  %vm154_vm0 = vcmp.lt.f32.partialorder %v3223_v39, -1.0 }
  0x23   :  { %v1671_v48 = vpack.c.bf16 %v1384_v47, %v1383_v46  ;;  %v106_v50 = vsel %vm98_vm2, 1.0, %v4976_v8  ;;  %vm130_vm9 = vmand %vm114_vm1, %vm122_vm5  ;;  %v137_v52 = vsel %vm129_vm3, 1.0, %v4976_v8  ;;  %vm177_vm10 = vcmp.ge.f32.partialorder %v3218_v32, -1.0 }
  0x24   :  { %vm185_vm11 = vcmp.lt.f32.partialorder %v3218_v32, -0.6  ;;  %vm5061_vm12 = vcmask 130048   ;;  %vm161_vm13 = vmand %vm145_vm6, %vm153_vm7  ;;  %vm178_vm15 = vcmp.ge.f32.partialorder %v3223_v39, -1.0  ;;  %vm186_vm14 = vcmp.lt.f32.partialorder %v3223_v39, -0.6 }
  0x25   :  { %2869 = vmatprep.mubr.msk.bf16.mxu0 %vm5061_vm12, %v1671_v48  ;;  %vm209_vm4 = vcmp.ge.f32.partialorder %v3218_v32, -0.6  ;;  %v513_v53 = vsub.f32 -1.0, %v3218_v32  ;;  %v138_v54 = vsel %vm130_vm9, 1.0, %v4976_v8  ;;  %vm162_vm1 = vmand %vm146_vm8, %vm154_vm0  ;;  %vm210_vm2 = vcmp.ge.f32.partialorder %v3223_v39, -0.6 }
  0x26   :  { %vm217_vm5 = vcmp.lt.f32.partialorder %v3218_v32, -0.2  ;;  %v514_v56 = vsub.f32 -1.0, %v3223_v39  ;;  %v169_v57 = vsel %vm161_vm13, 1.0, %v4976_v8  ;;  %v170_v58 = vsel %vm162_vm1, 1.0, %v4976_v8  ;;  %vm193_vm6 = vmand %vm177_vm10, %vm185_vm11 }
  0x27   :  { %vm218_vm7 = vcmp.lt.f32.partialorder %v3223_v39, -0.2  ;;  %v3264_v59 = vadd.f32 2.2, %v3218_v32  ;;  %vm194_vm3 = vmand %vm178_vm15, %vm186_vm14  ;;  %v201_v60 = vsel %vm193_vm6, 1.0, %v4976_v8  ;;  %v521_v63 = vmul.f32 2.5, %v513_v53 }
  0x28   :  { %v3268_v61 = vadd.f32 2.2, %v3223_v39  ;;  %v457_v62 = vsub.f32 -1.4, %v3218_v32  ;;  %vm225_vm8 = vmand %vm209_vm4, %vm217_vm5  ;;  %v458_v1 = vsub.f32 -1.4, %v3223_v39 }
  0x29   :  { %v441_v0 = vmul.f32 2.5, %v3264_v59  ;;  %v3278_v2 = vadd.f32 1.8, %v3218_v32  ;;  %v522_v3 = vmul.f32 2.5, %v514_v56  ;;  %v202_v5 = vsel %vm194_vm3, 1.0, %v4976_v8  ;;  %vm226_vm0 = vmand %vm210_vm2, %vm218_vm7 }
  0x2a   :  { %v442_v6 = vmul.f32 2.5, %v3268_v61  ;;  %v465_v7 = vmul.f32 2.5, %v457_v62  ;;  %v3287_v9 = vadd.f32 1.8, %v3223_v39  ;;  %v233_v10 = vsel %vm225_vm8, 1.0, %v4976_v8  ;;  %vm5075_vm9 = vmmov %vm5061_vm12 }
  0x2b   :  { %v449_v11 = vmul.f32 %v441_v0, %v105_v49  ;;  %v466_v14 = vmul.f32 2.5, %v458_v1  ;;  %v497_v16 = vmul.f32 2.5, %v3278_v2  ;;  %v529_v22 = vmul.f32 %v521_v63, %v169_v57  ;;  %vm5076_vm10 = vmmov %vm5075_vm9 }
  0x2c   :  { %v450_v18 = vmul.f32 %v442_v6, %v106_v50  ;;  %v473_v19 = vmul.f32 %v465_v7, %v137_v52  ;;  %v498_v20 = vmul.f32 2.5, %v3287_v9  ;;  %v3293_v13 = vsel %vm226_vm0, 1.0, %v4976_v8  ;;  %vm5077_vm1 = vmmov %vm5075_vm9 }
  0x2d   :  { %5062 = vst [vmem:[#allocation6_spill] sm:$0xff] %v3293_v13  ;;  %v474_v17 = vmul.f32 %v466_v14, %v138_v54  ;;  %v505_v24 = vmul.f32 %v497_v16, %v137_v52  ;;  %v3296_v27 = vadd.f32 1.4, %v3218_v32  ;;  %v530_v30 = vmul.f32 %v522_v3, %v170_v58  ;;  %vm5078_vm2 = vmmov %vm5077_vm1 }
  0x2e   :  { %v481_v28 = vadd.f32 %v473_v19, %v449_v11  ;;  %v3299_v33 = vadd.f32 1.4, %v3223_v39  ;;  %v3302_v34 = vsub.f32 -0.6, %v3218_v32  ;;  %v506_v36 = vmul.f32 %v498_v20, %v138_v54 }
  0x2f   :  { %5063 = vst [vmem:[#allocation7_spill] sm:$0xff] %v3296_v27  ;;  %v482_v35 = vadd.f32 %v474_v17, %v450_v18  ;;  %v553_v37 = vmul.f32 2.5, %v3296_v27  ;;  %v570_v38 = vsub.f32 -0.6, %v3223_v39  ;;  %v537_v40 = vadd.f32 %v529_v22, %v505_v24 }
  0x30   :  { %5064 = vst [vmem:[#allocation8_spill] sm:$0xff] %v3299_v33  ;;  %v554_v12 = vmul.f32 2.5, %v3299_v33  ;;  %v577_v15 = vmul.f32 2.5, %v3302_v34  ;;  %v3309_v41 = vadd.f32 1.0, %v3218_v32  ;;  %v3312_v47 = vadd.f32 1.0, %v3223_v39 }
  0x31   :  { %v561_v44 = vmul.f32 %v553_v37, %v169_v57  ;;  %v578_v46 = vmul.f32 2.5, %v570_v38  ;;  %v3315_v48 = vsub.f32 -0.2, %v3218_v32  ;;  %v626_v54 = vsub.f32 -0.2, %v3223_v39 }
  0x32   :  { %5065 = vst [vmem:[#allocation9_spill] sm:$0xff] %v3309_v41  ;;  %5066 = vst [vmem:[#allocation10_spill] sm:$0xff] %v3312_v47  ;;  %v562_v49 = vmul.f32 %v554_v12, %v170_v58  ;;  %v585_v50 = vmul.f32 %v577_v15, %v201_v60  ;;  %v609_v52 = vmul.f32 2.5, %v3309_v41  ;;  %v610_v63 = vmul.f32 2.5, %v3312_v47 }
  0x33   :  { %v586_v62 = vmul.f32 %v578_v46, %v202_v5  ;;  %v633_v0 = vmul.f32 2.5, %v3315_v48  ;;  %v3322_v57 = vadd.f32 0.6, %v3218_v32  ;;  %v538_v1 = vadd.f32 %v530_v30, %v506_v36 }
  0x34   :  { %v617_v3 = vmul.f32 %v609_v52, %v201_v60  ;;  %v634_v6 = vmul.f32 2.5, %v626_v54  ;;  %v3325_v7 = vadd.f32 0.6, %v3223_v39  ;;  %v593_v58 = vadd.f32 %v585_v50, %v561_v44 }
  0x35   :  { %5067 = vst [vmem:[#allocation11_spill] sm:$0xff] %v3322_v57  ;;  %v618_v11 = vmul.f32 %v610_v63, %v202_v5  ;;  %v641_v14 = vmul.f32 %v633_v0, %v233_v10  ;;  %v665_v16 = vmul.f32 2.5, %v3322_v57  ;;  %v594_v18 = vadd.f32 %v586_v62, %v562_v49 }
  0x36   :  { %5068 = vst [vmem:[#allocation12_spill] sm:$0xff] %v3325_v7  ;;  %v642_v19 = vmul.f32 %v634_v6, %v3293_v13  ;;  %v993_v20 = vmul.f32 1.25, %v3264_v59  ;;  %v994_v22 = vmul.f32 1.25, %v3268_v61  ;;  %v3334_v60 = vmul.f32 2.5, %v3325_v7 }
  0x37   :  { %v3331_v17 = vadd.f32 %v641_v14, %v617_v3  ;;  %v1009_v24 = vmul.f32 1.25, %v513_v53  ;;  %v1010_v5 = vmul.f32 1.25, %v514_v56  ;;  %v3342_v36 = vmul.f32 %v665_v16, %v233_v10 }
  0x38   :  { %5070 = vst [vmem:[#allocation14_spill] sm:$0xff] %v3334_v60  ;;  %v3340_v30 = vadd.f32 %v642_v19, %v618_v11  ;;  %v1001_v37 = vmul.f32 %v993_v20, %v481_v28  ;;  %v1002_v12 = vmul.f32 %v994_v22, %v482_v35  ;;  %v1033_v46 = vmul.f32 1.25, %v3278_v2 }
  0x39   :  { %5069 = vst [vmem:[#allocation13_spill] sm:$0xff] %v3331_v17  ;;  %5072 = vst [vmem:[#allocation16_spill] sm:$0xff] %v3342_v36  ;;  %v1017_v15 = vmul.f32 %v1009_v24, %v537_v40  ;;  %v1018_v44 = vmul.f32 %v1010_v5, %v538_v1  ;;  %v1034_v49 = vmul.f32 1.25, %v3287_v9  ;;  %v1049_v50 = vmul.f32 1.25, %v3302_v34 }
  0x3a   :  { %5071 = vst [vmem:[#allocation15_spill] sm:$0xff] %v3340_v30  ;;  %v1050_v52 = vmul.f32 1.25, %v570_v38  ;;  %v1073_v53 = vmul.f32 1.25, %v3296_v27  ;;  %v1074_v62 = vmul.f32 1.25, %v3299_v33  ;;  %v1041_v0 = vmul.f32 %v1033_v46, %v537_v40 }
  0x3b   :  { %v1025_v56 = vadd.f32 %v1017_v15, %v1001_v37  ;;  %v1026_v63 = vadd.f32 %v1018_v44, %v1002_v12  ;;  %v1042_v10 = vmul.f32 %v1034_v49, %v538_v1  ;;  %v1057_v3 = vmul.f32 %v1049_v50, %v593_v58 }
  0x3c   :  { %v1058_v28 = vmul.f32 %v1050_v52, %v594_v18  ;;  %v1081_v35 = vmul.f32 %v1073_v53, %v593_v58  ;;  %v1082_v6 = vmul.f32 %v1074_v62, %v594_v18  ;;  %v1089_v11 = vmul.f32 1.25, %v3315_v48 }
  0x3d   :  { %v1090_v14 = vmul.f32 1.25, %v626_v54  ;;  %v1353_v16 = vmul.f32 0.8333333, %v3264_v59  ;;  %v1354_v19 = vmul.f32 0.8333333, %v3268_v61  ;;  %v1065_v20 = vadd.f32 %v1057_v3, %v1041_v0 }
  0x3e   :  { %v1066_v22 = vadd.f32 %v1058_v28, %v1042_v10  ;;  %v1369_v24 = vmul.f32 0.8333333, %v3302_v34  ;;  %v1370_v5 = vmul.f32 0.8333333, %v570_v38  ;;  %v1097_v37 = vmul.f32 %v1089_v11, %v3331_v17  ;;  %v3365_v38 = vld [vmem:[%s4971_s2 + $0x28] sm:$0xff]  }
  0x3f   :  { %v1098_v40 = vmul.f32 %v1090_v14, %v3340_v30  ;;  %v1361_v1 = vmul.f32 %v1353_v16, %v1025_v56  ;;  %v1362_v12 = vmul.f32 %v1354_v19, %v1026_v63  ;;  %v1393_v15 = vmul.f32 0.8333333, %v3278_v2  ;;  %v3381_v56 = vld [vmem:[%s4973_s0 + $0x28] sm:$0xff]  ;;  %v3386_v63 = vld [vmem:[%s4971_s2 + $0x10] sm:$0xff]  }
  0x40   :  { %v1377_v58 = vmul.f32 %v1369_v24, %v1065_v20  ;;  %v1378_v18 = vmul.f32 %v1370_v5, %v1066_v22  ;;  %v1394_v44 = vmul.f32 0.8333333, %v3287_v9  ;;  %v3357_v59 = vadd.f32 %v1097_v37, %v1081_v35 }
  0x41   :  { %v3359_v61 = vadd.f32 %v1098_v40, %v1082_v6  ;;  %v1409_v46 = vmul.f32 0.8333333, %v3315_v48  ;;  %v1410_v34 = vmul.f32 0.8333333, %v626_v54  ;;  %v1401_v52 = vmul.f32 %v1393_v15, %v1065_v20  ;;  %v3376_v54 = vld [vmem:[%s4973_s0 + $0x20] sm:$0xff] }
  0x42   :  { %5073 = vst [vmem:[#allocation17_spill] sm:$0xff] %v3357_v59  ;;  %v1385_v49 = vadd.f32 %v1377_v58, %v1361_v1  ;;  %v1386_v50 = vadd.f32 %v1378_v18, %v1362_v12  ;;  %v1402_v53 = vmul.f32 %v1394_v44, %v1066_v22  ;;  %v1901_v62 = vsel %vm5075_vm9, %v3163_v26, 0 }
  0x43   :  { %5074 = vst [vmem:[#allocation18_spill] sm:$0xff] %v3359_v61  ;;  %v1417_v2 = vmul.f32 %v1409_v46, %v3357_v59  ;;  %v1418_v9 = vmul.f32 %v1410_v34, %v3359_v61  ;;  %v1796_v48 = vsel %vm5076_vm10, %v3174_v31, 0  ;;  %vm83_vm11 = vcmp.ge.f32.partialorder %v3376_v54, -2.2 }
  0x44   :  { %v1672_v0 = vpack.c.bf16 %v1386_v50, %v1385_v49  ;;  %2880 = vmatpush3.bf16.xpose.msra.mxu1 %v1796_v48  ;;  %vm84_vm12 = vcmp.ge.f32.partialorder %v3381_v56, -2.2  ;;  %vm91_vm13 = vcmp.lt.f32.partialorder %v3376_v54, -1.8  ;;  %vm92_vm15 = vcmp.lt.f32.partialorder %v3381_v56, -1.8 }
  0x45   :  { %v3391_v26 = vadd.f32 %v1417_v2, %v1401_v52  ;;  %v3393_v31 = vadd.f32 %v1418_v9, %v1402_v53  ;;  %vm99_vm14 = vmand %vm83_vm11, %vm91_vm13  ;;  %vm115_vm4 = vcmp.ge.f32.partialorder %v3376_v54, -1.8  ;;  %2983 = vmatprep.subr.msk.bf16.mxu1 %vm5077_vm1, %v3365_v38  ;;  %vm116_vm6 = vcmp.ge.f32.partialorder %v3381_v56, -1.8 }
  0x46   :  { %2870 = vmatmul.mubr.msk.bf16.vlgmr.msra.gmra.mxu0 %vm5078_vm2, %v1672_v0  ;;  %vm100_vm5 = vmand %vm84_vm12, %vm92_vm15  ;;  %v107_v10 = vsel %vm99_vm14, 1.0, %v4976_v8  ;;  %vm123_vm7 = vcmp.lt.f32.partialorder %v3376_v54, -1.4  ;;  %vm155_vm3 = vcmp.lt.f32.partialorder %v3376_v54, -1.0  ;;  %vm124_vm8 = vcmp.lt.f32.partialorder %v3381_v56, -1.4 }
  0x47   :  { %2890 = vmatpush3.bf16.xpose.msra.mxu0 %v1901_v62  ;;  %v108_v3 = vsel %vm100_vm5, 1.0, %v4976_v8  ;;  %vm131_vm0 = vmand %vm115_vm4, %vm123_vm7  ;;  %vm147_vm9 = vcmp.ge.f32.partialorder %v3376_v54, -1.4  ;;  %vm156_vm10 = vcmp.lt.f32.partialorder %v3381_v56, -1.0  ;;  %vm148_vm12 = vcmp.ge.f32.partialorder %v3381_v56, -1.4 }
  0x48   :  { %vm132_vm11 = vmand %vm116_vm6, %vm124_vm8  ;;  %v139_v28 = vsel %vm131_vm0, 1.0, %v4976_v8  ;;  %vm179_vm13 = vcmp.ge.f32.partialorder %v3376_v54, -1.0  ;;  %vm180_vm15 = vcmp.ge.f32.partialorder %v3381_v56, -1.0  ;;  %vm187_vm4 = vcmp.lt.f32.partialorder %v3376_v54, -0.6 }
  0x49   :  { %vm5079_vm14 = vmmov %vm5077_vm1  ;;  %v140_v35 = vsel %vm132_vm11, 1.0, %v4976_v8  ;;  %vm188_vm2 = vcmp.lt.f32.partialorder %v3381_v56, -0.6  ;;  %v515_v6 = vsub.f32 -1.0, %v3376_v54  ;;  %v3420_v14 = vadd.f32 2.2, %v3376_v54 }
  0x4a   :  { %2982 = vmatprep.subr.msk.bf16.mxu0 %vm5079_vm14, %v3386_v63  ;;  %vm163_vm1 = vmand %vm147_vm9, %vm155_vm3  ;;  %v2654_v16 = vadd.f32 2.2, %v3381_v56  ;;  %v516_v19 = vsub.f32 -1.0, %v3381_v56  ;;  %v459_v22 = vsub.f32 -1.4, %v3376_v54 }
  0x4b   :  { %vm164_vm5 = vmand %vm148_vm12, %vm156_vm10  ;;  %v171_v11 = vsel %vm163_vm1, 1.0, %v4976_v8  ;;  %v460_v24 = vsub.f32 -1.4, %v3381_v56  ;;  %v523_v5 = vmul.f32 2.5, %v515_v6  ;;  %v443_v40 = vmul.f32 2.5, %v3420_v14 }
  0x4c   :  { %v172_v20 = vsel %vm164_vm5, 1.0, %v4976_v8  ;;  %vm195_vm6 = vmand %vm179_vm13, %vm187_vm4  ;;  %v444_v1 = vmul.f32 2.5, %v2654_v16  ;;  %v3434_v12 = vadd.f32 1.8, %v3376_v54  ;;  %v467_v18 = vmul.f32 2.5, %v459_v22 }
  0x4d   :  { %vm196_vm7 = vmand %vm180_vm15, %vm188_vm2  ;;  %v3430_v37 = vsel %vm195_vm6, 1.0, %v4976_v8  ;;  %v468_v15 = vmul.f32 2.5, %v460_v24  ;;  %v3440_v44 = vadd.f32 1.8, %v3381_v56  ;;  %v451_v46 = vmul.f32 %v443_v40, %v107_v10 }
  0x4e   :  { %v3437_v58 = vsel %vm196_vm7, 1.0, %v4976_v8  ;;  %v452_v34 = vmul.f32 %v444_v1, %v108_v3  ;;  %v499_v49 = vmul.f32 2.5, %v3434_v12  ;;  %v524_v50 = vmul.f32 2.5, %v516_v19 }
  0x4f   :  { %v475_v52 = vmul.f32 %v467_v18, %v139_v28  ;;  %v476_v53 = vmul.f32 %v468_v15, %v140_v35  ;;  %v500_v2 = vmul.f32 2.5, %v3440_v44  ;;  %v531_v9 = vmul.f32 %v523_v5, %v171_v11 }
  0x50   :  { %v507_v62 = vmul.f32 %v499_v49, %v139_v28  ;;  %v532_v48 = vmul.f32 %v524_v50, %v172_v20  ;;  %v3445_v0 = vadd.f32 1.4, %v3376_v54  ;;  %v3448_v22 = vadd.f32 1.4, %v3381_v56 }
  0x51   :  { %v483_v24 = vadd.f32 %v475_v52, %v451_v46  ;;  %v484_v8 = vadd.f32 %v476_v53, %v452_v34  ;;  %v508_v10 = vmul.f32 %v500_v2, %v140_v35  ;;  %v571_v3 = vsub.f32 -0.6, %v3376_v54 }
  0x52   :  { %v539_v40 = vadd.f32 %v531_v9, %v507_v62  ;;  %v555_v1 = vmul.f32 2.5, %v3445_v0  ;;  %v556_v18 = vmul.f32 2.5, %v3448_v22  ;;  %v572_v5 = vsub.f32 -0.6, %v3381_v56 }
  0x53   :  { %v540_v28 = vadd.f32 %v532_v48, %v508_v10  ;;  %v579_v15 = vmul.f32 2.5, %v571_v3  ;;  %v995_v49 = vmul.f32 1.25, %v3420_v14  ;;  %v996_v50 = vmul.f32 1.25, %v2654_v16 }
  0x54   :  { %v563_v7 = vmul.f32 %v555_v1, %v171_v11  ;;  %v564_v57 = vmul.f32 %v556_v18, %v172_v20  ;;  %v580_v61 = vmul.f32 2.5, %v572_v5  ;;  %v1011_v46 = vmul.f32 1.25, %v515_v6 }
  0x55   :  { %v587_v35 = vmul.f32 %v579_v15, %v3430_v37  ;;  %v1003_v34 = vmul.f32 %v995_v49, %v483_v24  ;;  %v1004_v52 = vmul.f32 %v996_v50, %v484_v8  ;;  %v1012_v53 = vmul.f32 1.25, %v516_v19  ;;  %v3468_v15 = vld [vmem:[%s4973_s0 + $0x30] sm:$0xff] }
  0x56   :  { %v588_v2 = vmul.f32 %v580_v61, %v3437_v58  ;;  %v1019_v9 = vmul.f32 %v1011_v46, %v539_v40  ;;  %v1035_v62 = vmul.f32 1.25, %v3434_v12  ;;  %v1036_v48 = vmul.f32 1.25, %v3440_v44 }
  0x57   :  { %v3459_v10 = vadd.f32 %v587_v35, %v563_v7  ;;  %v1020_v59 = vmul.f32 %v1012_v53, %v540_v28  ;;  %v1051_v30 = vmul.f32 1.25, %v571_v3  ;;  %v1052_v11 = vmul.f32 1.25, %v572_v5  ;;  %v3473_v7 = vld [vmem:[%s4973_s0 + $0x38] sm:$0xff] }
  0x58   :  { %v3461_v20 = vadd.f32 %v588_v2, %v564_v57  ;;  %v1027_v6 = vadd.f32 %v1019_v9, %v1003_v34  ;;  %v1043_v1 = vmul.f32 %v1035_v62, %v539_v40  ;;  %v1044_v18 = vmul.f32 %v1036_v48, %v540_v28 }
  0x59   :  { %v1028_v24 = vadd.f32 %v1020_v59, %v1004_v52  ;;  %v1059_v8 = vmul.f32 %v1051_v30, %v3459_v10  ;;  %v1355_v61 = vmul.f32 0.8333333, %v3420_v14  ;;  %v1356_v19 = vmul.f32 0.8333333, %v2654_v16 }
  0x5a   :  { %v1060_v57 = vmul.f32 %v1052_v11, %v3461_v20  ;;  %v1371_v40 = vmul.f32 0.8333333, %v571_v3  ;;  %v1372_v28 = vmul.f32 0.8333333, %v572_v5  ;;  %vm85_vm3 = vcmp.ge.f32.partialorder %v3468_v15, -2.2 }
  0x5b   :  { %v3477_v30 = vadd.f32 %v1059_v8, %v1043_v1  ;;  %v1363_v59 = vmul.f32 %v1355_v61, %v1027_v6  ;;  %v1364_v14 = vmul.f32 %v1356_v19, %v1028_v24  ;;  %vm86_vm8 = vcmp.ge.f32.partialorder %v3473_v7, -2.2 }
  0x5c   :  { %v3480_v16 = vadd.f32 %v1060_v57, %v1044_v18  ;;  %vm93_vm0 = vcmp.lt.f32.partialorder %v3468_v15, -1.8  ;;  %vm94_vm9 = vcmp.lt.f32.partialorder %v3473_v7, -1.8  ;;  %vm117_vm10 = vcmp.ge.f32.partialorder %v3468_v15, -1.8 }
  0x5d   :  { %v1379_v49 = vmul.f32 %v1371_v40, %v3477_v30  ;;  %vm101_vm11 = vmand %vm85_vm3, %vm93_vm0  ;;  %vm118_vm12 = vcmp.ge.f32.partialorder %v3473_v7, -1.8  ;;  %vm125_vm13 = vcmp.lt.f32.partialorder %v3468_v15, -1.4  ;;  %vm126_vm15 = vcmp.lt.f32.partialorder %v3473_v7, -1.4 }
  0x5e   :  { %v1380_v3 = vmul.f32 %v1372_v28, %v3480_v16  ;;  %vm102_vm14 = vmand %vm86_vm8, %vm94_vm9  ;;  %v5080_v5 = vmov 0.0   ;;  %vm149_vm1 = vcmp.ge.f32.partialorder %v3468_v15, -1.4  ;;  %vm150_vm4 = vcmp.ge.f32.partialorder %v3473_v7, -1.4 }
  0x5f   :  { %v109_v50 = vsel %vm101_vm11, 1.0, %v5080_v5  ;;  %v1387_v46 = vadd.f32 %v1379_v49, %v1363_v59  ;;  %v110_v35 = vsel %vm102_vm14, 1.0, %v5080_v5  ;;  %vm133_vm2 = vmand %vm117_vm10, %vm125_vm13  ;;  %vm157_vm5 = vcmp.lt.f32.partialorder %v3468_v15, -1.0 }
  0x60   :  { %vm158_vm6 = vcmp.lt.f32.partialorder %v3473_v7, -1.0  ;;  %v1388_v34 = vadd.f32 %v1380_v3, %v1364_v14  ;;  %vm134_vm7 = vmand %vm118_vm12, %vm126_vm15  ;;  %v141_v52 = vsel %vm133_vm2, 1.0, %v5080_v5  ;;  %vm181_vm3 = vcmp.ge.f32.partialorder %v3468_v15, -1.0 }
  0x61   :  { %vm182_vm8 = vcmp.ge.f32.partialorder %v3473_v7, -1.0  ;;  %v142_v53 = vsel %vm134_vm7, 1.0, %v5080_v5  ;;  %vm165_vm0 = vmand %vm149_vm1, %vm157_vm5  ;;  %vm189_vm9 = vcmp.lt.f32.partialorder %v3468_v15, -0.6  ;;  %vm190_vm11 = vcmp.lt.f32.partialorder %v3473_v7, -0.6 }
  0x62   :  { %v517_v2 = vsub.f32 -1.0, %v3468_v15  ;;  %v1673_v9 = vpack.c.bf16 %v1388_v34, %v1387_v46  ;;  %vm166_vm10 = vmand %vm150_vm4, %vm158_vm6  ;;  %v173_v62 = vsel %vm165_vm0, 1.0, %v5080_v5  ;;  %v3507_v48 = vadd.f32 2.2, %v3468_v15 }
  0x63   :  { %v3510_v11 = vadd.f32 2.2, %v3473_v7  ;;  %v174_v6 = vsel %vm166_vm10, 1.0, %v5080_v5  ;;  %vm197_vm12 = vmand %vm181_vm3, %vm189_vm9  ;;  %v461_v1 = vsub.f32 -1.4, %v3468_v15  ;;  %v518_v24 = vsub.f32 -1.0, %v3473_v7 }
  0x64   :  { %v462_v18 = vsub.f32 -1.4, %v3473_v7  ;;  %vm5081_vm13 = vcmask 130048   ;;  %vm198_vm15 = vmand %vm182_vm8, %vm190_vm11  ;;  %v3520_v8 = vsel %vm197_vm12, 1.0, %v5080_v5  ;;  %v445_v61 = vmul.f32 2.5, %v3507_v48 }
  0x65   :  { %2873 = vmatprep.mubr.msk.bf16.mxu0 %vm5081_vm13, %v1673_v9  ;;  %v446_v19 = vmul.f32 2.5, %v3510_v11  ;;  %v3525_v57 = vadd.f32 1.8, %v3468_v15  ;;  %v3528_v40 = vsel %vm198_vm15, 1.0, %v5080_v5  ;;  %v469_v28 = vmul.f32 2.5, %v461_v1  ;;  %vm5084_vm14 = vmmov %vm5081_vm13 }
  0x66   :  { %v470_v59 = vmul.f32 2.5, %v462_v18  ;;  %v3531_v14 = vadd.f32 1.8, %v3473_v7  ;;  %v453_v49 = vmul.f32 %v445_v61, %v109_v50  ;;  %v525_v34 = vmul.f32 2.5, %v517_v2  ;;  %vm5085_vm1 = vmmov %vm5081_vm13 }
  0x67   :  { %v454_v3 = vmul.f32 %v446_v19, %v110_v35  ;;  %v501_v46 = vmul.f32 2.5, %v3525_v57  ;;  %v477_v9 = vmul.f32 %v469_v28, %v141_v52  ;;  %v526_v27 = vmul.f32 2.5, %v518_v24  ;;  %vm5086_vm4 = vmmov %vm5085_vm1 }
  0x68   :  { %v478_v36 = vmul.f32 %v470_v59, %v142_v53  ;;  %v502_v33 = vmul.f32 2.5, %v3531_v14  ;;  %v533_v47 = vmul.f32 %v525_v34, %v173_v62  ;;  %v3536_v41 = vadd.f32 1.4, %v3468_v15  ;;  %vm5087_vm0 = vmmov %vm5085_vm1 }
  0x69   :  { %v509_v17 = vmul.f32 %v501_v46, %v141_v52  ;;  %v3539_v1 = vadd.f32 1.4, %v3473_v7  ;;  %v485_v18 = vadd.f32 %v477_v9, %v453_v49  ;;  %v534_v35 = vmul.f32 %v526_v27, %v174_v6  ;;  %vm5088_vm9 = vmmov %vm5087_vm0 }
  0x6a   :  { %5082 = vst [vmem:[#allocation19_spill] sm:$0xff] %v3536_v41  ;;  %v486_v60 = vadd.f32 %v478_v36, %v454_v3  ;;  %v510_v50 = vmul.f32 %v502_v33, %v142_v53  ;;  %v557_v19 = vmul.f32 2.5, %v3536_v41  ;;  %v573_v59 = vsub.f32 -0.6, %v3468_v15  ;;  %vm5089_vm11 = vmmov %vm5087_vm0 }
  0x6b   :  { %5083 = vst [vmem:[#allocation20_spill] sm:$0xff] %v3539_v1  ;;  %v541_v61 = vadd.f32 %v533_v47, %v509_v17  ;;  %v558_v28 = vmul.f32 2.5, %v3539_v1  ;;  %v574_v52 = vsub.f32 -0.6, %v3473_v7  ;;  %v997_v46 = vmul.f32 1.25, %v3507_v48 }
  0x6c   :  { %v542_v13 = vadd.f32 %v534_v35, %v510_v50  ;;  %v998_v34 = vmul.f32 1.25, %v3510_v11  ;;  %v565_v43 = vmul.f32 %v557_v19, %v173_v62  ;;  %v581_v49 = vmul.f32 2.5, %v573_v59 }
  0x6d   :  { %v566_v42 = vmul.f32 %v558_v28, %v174_v6  ;;  %v1013_v36 = vmul.f32 1.25, %v517_v2  ;;  %v582_v33 = vmul.f32 2.5, %v574_v52  ;;  %v1005_v27 = vmul.f32 %v997_v46, %v485_v18 }
  0x6e   :  { %v1006_v47 = vmul.f32 %v998_v34, %v486_v60  ;;  %v1014_v17 = vmul.f32 1.25, %v518_v24  ;;  %v589_v53 = vmul.f32 %v581_v49, %v3520_v8  ;;  %v1037_v9 = vmul.f32 1.25, %v3525_v57  ;;  %v3005_v60 = vld [vmem:[%s4971_s2 + $0x38] sm:$0xff]  }
  0x6f   :  { %v1021_v3 = vmul.f32 %v1013_v36, %v541_v61  ;;  %v1038_v50 = vmul.f32 1.25, %v3531_v14  ;;  %v590_v35 = vmul.f32 %v582_v33, %v3528_v40  ;;  %v1053_v51 = vmul.f32 1.25, %v573_v59 }
  0x70   :  { %v1022_v55 = vmul.f32 %v1014_v17, %v542_v13  ;;  %v1054_v1 = vmul.f32 1.25, %v574_v52  ;;  %v3551_v62 = vadd.f32 %v589_v53, %v565_v43  ;;  %v1045_v2 = vmul.f32 %v1037_v9, %v541_v61 }
  0x71   :  { %v1029_v6 = vadd.f32 %v1021_v3, %v1005_v27  ;;  %v1046_v19 = vmul.f32 %v1038_v50, %v542_v13  ;;  %v3556_v24 = vadd.f32 %v590_v35, %v566_v42  ;;  %v1357_v28 = vmul.f32 0.8333333, %v3507_v48  ;;  %v3567_v42 = vld [vmem:[%s4973_s0] sm:$0xff] }
  0x72   :  { %v1030_v18 = vadd.f32 %v1022_v55, %v1006_v47  ;;  %v1358_v46 = vmul.f32 0.8333333, %v3510_v11  ;;  %v1061_v34 = vmul.f32 %v1053_v51, %v3551_v62  ;;  %v1373_v49 = vmul.f32 0.8333333, %v573_v59  ;;  %v3575_v51 = vld [vmem:[%s4973_s0 + $0x8] sm:$0xff] }
  0x73   :  { %v1374_v36 = vmul.f32 0.8333333, %v574_v52  ;;  %v1898_v43 = vsel %vm5084_vm14, %v3386_v63, 0  ;;  %v1062_v13 = vmul.f32 %v1054_v1, %v3556_v24  ;;  %v1365_v61 = vmul.f32 %v1357_v28, %v1029_v6 }
  0x74   :  { %v1366_v33 = vmul.f32 %v1358_v46, %v1030_v18  ;;  %2892 = vmatpush3.bf16.xpose.msra.mxu0 %v1898_v43  ;;  %v23_v55 = vsub.f32 0.0, %v3567_v42  ;;  %v3570_v48 = vadd.f32 %v1061_v34, %v1045_v2  ;;  %v24_v63 = vsub.f32 0.0, %v3575_v51  ;;  %v3604_v18 = vld [vmem:[%s4971_s2 + $0x20] sm:$0xff]  }
  0x75   :  { %v25_v11 = vsub.f32 0.0, %v3218_v32  ;;  %v26_v1 = vsub.f32 0.0, %v3223_v39  ;;  %2985 = vmatprep.subr.msk.bf16.mxu0 %vm5085_vm1, %v3005_v60  ;;  %v3581_v59 = vadd.f32 %v1062_v13, %v1046_v19  ;;  %v3585_v27 = vsel %vm5086_vm4, %v3365_v38, 0  ;;  %vm5090_vm4 = vmmov %vm5087_vm0 }
  0x76   :  { %v31_v52 = vmul.f32 1.442695, %v23_v55  ;;  %vm207_vm2 = vcmp.ge.f32.partialorder %v3567_v42, -0.6  ;;  %v1381_v47 = vmul.f32 %v1373_v49, %v3570_v48  ;;  %v33_v17 = vmul.f32 1.442695, %v24_v63 }
  0x77   :  { %v35_v53 = vmul.f32 1.442695, %v25_v11  ;;  %v37_v3 = vmul.f32 1.442695, %v26_v1  ;;  %v1382_v32 = vmul.f32 %v1374_v36, %v3581_v59  ;;  %vm208_vm5 = vcmp.ge.f32.partialorder %v3575_v51, -0.6 }
  0x78   :  { %3016 = vpow2.f32 %v31_v52  ;;  %vm215_vm6 = vcmp.lt.f32.partialorder %v3567_v42, -0.2  ;;  %v1389_v39 = vadd.f32 %v1381_v47, %v1365_v61  ;;  %vm216_vm7 = vcmp.lt.f32.partialorder %v3575_v51, -0.2 }
  0x79   :  { %3018 = vpow2.f32 %v33_v17  ;;  %vm223_vm3 = vmand %vm207_vm2, %vm215_vm6  ;;  %v623_v38 = vsub.f32 -0.2, %v3567_v42  ;;  %v1390_v9 = vadd.f32 %v1382_v32, %v1366_v33  ;;  %v624_v35 = vsub.f32 -0.2, %v3575_v51 }
  0x7a   :  { %3020 = vpow2.f32 %v35_v53  ;;  %vm224_vm8 = vmand %vm208_vm5, %vm216_vm7  ;;  %v3595_v50 = vsel %vm223_vm3, 1.0, %v5080_v5  ;;  %v3610_v61 = vsel %vm5087_vm0, %v3005_v60, 0  ;;  %v27_v55 = vsub.f32 0.0, %v3376_v54 }
  0x7b   :  { %3022 = vpow2.f32 %v37_v3  ;;  %v3599_v6 = vsel %vm224_vm8, 1.0, %v5080_v5  ;;  %v631_v2 = vmul.f32 2.5, %v623_v38  ;;  %v1087_v19 = vmul.f32 1.25, %v623_v38  ;;  %vm5092_vm2 = vmmov %vm5087_vm0 }
  0x7c   :  { %v1674_v28 = vpack.c.bf16 %v1390_v9, %v1389_v39  ;;  %v632_v46 = vmul.f32 2.5, %v624_v35  ;;  %v1088_v34 = vmul.f32 1.25, %v624_v35  ;;  %v1407_v49 = vmul.f32 0.8333333, %v623_v38  ;;  %vm5093_vm8 = vmmov %vm5087_vm0 }
  0x7d   :  { %v639_v36 = vmul.f32 %v631_v2, %v3595_v50  ;;  %v1408_v43 = vmul.f32 0.8333333, %v624_v35  ;;  %v28_v63 = vsub.f32 0.0, %v3381_v56  ;;  %v29_v11 = vsub.f32 0.0, %v3468_v15 }
  0x7e   :  { %2874 = vmatmul.mubr.msk.bf16.gmra.mxu0 %vm5088_vm9, %v1674_v28  ;;  %v640_v33 = vmul.f32 %v632_v46, %v3599_v6  ;;  %v30_v52 = vsub.f32 0.0, %v3473_v7  ;;  %v3623_v47 = vsel %vm5089_vm11, %v3604_v18, 0  ;;  %vm211_vm10 = vcmp.ge.f32.partialorder %v3376_v54, -0.6  ;;  %vm5095_vm11 = vmmov %vm5092_vm2 }
  0x7f   :  { %v3618_v1 = vadd.f32 %v639_v36, %v3202_v4  ;;  %v39_v17 = vmul.f32 1.442695, %v27_v55  ;;  %v41_v53 = vmul.f32 1.442695, %v28_v63  ;;  %v43_v3 = vmul.f32 1.442695, %v29_v11 }
  0x80   :  { %v3627_v60 = vadd.f32 %v640_v33, %v3208_v23  ;;  %v45_v39 = vmul.f32 1.442695, %v30_v52  ;;  %vm212_vm12 = vcmp.ge.f32.partialorder %v3381_v56, -0.6  ;;  %vm219_vm13 = vcmp.lt.f32.partialorder %v3376_v54, -0.2 }
  0x81   :  { %v1095_v32 = vmul.f32 %v1087_v19, %v3618_v1  ;;  %3024 = vpow2.f32 %v39_v17  ;;  %vm220_vm15 = vcmp.lt.f32.partialorder %v3381_v56, -0.2  ;;  %vm227_vm14 = vmand %vm211_vm10, %vm219_vm13  ;;  %v3635_v38 = vadd.f32 1.0, %v3376_v54 }
  0x82   :  { %v1096_v4 = vmul.f32 %v1088_v34, %v3627_v60  ;;  %3026 = vpow2.f32 %v41_v53  ;;  %vm228_vm1 = vmand %vm212_vm12, %vm220_vm15  ;;  %v3641_v9 = vsel %vm227_vm14, 1.0, %v5080_v5  ;;  %v3644_v35 = vadd.f32 1.0, %v3381_v56 }
  0x83   :  { %v3638_v23 = vadd.f32 %v1095_v32, %v3210_v29  ;;  %3028 = vpow2.f32 %v43_v3  ;;  %v3650_v19 = vsel %vm228_vm1, 1.0, %v5080_v5  ;;  %v611_v28 = vmul.f32 2.5, %v3635_v38  ;;  %vm5098_vm10 = vmmov %vm5092_vm2 }
  0x84   :  { %v3647_v2 = vadd.f32 %v1096_v4, %v3237_v25  ;;  %3030 = vpow2.f32 %v45_v39  ;;  %v612_v34 = vmul.f32 2.5, %v3644_v35  ;;  %v627_v36 = vsub.f32 -0.2, %v3376_v54  ;;  %vm5099_vm12 = vmmov %vm5092_vm2 }
  0x85   :  { %v3017_v46 = vpop.eup %3016  ;;  %v1415_v29 = vmul.f32 %v1407_v49, %v3638_v23  ;;  %v619_v25 = vmul.f32 %v611_v28, %v3430_v37  ;;  %v628_v11 = vsub.f32 -0.2, %v3381_v56  ;;  %v1075_v37 = vmul.f32 1.25, %v3445_v0  ;;  %vm5100_vm15 = vmmov %vm5092_vm2 }
  0x86   :  { %v3019_v33 = vpop.eup %3018  ;;  %v47_v55 = vadd.f32 1.0, %v3017_v46  ;;  %v1416_v63 = vmul.f32 %v1408_v43, %v3647_v2  ;;  %v620_v3 = vmul.f32 %v612_v34, %v3437_v58  ;;  %v635_v49 = vmul.f32 2.5, %v627_v36 }
  0x87   :  { %v3021_v52 = vpop.eup %3020  ;;  %v48_v17 = vadd.f32 1.0, %v3019_v33  ;;  %v1423_v53 = vadd.f32 %v1415_v29, %v3227_v45  ;;  %v636_v13 = vmul.f32 2.5, %v628_v11  ;;  %v1076_v45 = vmul.f32 1.25, %v3448_v22 }
  0x88   :  { %v3023_v32 = vpop.eup %3022  ;;  %3032 = vrcp.f32 %v47_v55  ;;  %v49_v39 = vadd.f32 1.0, %v3021_v52  ;;  %v1424_v4 = vadd.f32 %v1416_v63, %v3230_v21  ;;  %v643_v43 = vmul.f32 %v635_v49, %v3641_v9  ;;  %v3672_v21 = vld [vmem:[%s4971_s2 + $0x30] sm:$0xff]  }
  0x89   :  { %3034 = vrcp.f32 %v48_v17  ;;  %v50_v46 = vadd.f32 1.0, %v3023_v32  ;;  %v644_v33 = vmul.f32 %v636_v13, %v3650_v19  ;;  %v1083_v29 = vmul.f32 %v1075_v37, %v3459_v10 }
  0x8a   :  { %3036 = vrcp.f32 %v49_v39  ;;  %v1866_v28 = vpack.c.bf16 %v1424_v4, %v1423_v53  ;;  %v3666_v58 = vadd.f32 %v643_v43, %v619_v25  ;;  %v1091_v34 = vmul.f32 1.25, %v627_v36 }
  0x8b   :  { %3038 = vrcp.f32 %v50_v46  ;;  %v3675_v55 = vadd.f32 %v644_v33, %v620_v3  ;;  %v1084_v63 = vmul.f32 %v1076_v45, %v3461_v20  ;;  %v1092_v13 = vmul.f32 1.25, %v628_v11 }
  0x8c   :  { %2893 = vmatprep.mubr.msk.bf16.mxu0 %vm5090_vm4, %v1866_v28  ;;  %v1395_v52 = vmul.f32 0.8333333, %v3434_v12  ;;  %v5091_v25 = vpack.c.bf16 %v3393_v31, %v3391_v26  ;;  %v1099_v10 = vmul.f32 %v1091_v34, %v3666_v58  ;;  %v1396_v17 = vmul.f32 0.8333333, %v3440_v44 }
  0x8d   :  { %v1411_v53 = vmul.f32 0.8333333, %v627_v36  ;;  %v1412_v49 = vmul.f32 0.8333333, %v628_v11  ;;  %v1100_v3 = vmul.f32 %v1092_v13, %v3675_v55  ;;  %vm213_vm5 = vcmp.ge.f32.partialorder %v3468_v15, -0.6 }
  0x8e   :  { %2894 = vmatmul.mubr.msk.bf16.vlgmr.msra.gmra.mxu0 %vm5092_vm2, %v5091_v25  ;;  %v1403_v20 = vmul.f32 %v1395_v52, %v3477_v30  ;;  %vm214_vm6 = vcmp.ge.f32.partialorder %v3473_v7, -0.6  ;;  %v3025_v12 = vpop.eup %3024  ;;  %v3690_v26 = vadd.f32 %v1099_v10, %v1083_v29  ;;  %v1404_v31 = vmul.f32 %v1396_v17, %v3480_v16 }
  0x8f   :  { %2914 = vmatpush3.bf16.xpose.msra.mxu0 %v3610_v61  ;;  %vm221_vm7 = vcmp.lt.f32.partialorder %v3468_v15, -0.2  ;;  %vm222_vm3 = vcmp.lt.f32.partialorder %v3473_v7, -0.2  ;;  %v3027_v44 = vpop.eup %3026  ;;  %v51_v61 = vadd.f32 1.0, %v3025_v12  ;;  %v3697_v36 = vadd.f32 %v1100_v3, %v1084_v63 }
  0x90   :  { %2986 = vmatprep.subr.msk.bf16.mxu0 %vm5093_vm8, %v3672_v21  ;;  %vm229_vm0 = vmand %vm213_vm5, %vm221_vm7  ;;  %v3700_v30 = vadd.f32 1.0, %v3468_v15  ;;  %v3703_v11 = vadd.f32 1.0, %v3473_v7  ;;  %v3029_v32 = vpop.eup %3028  ;;  %v52_v16 = vadd.f32 1.0, %v3027_v44  ;;  %v1419_v39 = vmul.f32 %v1411_v53, %v3690_v26 }
  0x91   :  { %vm230_vm9 = vmand %vm214_vm6, %vm222_vm3  ;;  %v3709_v4 = vsel %vm229_vm0, 1.0, %v5080_v5  ;;  %v629_v46 = vsub.f32 -0.2, %v3468_v15  ;;  %v3031_v43 = vpop.eup %3030  ;;  %3040 = vrcp.f32 %v51_v61  ;;  %v53_v37 = vadd.f32 1.0, %v3029_v32 }
  0x92   :  { %v1420_v28 = vmul.f32 %v1412_v49, %v3697_v36  ;;  %v3714_v33 = vsel %vm230_vm9, 1.0, %v5080_v5  ;;  %3042 = vrcp.f32 %v52_v16  ;;  %v54_v45 = vadd.f32 1.0, %v3031_v43  ;;  %v5094_v16 = vld [vmem:[#allocation20_spill] sm:$0xff]  ;;  %vm5104_vm6 = vmmov %vm5092_vm2 }
  0x93   :  { %v1427_v29 = vadd.f32 %v1419_v39, %v1403_v20  ;;  %v613_v34 = vmul.f32 2.5, %v3700_v30  ;;  %3044 = vrcp.f32 %v53_v37  ;;  %v614_v13 = vmul.f32 2.5, %v3703_v11  ;;  %v3730_v37 = vld [vmem:[%s4973_s0 + $0x10] sm:$0xff]  ;;  %vm5107_vm3 = vmmov %vm5092_vm2 }
  0x94   :  { %v1428_v63 = vadd.f32 %v1420_v28, %v1404_v31  ;;  %v630_v52 = vsub.f32 -0.2, %v3473_v7  ;;  %3046 = vrcp.f32 %v54_v45  ;;  %v637_v17 = vmul.f32 2.5, %v629_v46  ;;  %vm5108_vm8 = vmmov %vm5092_vm2 }
  0x95   :  { %v3033_v25 = vpop.eup %3032  ;;  %v621_v10 = vmul.f32 %v613_v34, %v3520_v8  ;;  %v1077_v53 = vmul.f32 1.25, %v3536_v41  ;;  %v622_v20 = vmul.f32 %v614_v13, %v3528_v40  ;;  %v1078_v39 = vmul.f32 1.25, %v5094_v16  ;;  %vm5113_vm0 = vmmov %vm5092_vm2  ;;  %v5121_v16 = vld [vmem:[#allocation15_spill] sm:$0xff] }
  0x96   :  { %v3035_v49 = vpop.eup %3034  ;;  %v63_v3 = vmul.f32 %v3567_v42, %v3033_v25  ;;  %v1868_v12 = vpack.c.bf16 %v1428_v63, %v1427_v29  ;;  %v638_v44 = vmul.f32 2.5, %v630_v52  ;;  %v645_v32 = vmul.f32 %v637_v17, %v3709_v4  ;;  %v3738_v63 = vld [vmem:[%s4973_s0 + $0x18] sm:$0xff]  ;;  %vm5114_vm9 = vmmov %vm5113_vm0 }
  0x97   :  { %v3037_v61 = vpop.eup %3036  ;;  %v64_v31 = vmul.f32 %v3575_v51, %v3035_v49  ;;  %v1085_v43 = vmul.f32 %v1077_v53, %v3551_v62  ;;  %v1093_v45 = vmul.f32 1.25, %v629_v46  ;;  %v1094_v29 = vmul.f32 1.25, %v630_v52  ;;  %v3747_v17 = vld [vmem:[%s4971_s2 + $0x58] sm:$0xff]  }
  0x98   :  { %v3039_v8 = vpop.eup %3038  ;;  %v65_v28 = vmul.f32 %v3730_v37, %v3037_v61  ;;  %2897 = vmatprep.mubr.msk.bf16.mxu0 %vm5095_vm11, %v1868_v12  ;;  %v646_v40 = vmul.f32 %v638_v44, %v3714_v33  ;;  %v3741_v13 = vadd.f32 %v645_v32, %v621_v10  ;;  %v1086_v25 = vmul.f32 %v1078_v39, %v3556_v24 }
  0x99   :  { %v71_v34 = vpack.c.bf16 %v64_v31, %v63_v3  ;;  %v66_v62 = vmul.f32 %v3738_v63, %v3039_v8  ;;  %v1397_v49 = vmul.f32 0.8333333, %v3525_v57  ;;  %v1398_v3 = vmul.f32 0.8333333, %v3531_v14 }
  0x9a   :  { %5096 = vst [vmem:[#allocation21_spill] sm:$0xff] %v3741_v13  ;;  %v3749_v53 = vadd.f32 %v646_v40, %v622_v20  ;;  %v1413_v12 = vmul.f32 0.8333333, %v629_v46  ;;  %v1101_v10 = vmul.f32 %v1093_v45, %v3741_v13  ;;  %v1414_v61 = vmul.f32 0.8333333, %v630_v52 }
  0x9b   :  { %2881 = vmatprep.mubr.msk.bf16.mxu1 %vm5098_vm10, %v71_v34  ;;  %v72_v44 = vpack.c.bf16 %v66_v62, %v65_v28  ;;  %v2118_v24 = vsel %vm5099_vm12, %v3672_v21, 0  ;;  %v1405_v32 = vmul.f32 %v1397_v49, %v3570_v48  ;;  %v1406_v20 = vmul.f32 %v1398_v3, %v3581_v59 }
  0x9c   :  { %5097 = vst [vmem:[#allocation22_spill] sm:$0xff] %v3749_v53  ;;  %v1102_v31 = vmul.f32 %v1094_v29, %v3749_v53  ;;  %2916 = vmatpush3.bf16.xpose.msra.mxu0 %v2118_v24  ;;  %vm239_vm13 = vcmp.ge.f32.partialorder %v3567_v42, -0.2  ;;  %v3762_v57 = vadd.f32 %v1101_v10, %v1085_v43  ;;  %vm240_vm14 = vcmp.ge.f32.partialorder %v3575_v51, -0.2  ;;  %v5105_v43 = vld [vmem:[#allocation4_spill] sm:$0xff] }
  0x9d   :  { %2882 = vmatmul.mubr.msk.bf16.vlgmr.msra.gmra.mxu1 %vm5100_vm15, %v72_v44  ;;  %vm247_vm1 = vcmp.lt.f32.partialorder %v3567_v42, 0.2  ;;  %vm248_vm4 = vcmp.lt.f32.partialorder %v3575_v51, 0.2  ;;  %2989 = vmatprep.subr.msk.bf16.mxu0 %vm5092_vm2, %v3747_v17  ;;  %v3773_v48 = vadd.f32 0.6, %v3567_v42 }
  0x9e   :  { %5101 = vst [vmem:[#allocation23_spill] sm:$0xff] %v3762_v57  ;;  %2902 = vmatpush3.bf16.xpose.msra.mxu1 %v3585_v27  ;;  %v3770_v14 = vadd.f32 %v1102_v31, %v1086_v25  ;;  %vm255_vm5 = vmand %vm239_vm13, %vm247_vm1  ;;  %v3776_v59 = vadd.f32 0.6, %v3575_v51  ;;  %v679_v21 = vsub.f32 0.2, %v3567_v42  ;;  %v3041_v46 = vpop.eup %3040  ;;  %v1421_v52 = vmul.f32 %v1413_v12, %v3762_v57  ;;  %v5120_v57 = vld [vmem:[#allocation16_spill] sm:$0xff] }
  0x9f   :  { %5103 = vst [vmem:[#allocation25_spill] sm:$0xff] %v3773_v48  ;;  %2984 = vmatprep.subr.msk.bf16.mxu1 %vm5104_vm6, %v3604_v18  ;;  %vm256_vm7 = vmand %vm240_vm14, %vm248_vm4  ;;  %v3783_v27 = vsel %vm255_vm5, 1.0, %v5080_v5  ;;  %v680_v39 = vsub.f32 0.2, %v3575_v51  ;;  %v1111_v8 = vmul.f32 1.25, %v5105_v43  ;;  %v3043_v28 = vpop.eup %3042  ;;  %v67_v40 = vmul.f32 %v3041_v46, %v3376_v54 }
  0xa0   :  { %5102 = vst [vmem:[#allocation24_spill] sm:$0xff] %v3770_v14  ;;  %v1422_v45 = vmul.f32 %v1414_v61, %v3770_v14  ;;  %v3790_v29 = vsel %vm256_vm7, 1.0, %v5080_v5  ;;  %v663_v18 = vmul.f32 2.5, %v3773_v48  ;;  %v3045_v34 = vpop.eup %3044  ;;  %v68_v62 = vmul.f32 %v3043_v28, %v3381_v56  ;;  %v3803_v56 = vld [vmem:[%s4971_s2 + $0x48] sm:$0xff]   ;;  %vm5124_vm5 = vmmov %vm5113_vm0 }
  0xa1   :  { %v1429_v25 = vadd.f32 %v1421_v52, %v1405_v32  ;;  %v664_v49 = vmul.f32 2.5, %v3776_v59  ;;  %v687_v3 = vmul.f32 2.5, %v679_v21  ;;  %v3047_v12 = vpop.eup %3046  ;;  %v69_v44 = vmul.f32 %v3045_v34, %v3468_v15  ;;  %v5106_v15 = vld [vmem:[#allocation5_spill] sm:$0xff]  ;;  %v5109_v34 = vld [vmem:[#allocation2_spill] sm:$0xff] }
  0xa2   :  { %v1430_v10 = vadd.f32 %v1422_v45, %v1406_v20  ;;  %v671_v54 = vmul.f32 %v663_v18, %v3595_v50  ;;  %v688_v24 = vmul.f32 2.5, %v680_v39  ;;  %v73_v61 = vpack.c.bf16 %v68_v62, %v67_v40 }
  0xa3   :  { %v70_v31 = vmul.f32 %v3047_v12, %v3473_v7  ;;  %v672_v46 = vmul.f32 %v664_v49, %v3599_v6  ;;  %v695_v14 = vmul.f32 %v687_v3, %v3783_v27  ;;  %v1112_v20 = vmul.f32 1.25, %v5106_v15 }
  0xa4   :  { %v1869_v32 = vpack.c.bf16 %v1430_v10, %v1429_v25  ;;  %v696_v52 = vmul.f32 %v688_v24, %v3790_v29  ;;  %v1119_v50 = vmul.f32 %v1111_v8, %v3618_v1  ;;  %2885 = vmatprep.mubr.msk.bf16.mxu1 %vm5107_vm3, %v73_v61  ;;  %v1127_v6 = vmul.f32 1.25, %v679_v21  ;;  %v5110_v25 = vld [vmem:[#allocation3_spill] sm:$0xff]  ;;  %v5111_v1 = vld [vmem:[#allocation6_spill] sm:$0xff] }
  0xa5   :  { %v74_v28 = vpack.c.bf16 %v70_v31, %v69_v44  ;;  %v3809_v7 = vadd.f32 %v695_v14, %v671_v54  ;;  %v1128_v40 = vmul.f32 1.25, %v680_v39  ;;  %v1120_v18 = vmul.f32 %v1112_v20, %v3627_v60  ;;  %v5112_v8 = vld [vmem:[#allocation14_spill] sm:$0xff]  ;;  %v5115_v31 = vld [vmem:[#allocation9_spill] sm:$0xff] }
  0xa6   :  { %2904 = vmatpush3.bf16.xpose.msra.mxu1 %v3623_v47  ;;  %2898 = vmatmul.mubr.msk.bf16.gmra.mxu0 %vm5108_vm8, %v1869_v32  ;;  %v3813_v45 = vadd.f32 %v696_v52, %v672_v46  ;;  %v1431_v62 = vmul.f32 0.8333333, %v5109_v34  ;;  %v1432_v49 = vmul.f32 0.8333333, %v5110_v25  ;;  %v674_v3 = vmul.f32 %v5112_v8, %v5111_v1  ;;  %v5116_v52 = vld [vmem:[#allocation10_spill] sm:$0xff]  ;;  %v5117_v34 = vld [vmem:[#allocation13_spill] sm:$0xff]  ;;  %vm5125_vm8 = vmmov %vm5113_vm0 }
  0xa7   :  { %2886 = vmatmul.mubr.msk.bf16.gmra.mxu1 %vm5113_vm0, %v74_v28  ;;  %v1135_v14 = vmul.f32 %v1127_v6, %v3809_v7  ;;  %v1447_v12 = vmul.f32 0.8333333, %v679_v21  ;;  %2987 = vmatprep.subr.msk.bf16.mxu1 %vm5114_vm9, %v3803_v56  ;;  %vm241_vm11 = vcmp.ge.f32.partialorder %v3730_v37, -0.2  ;;  %v1448_v44 = vmul.f32 0.8333333, %v680_v39  ;;  %vm5126_vm9 = vmmov %vm5124_vm5 }
  0xa8   :  { %v1136_v47 = vmul.f32 %v1128_v40, %v3813_v45  ;;  %v1439_v60 = vmul.f32 %v1431_v62, %v3638_v23  ;;  %vm242_vm10 = vcmp.ge.f32.partialorder %v3738_v63, -0.2  ;;  %vm249_vm12 = vcmp.lt.f32.partialorder %v3730_v37, 0.2  ;;  %v5118_v8 = vld [vmem:[#allocation7_spill] sm:$0xff] }
  0xa9   :  { %v3828_v10 = vadd.f32 %v1135_v14, %v1119_v50  ;;  %vm250_vm13 = vcmp.lt.f32.partialorder %v3738_v63, 0.2  ;;  %v681_v21 = vsub.f32 0.2, %v3730_v37  ;;  %v1440_v24 = vmul.f32 %v1432_v49, %v3647_v2  ;;  %vm257_vm15 = vmand %vm241_vm11, %vm249_vm12 }
  0xaa   :  { %v3833_v54 = vadd.f32 %v1136_v47, %v1120_v18  ;;  %v682_v61 = vsub.f32 0.2, %v3738_v63  ;;  %v1113_v23 = vmul.f32 1.25, %v5115_v31  ;;  %vm258_vm14 = vmand %vm242_vm10, %vm250_vm13  ;;  %v3840_v46 = vsel %vm257_vm15, 1.0, %v5080_v5 }
  0xab   :  { %v1455_v39 = vmul.f32 %v1447_v12, %v3828_v10  ;;  %v689_v32 = vmul.f32 2.5, %v681_v21  ;;  %v1114_v20 = vmul.f32 1.25, %v5116_v52  ;;  %v3845_v28 = vsel %vm258_vm14, 1.0, %v5080_v5  ;;  %v5119_v12 = vld [vmem:[#allocation8_spill] sm:$0xff]  ;;  %vm5129_vm14 = vmmov %vm5124_vm5 }
  0xac   :  { %v1456_v50 = vmul.f32 %v1448_v44, %v3833_v54  ;;  %v690_v2 = vmul.f32 2.5, %v682_v61  ;;  %v1129_v6 = vmul.f32 1.25, %v681_v21  ;;  %v1121_v62 = vmul.f32 %v1113_v23, %v5117_v34  ;;  %v5123_v34 = vld [vmem:[#allocation18_spill] sm:$0xff] }
  0xad   :  { %v1463_v40 = vadd.f32 %v1455_v39, %v1439_v60  ;;  %v697_v18 = vmul.f32 %v689_v32, %v3840_v46  ;;  %v1130_v25 = vmul.f32 1.25, %v682_v61  ;;  %v1433_v14 = vmul.f32 0.8333333, %v5118_v8  ;;  %v5122_v32 = vld [vmem:[#allocation17_spill] sm:$0xff] }
  0xae   :  { %v1464_v49 = vadd.f32 %v1456_v50, %v1440_v24  ;;  %v698_v1 = vmul.f32 %v690_v2, %v3845_v28  ;;  %v1434_v47 = vmul.f32 0.8333333, %v5119_v12  ;;  %v1122_v41 = vmul.f32 %v1114_v20, %v5121_v16 }
  0xaf   :  { %v3853_v44 = vadd.f32 %v697_v18, %v5120_v57  ;;  %v1449_v53 = vmul.f32 0.8333333, %v681_v21  ;;  %v1450_v13 = vmul.f32 0.8333333, %v682_v61  ;;  %v1441_v23 = vmul.f32 %v1433_v14, %v5122_v32 }
  0xb0   :  { %v1976_v60 = vpack.c.bf16 %v1464_v49, %v1463_v40  ;;  %v3856_v39 = vadd.f32 %v698_v1, %v674_v3  ;;  %v1442_v24 = vmul.f32 %v1434_v47, %v5123_v34  ;;  %vm271_vm1 = vcmp.ge.f32.partialorder %v3567_v42, 0.2 }
  0xb1   :  { %v1137_v50 = vmul.f32 %v1129_v6, %v3853_v44  ;;  %vm272_vm4 = vcmp.ge.f32.partialorder %v3575_v51, 0.2  ;;  %vm279_vm2 = vcmp.lt.f32.partialorder %v3567_v42, 0.6  ;;  %vm280_vm6 = vcmp.lt.f32.partialorder %v3575_v51, 0.6 }
  0xb2   :  { %2905 = vmatprep.mubr.msk.bf16.mxu1 %vm5124_vm5, %v1976_v60  ;;  %v1138_v16 = vmul.f32 %v1130_v25, %v3856_v39  ;;  %vm287_vm7 = vmand %vm271_vm1, %vm279_vm2  ;;  %v3868_v57 = vadd.f32 0.2, %v3567_v42  ;;  %v3871_v3 = vadd.f32 0.2, %v3575_v51  ;;  %v735_v20 = vsub.f32 0.6, %v3567_v42 }
  0xb3   :  { %v3873_v21 = vadd.f32 %v1137_v50, %v1121_v62  ;;  %vm288_vm3 = vmand %vm272_vm4, %vm280_vm6  ;;  %v3876_v61 = vsel %vm287_vm7, 1.0, %v5080_v5  ;;  %v736_v2 = vsub.f32 0.6, %v3575_v51  ;;  %v1151_v8 = vmul.f32 1.25, %v3773_v48 }
  0xb4   :  { %v3880_v6 = vadd.f32 %v1138_v16, %v1122_v41  ;;  %v3883_v40 = vsel %vm288_vm3, 1.0, %v5080_v5  ;;  %v719_v18 = vmul.f32 2.5, %v3868_v57  ;;  %v720_v25 = vmul.f32 2.5, %v3871_v3  ;;  %vm5133_vm1 = vmmov %vm5124_vm5 }
  0xb5   :  { %v1457_v62 = vmul.f32 %v1449_v53, %v3873_v21  ;;  %v743_v49 = vmul.f32 2.5, %v735_v20  ;;  %v744_v1 = vmul.f32 2.5, %v736_v2  ;;  %v1152_v51 = vmul.f32 1.25, %v3776_v59 }
  0xb6   :  { %v1458_v14 = vmul.f32 %v1450_v13, %v3880_v6  ;;  %v727_v42 = vmul.f32 %v719_v18, %v3783_v27  ;;  %v728_v41 = vmul.f32 %v720_v25, %v3790_v29  ;;  %v1159_v32 = vmul.f32 %v1151_v8, %v3809_v7  ;;  %v3909_v7 = vld [vmem:[%s4971_s2 + $0x40] sm:$0xff]   ;;  %v5128_v8 = vld [vmem:[#allocation11_spill] sm:$0xff] }
  0xb7   :  { %v1465_v12 = vadd.f32 %v1457_v62, %v1441_v23  ;;  %v751_v47 = vmul.f32 %v743_v49, %v3876_v61  ;;  %v752_v60 = vmul.f32 %v744_v1, %v3883_v40  ;;  %v1160_v34 = vmul.f32 %v1152_v51, %v3813_v45 }
  0xb8   :  { %v1466_v53 = vadd.f32 %v1458_v14, %v1442_v24  ;;  %v1167_v50 = vmul.f32 1.25, %v735_v20  ;;  %v1168_v16 = vmul.f32 1.25, %v736_v2  ;;  %v1471_v27 = vmul.f32 0.8333333, %v5105_v43 }
  0xb9   :  { %v3897_v48 = vadd.f32 %v751_v47, %v727_v42  ;;  %v3899_v13 = vadd.f32 %v752_v60, %v728_v41  ;;  %v1472_v29 = vmul.f32 0.8333333, %v5106_v15  ;;  %v2231_v18 = vsel %vm5125_vm8, %v3803_v56, 0  ;;  %vm5138_vm8 = vmmov %vm5133_vm1 }
  0xba   :  { %v1977_v23 = vpack.c.bf16 %v1466_v53, %v1465_v12  ;;  %v1487_v25 = vmul.f32 0.8333333, %v735_v20  ;;  %vm273_vm0 = vcmp.ge.f32.partialorder %v3730_v37, 0.2  ;;  %v1479_v43 = vmul.f32 %v1471_v27, %v3828_v10  ;;  %v5130_v53 = vld [vmem:[#allocation12_spill] sm:$0xff] }
  0xbb   :  { %v1175_v45 = vmul.f32 %v1167_v50, %v3897_v48  ;;  %v1176_v24 = vmul.f32 %v1168_v16, %v3899_v13  ;;  %v1488_v62 = vmul.f32 0.8333333, %v736_v2  ;;  %v1480_v15 = vmul.f32 %v1472_v29, %v3833_v54 }
  0xbc   :  { %2906 = vmatmul.mubr.msk.bf16.vlgmr.msra.gmra.mxu1 %vm5126_vm9, %v1977_v23  ;;  %vm274_vm11 = vcmp.ge.f32.partialorder %v3738_v63, 0.2  ;;  %vm281_vm10 = vcmp.lt.f32.partialorder %v3730_v37, 0.6  ;;  %vm282_vm12 = vcmp.lt.f32.partialorder %v3738_v63, 0.6 }
  0xbd   :  { %2926 = vmatpush3.bf16.xpose.msra.mxu1 %v2231_v18  ;;  %v3919_v56 = vadd.f32 %v1175_v45, %v1159_v32  ;;  %v3921_v20 = vadd.f32 %v1176_v24, %v1160_v34  ;;  %vm289_vm13 = vmand %vm273_vm0, %vm281_vm10  ;;  %v3924_v49 = vadd.f32 0.2, %v3730_v37  ;;  %v3927_v10 = vadd.f32 0.2, %v3738_v63 }
  0xbe   :  { %vm290_vm15 = vmand %vm274_vm11, %vm282_vm12  ;;  %v3930_v54 = vsel %vm289_vm13, 1.0, %v5080_v5  ;;  %v737_v2 = vsub.f32 0.6, %v3730_v37  ;;  %v738_v1 = vsub.f32 0.6, %v3738_v63  ;;  %v1153_v14 = vmul.f32 1.25, %v5128_v8  ;;  %2988 = vmatprep.subr.msk.bf16.mxu1 %vm5129_vm14, %v3909_v7 }
  0xbf   :  { %5127 = vst [vmem:[#allocation4_spill] sm:$0xff] %v3927_v10  ;;  %v1495_v42 = vmul.f32 %v1487_v25, %v3919_v56  ;;  %v1496_v41 = vmul.f32 %v1488_v62, %v3921_v20  ;;  %v3940_v51 = vsel %vm290_vm15, 1.0, %v5080_v5  ;;  %v721_v12 = vmul.f32 2.5, %v3924_v49  ;;  %vm5139_vm0 = vmmov %vm5133_vm1 }
  0xc0   :  { %v722_v47 = vmul.f32 2.5, %v3927_v10  ;;  %v745_v60 = vmul.f32 2.5, %v737_v2  ;;  %v746_v32 = vmul.f32 2.5, %v738_v1  ;;  %v1154_v34 = vmul.f32 1.25, %v5130_v53  ;;  %vm5142_vm15 = vmmov %vm5139_vm0 }
  0xc1   :  { %v1503_v50 = vadd.f32 %v1495_v42, %v1479_v43  ;;  %v1504_v16 = vadd.f32 %v1496_v41, %v1480_v15  ;;  %v729_v27 = vmul.f32 %v721_v12, %v3840_v46  ;;  %v1161_v25 = vmul.f32 %v1153_v14, %v3853_v44  ;;  %v3962_v44 = vld [vmem:[%s4973_s0 + $0x20] sm:$0xff] }
  0xc2   :  { %v730_v29 = vmul.f32 %v722_v47, %v3845_v28  ;;  %v753_v23 = vmul.f32 %v745_v60, %v3930_v54  ;;  %v754_v18 = vmul.f32 %v746_v32, %v3940_v51  ;;  %v1169_v24 = vmul.f32 1.25, %v737_v2 }
  0xc3   :  { %v2086_v45 = vpack.c.bf16 %v1504_v16, %v1503_v50  ;;  %v1170_v62 = vmul.f32 1.25, %v738_v1  ;;  %v1473_v8 = vmul.f32 0.8333333, %v5115_v31  ;;  %v1162_v43 = vmul.f32 %v1154_v34, %v3856_v39 }
  0xc4   :  { %v3951_v10 = vadd.f32 %v753_v23, %v729_v27  ;;  %v3953_v53 = vadd.f32 %v754_v18, %v730_v29  ;;  %v1474_v46 = vmul.f32 0.8333333, %v5116_v52  ;;  %v1489_v15 = vmul.f32 0.8333333, %v737_v2  ;;  %v3970_v52 = vld [vmem:[%s4973_s0 + $0x28] sm:$0xff] }
  0xc5   :  { %2917 = vmatprep.mubr.msk.bf16.mxu0 %vm5133_vm1, %v2086_v45  ;;  %v1481_v28 = vmul.f32 %v1473_v8, %v3873_v21  ;;  %vm243_vm4 = vcmp.ge.f32.partialorder %v3962_v44, -0.2  ;;  %v1490_v42 = vmul.f32 0.8333333, %v738_v1  ;;  %5134 = vst [vmem:[#allocation3_spill] sm:$0xff] %v3970_v52  ;;  %v1115_v60 = vmul.f32 1.25, %v3635_v38  ;;  %vm5147_vm1 = vmmov %vm5139_vm0 }
  0xc6   :  { %5131 = vst [vmem:[#allocation5_spill] sm:$0xff] %v3951_v10  ;;  %5132 = vst [vmem:[#allocation2_spill] sm:$0xff] %v3953_v53  ;;  %v1177_v31 = vmul.f32 %v1169_v24, %v3951_v10  ;;  %v1178_v14 = vmul.f32 %v1170_v62, %v3953_v53  ;;  %vm244_vm2 = vcmp.ge.f32.partialorder %v3970_v52, -0.2  ;;  %v1482_v39 = vmul.f32 %v1474_v46, %v3880_v6 }
  0xc7   :  { %vm251_vm5 = vcmp.lt.f32.partialorder %v3962_v44, 0.2  ;;  %vm252_vm6 = vcmp.lt.f32.partialorder %v3970_v52, 0.2  ;;  %v3977_v21 = vadd.f32 0.6, %v3962_v44 }
  0xc8   :  { %v3979_v2 = vadd.f32 %v1177_v31, %v1161_v25  ;;  %v3981_v8 = vadd.f32 %v1178_v14, %v1162_v43  ;;  %vm259_vm7 = vmand %vm243_vm4, %vm251_vm5  ;;  %v3984_v1 = vadd.f32 0.6, %v3970_v52  ;;  %v683_v41 = vsub.f32 0.2, %v3962_v44 }
  0xc9   :  { %5135 = vst [vmem:[#allocation6_spill] sm:$0xff] %v3977_v21  ;;  %vm260_vm3 = vmand %vm244_vm2, %vm252_vm6  ;;  %v3988_v6 = vsel %vm259_vm7, 1.0, %v5080_v5  ;;  %v667_v12 = vmul.f32 2.5, %v3977_v21  ;;  %v684_v47 = vsub.f32 0.2, %v3970_v52  ;;  %v1116_v18 = vmul.f32 1.25, %v3644_v35 }
  0xca   :  { %5136 = vst [vmem:[#allocation14_spill] sm:$0xff] %v3979_v2  ;;  %5137 = vst [vmem:[#allocation9_spill] sm:$0xff] %v3981_v8  ;;  %v1497_v32 = vmul.f32 %v1489_v15, %v3979_v2  ;;  %v1498_v34 = vmul.f32 %v1490_v42, %v3981_v8  ;;  %v3996_v50 = vsel %vm260_vm3, 1.0, %v5080_v5  ;;  %v668_v16 = vmul.f32 2.5, %v3984_v1 }
  0xcb   :  { %v675_v27 = vmul.f32 %v667_v12, %v3641_v9  ;;  %v691_v29 = vmul.f32 2.5, %v683_v41  ;;  %v692_v23 = vmul.f32 2.5, %v684_v47  ;;  %v2341_v24 = vsel %vm5138_vm8, %v3747_v17, 0  ;;  %vm5148_vm4 = vmmov %vm5139_vm0 }
  0xcc   :  { %v1505_v25 = vadd.f32 %v1497_v32, %v1481_v28  ;;  %v1506_v45 = vadd.f32 %v1498_v34, %v1482_v39  ;;  %v676_v62 = vmul.f32 %v668_v16, %v3650_v19  ;;  %v1123_v15 = vmul.f32 %v1115_v60, %v3666_v58  ;;  %v4012_v28 = vld [vmem:[%s4971_s2 + $0x50] sm:$0xff]   ;;  %vm5151_vm3 = vmmov %vm5139_vm0 }
  0xcd   :  { %v699_v43 = vmul.f32 %v691_v29, %v3988_v6  ;;  %v700_v46 = vmul.f32 %v692_v23, %v3996_v50  ;;  %v1131_v31 = vmul.f32 1.25, %v683_v41  ;;  %v1132_v9 = vmul.f32 1.25, %v684_v47 }
  0xce   :  { %v2087_v14 = vpack.c.bf16 %v1506_v45, %v1505_v25  ;;  %v1435_v42 = vmul.f32 0.8333333, %v3445_v0  ;;  %v1436_v12 = vmul.f32 0.8333333, %v3448_v22  ;;  %v1124_v39 = vmul.f32 %v1116_v18, %v3675_v55  ;;  %v4024_v0 = vld [vmem:[%s4973_s0 + $0x30] sm:$0xff]  ;;  %v4030_v22 = vld [vmem:[%s4973_s0 + $0x38] sm:$0xff] }
  0xcf   :  { %v4014_v17 = vadd.f32 %v699_v43, %v675_v27  ;;  %v4016_v19 = vadd.f32 %v700_v46, %v676_v62  ;;  %v1451_v32 = vmul.f32 0.8333333, %v683_v41  ;;  %v1452_v60 = vmul.f32 0.8333333, %v684_v47 }
  0xd0   :  { %2918 = vmatmul.mubr.msk.bf16.vlgmr.msra.gmra.mxu0 %vm5139_vm0, %v2087_v14  ;;  %v1443_v58 = vmul.f32 %v1435_v42, %v3690_v26  ;;  %vm245_vm9 = vcmp.ge.f32.partialorder %v4024_v0, -0.2  ;;  %vm246_vm11 = vcmp.ge.f32.partialorder %v4030_v22, -0.2  ;;  %vm253_vm10 = vcmp.lt.f32.partialorder %v4024_v0, 0.2 }
  0xd1   :  { %2938 = vmatpush3.bf16.xpose.msra.mxu0 %v2341_v24  ;;  %v1139_v55 = vmul.f32 %v1131_v31, %v4014_v17  ;;  %v1140_v26 = vmul.f32 %v1132_v9, %v4016_v19  ;;  %vm254_vm12 = vcmp.lt.f32.partialorder %v4030_v22, 0.2  ;;  %v1444_v41 = vmul.f32 %v1436_v12, %v3697_v36  ;;  %vm261_vm13 = vmand %vm245_vm9, %vm253_vm10 }
  0xd2   :  { %v4039_v47 = vadd.f32 0.6, %v4024_v0  ;;  %v4042_v34 = vadd.f32 0.6, %v4030_v22  ;;  %v685_v16 = vsub.f32 0.2, %v4024_v0  ;;  %2990 = vmatprep.subr.msk.bf16.mxu0 %vm5142_vm15, %v4012_v28  ;;  %vm262_vm14 = vmand %vm246_vm11, %vm254_vm12 }
  0xd3   :  { %v4047_v27 = vadd.f32 %v1139_v55, %v1123_v15  ;;  %v4049_v29 = vadd.f32 %v1140_v26, %v1124_v39  ;;  %v4052_v23 = vsel %vm261_vm13, 1.0, %v5080_v5  ;;  %v686_v36 = vsub.f32 0.2, %v4030_v22  ;;  %v5143_v26 = vld [vmem:[#allocation21_spill] sm:$0xff]  ;;  %vm5154_vm9 = vmmov %vm5147_vm1 }
  0xd4   :  { %5140 = vst [vmem:[#allocation10_spill] sm:$0xff] %v4039_v47  ;;  %5141 = vst [vmem:[#allocation13_spill] sm:$0xff] %v4042_v34  ;;  %v4056_v18 = vsel %vm262_vm14, 1.0, %v5080_v5  ;;  %v669_v25 = vmul.f32 2.5, %v4039_v47  ;;  %v670_v45 = vmul.f32 2.5, %v4042_v34  ;;  %v693_v24 = vmul.f32 2.5, %v685_v16 }
  0xd5   :  { %v1459_v62 = vmul.f32 %v1451_v32, %v4047_v27  ;;  %v1460_v43 = vmul.f32 %v1452_v60, %v4049_v29  ;;  %v694_v46 = vmul.f32 2.5, %v686_v36  ;;  %v1117_v15 = vmul.f32 1.25, %v3700_v30  ;;  %v5144_v60 = vld [vmem:[#allocation22_spill] sm:$0xff] }
  0xd6   :  { %v677_v31 = vmul.f32 %v669_v25, %v3709_v4  ;;  %v678_v14 = vmul.f32 %v670_v45, %v3714_v33  ;;  %v701_v9 = vmul.f32 %v693_v24, %v4052_v23  ;;  %v1118_v42 = vmul.f32 1.25, %v3703_v11  ;;  %v4075_v4 = vld [vmem:[%s4971_s2 + $0x68] sm:$0xff]   ;;  %v5146_v45 = vld [vmem:[#allocation20_spill] sm:$0xff] }
  0xd7   :  { %v1467_v12 = vadd.f32 %v1459_v62, %v1443_v58  ;;  %v1468_v39 = vadd.f32 %v1460_v43, %v1444_v41  ;;  %v702_v55 = vmul.f32 %v694_v46, %v4056_v18  ;;  %v1125_v8 = vmul.f32 %v1117_v15, %v5143_v26  ;;  %v5145_v58 = vld [vmem:[#allocation19_spill] sm:$0xff] }
  0xd8   :  { %v4069_v32 = vadd.f32 %v701_v9, %v677_v31  ;;  %v1126_v2 = vmul.f32 %v1118_v42, %v5144_v60  ;;  %v1133_v53 = vmul.f32 1.25, %v685_v16  ;;  %v1134_v10 = vmul.f32 1.25, %v686_v36  ;;  %v5149_v9 = vld [vmem:[#allocation23_spill] sm:$0xff] }
  0xd9   :  { %v1978_v33 = vpack.c.bf16 %v1468_v39, %v1467_v12  ;;  %v4077_v25 = vadd.f32 %v702_v55, %v678_v14  ;;  %v1437_v41 = vmul.f32 0.8333333, %v5145_v58  ;;  %v1438_v24 = vmul.f32 0.8333333, %v5146_v45  ;;  %v5150_v12 = vld [vmem:[#allocation24_spill] sm:$0xff] }
  0xda   :  { %v1141_v62 = vmul.f32 %v1133_v53, %v4069_v32  ;;  %v1453_v43 = vmul.f32 0.8333333, %v685_v16  ;;  %v1454_v46 = vmul.f32 0.8333333, %v686_v36  ;;  %v2228_v15 = vsel %vm5147_vm1, %v3909_v7, 0 }
  0xdb   :  { %2909 = vmatprep.mubr.msk.bf16.mxu1 %vm5148_vm4, %v1978_v33  ;;  %v1142_v31 = vmul.f32 %v1134_v10, %v4077_v25  ;;  %v1445_v42 = vmul.f32 %v1437_v41, %v5149_v9  ;;  %v1446_v14 = vmul.f32 %v1438_v24, %v5150_v12  ;;  %2928 = vmatpush3.bf16.xpose.msra.mxu1 %v2228_v15  ;;  %vm275_vm2 = vcmp.ge.f32.partialorder %v3962_v44, 0.2  ;;  %vm5158_vm4 = vmmov %vm5147_vm1 }
  0xdc   :  { %v4089_v39 = vadd.f32 %v1141_v62, %v1125_v8  ;;  %vm276_vm5 = vcmp.ge.f32.partialorder %v3970_v52, 0.2  ;;  %vm283_vm6 = vcmp.lt.f32.partialorder %v3962_v44, 0.6  ;;  %vm284_vm7 = vcmp.lt.f32.partialorder %v3970_v52, 0.6  ;;  %2991 = vmatprep.subr.msk.bf16.mxu1 %vm5151_vm3, %v4075_v4  ;;  %vm5160_vm3 = vmmov %vm5147_vm1 }
  0xdd   :  { %v4096_v7 = vadd.f32 %v1142_v31, %v1126_v2  ;;  %vm291_vm8 = vmand %vm275_vm2, %vm283_vm6  ;;  %v4099_v10 = vadd.f32 0.2, %v3962_v44  ;;  %v4102_v53 = vadd.f32 0.2, %v3970_v52  ;;  %v739_v8 = vsub.f32 0.6, %v3962_v44 }
  0xde   :  { %v1461_v16 = vmul.f32 %v1453_v43, %v4089_v39  ;;  %vm292_vm0 = vmand %vm276_vm5, %vm284_vm7  ;;  %v4107_v36 = vsel %vm291_vm8, 1.0, %v5080_v5  ;;  %v740_v55 = vsub.f32 0.6, %v3970_v52  ;;  %v1155_v2 = vmul.f32 1.25, %v3977_v21 }
  0xdf   :  { %5152 = vst [vmem:[#allocation7_spill] sm:$0xff] %v4099_v10  ;;  %5153 = vst [vmem:[#allocation8_spill] sm:$0xff] %v4102_v53  ;;  %v1462_v26 = vmul.f32 %v1454_v46, %v4096_v7  ;;  %v4113_v60 = vsel %vm292_vm0, 1.0, %v5080_v5  ;;  %v723_v33 = vmul.f32 2.5, %v4099_v10  ;;  %v724_v58 = vmul.f32 2.5, %v4102_v53 }
  0xe0   :  { %v1469_v41 = vadd.f32 %v1461_v16, %v1445_v42  ;;  %v747_v45 = vmul.f32 2.5, %v739_v8  ;;  %v748_v24 = vmul.f32 2.5, %v740_v55  ;;  %v1156_v62 = vmul.f32 1.25, %v3984_v1 }
  0xe1   :  { %v1470_v43 = vadd.f32 %v1462_v26, %v1446_v14  ;;  %v731_v15 = vmul.f32 %v723_v33, %v3988_v6  ;;  %v732_v31 = vmul.f32 %v724_v58, %v3996_v50  ;;  %v1163_v12 = vmul.f32 %v1155_v2, %v4014_v17 }
  0xe2   :  { %v755_v9 = vmul.f32 %v747_v45, %v4107_v36  ;;  %v756_v46 = vmul.f32 %v748_v24, %v4113_v60  ;;  %v1171_v21 = vmul.f32 1.25, %v739_v8  ;;  %v1172_v52 = vmul.f32 1.25, %v740_v55 }
  0xe3   :  { %v1979_v10 = vpack.c.bf16 %v1470_v43, %v1469_v41  ;;  %v1475_v42 = vmul.f32 0.8333333, %v3635_v38  ;;  %v1476_v16 = vmul.f32 0.8333333, %v3644_v35  ;;  %v1164_v6 = vmul.f32 %v1156_v62, %v4016_v19 }
  0xe4   :  { %v4125_v53 = vadd.f32 %v755_v9, %v731_v15  ;;  %v4127_v14 = vadd.f32 %v756_v46, %v732_v31  ;;  %v1491_v50 = vmul.f32 0.8333333, %v739_v8  ;;  %v1492_v33 = vmul.f32 0.8333333, %v740_v55 }
  0xe5   :  { %2910 = vmatmul.mubr.msk.bf16.gmra.mxu1 %vm5154_vm9, %v1979_v10  ;;  %v1483_v26 = vmul.f32 %v1475_v42, %v4047_v27  ;;  %vm277_vm11 = vcmp.ge.f32.partialorder %v4024_v0, 0.2  ;;  %vm278_vm10 = vcmp.ge.f32.partialorder %v4030_v22, 0.2  ;;  %vm285_vm12 = vcmp.lt.f32.partialorder %v4024_v0, 0.6  ;;  %vm5164_vm9 = vmmov %vm5147_vm1 }
  0xe6   :  { %v1179_v38 = vmul.f32 %v1171_v21, %v4125_v53  ;;  %v1180_v35 = vmul.f32 %v1172_v52, %v4127_v14  ;;  %vm286_vm13 = vcmp.lt.f32.partialorder %v4030_v22, 0.6  ;;  %v1484_v17 = vmul.f32 %v1476_v16, %v4049_v29  ;;  %vm293_vm15 = vmand %vm277_vm11, %vm285_vm12 }
  0xe7   :  { %v4140_v19 = vadd.f32 0.2, %v4024_v0  ;;  %v4143_v27 = vadd.f32 0.2, %v4030_v22  ;;  %v741_v10 = vsub.f32 0.6, %v4024_v0  ;;  %vm294_vm14 = vmand %vm278_vm10, %vm286_vm13 }
  0xe8   :  { %v4146_v8 = vadd.f32 %v1179_v38, %v1163_v12  ;;  %v4148_v21 = vadd.f32 %v1180_v35, %v1164_v6  ;;  %v4151_v52 = vsel %vm293_vm15, 1.0, %v5080_v5  ;;  %v742_v55 = vsub.f32 0.6, %v4030_v22 }
  0xe9   :  { %5155 = vst [vmem:[#allocation16_spill] sm:$0xff] %v4143_v27  ;;  %v4155_v29 = vsel %vm294_vm14, 1.0, %v5080_v5  ;;  %v725_v2 = vmul.f32 2.5, %v4140_v19  ;;  %v726_v58 = vmul.f32 2.5, %v4143_v27  ;;  %v749_v41 = vmul.f32 2.5, %v741_v10 }
  0xea   :  { %v1499_v45 = vmul.f32 %v1491_v50, %v4146_v8  ;;  %v1500_v24 = vmul.f32 %v1492_v33, %v4148_v21  ;;  %v750_v62 = vmul.f32 2.5, %v742_v55  ;;  %v1157_v43 = vmul.f32 1.25, %v4039_v47 }
  0xeb   :  { %v733_v15 = vmul.f32 %v725_v2, %v4052_v23  ;;  %v734_v31 = vmul.f32 %v726_v58, %v4056_v18  ;;  %v757_v9 = vmul.f32 %v749_v41, %v4151_v52  ;;  %v1158_v46 = vmul.f32 1.25, %v4042_v34  ;;  %v4174_v23 = vld [vmem:[%s4971_s2 + $0x78] sm:$0xff]  }
  0xec   :  { %v1507_v12 = vadd.f32 %v1499_v45, %v1483_v26  ;;  %v1508_v42 = vadd.f32 %v1500_v24, %v1484_v17  ;;  %v758_v16 = vmul.f32 %v750_v62, %v4155_v29  ;;  %v1165_v6 = vmul.f32 %v1157_v43, %v4069_v32 }
  0xed   :  { %v4168_v50 = vadd.f32 %v757_v9, %v733_v15  ;;  %v1166_v33 = vmul.f32 %v1158_v46, %v4077_v25  ;;  %v1173_v38 = vmul.f32 1.25, %v741_v10  ;;  %v1174_v35 = vmul.f32 1.25, %v742_v55 }
  0xee   :  { %v2088_v18 = vpack.c.bf16 %v1508_v42, %v1507_v12  ;;  %v4176_v2 = vadd.f32 %v758_v16, %v734_v31  ;;  %v1477_v26 = vmul.f32 0.8333333, %v3700_v30  ;;  %v1478_v17 = vmul.f32 0.8333333, %v3703_v11  ;;  %v4190_v30 = vld [vmem:[%s4973_s0] sm:$0xff] }
  0xef   :  { %5156 = vst [vmem:[#allocation15_spill] sm:$0xff] %v4168_v50  ;;  %v1181_v32 = vmul.f32 %v1173_v38, %v4168_v50  ;;  %v1493_v58 = vmul.f32 0.8333333, %v741_v10  ;;  %v1494_v41 = vmul.f32 0.8333333, %v742_v55  ;;  %v2338_v25 = vsel %vm5147_vm1, %v4012_v28, 0 }
  0xf0   :  { %5157 = vst [vmem:[#allocation17_spill] sm:$0xff] %v4176_v2  ;;  %2921 = vmatprep.mubr.msk.bf16.mxu0 %vm5158_vm4, %v2088_v18  ;;  %v1182_v45 = vmul.f32 %v1174_v35, %v4176_v2  ;;  %v1485_v24 = vmul.f32 %v1477_v26, %v4089_v39  ;;  %v1486_v62 = vmul.f32 %v1478_v17, %v4096_v7  ;;  %vm303_vm2 = vcmp.ge.f32.partialorder %v4190_v30, 0.6  ;;  %v4198_v28 = vld [vmem:[%s4973_s0 + $0x8] sm:$0xff]  ;;  %vm5173_vm4 = vmmov %vm5147_vm1 }
  0xf1   :  { %2940 = vmatpush3.bf16.xpose.msra.mxu0 %v2338_v25  ;;  %v4193_v11 = vadd.f32 %v1181_v32, %v1165_v6  ;;  %vm304_vm5 = vcmp.ge.f32.partialorder %v4198_v28, 0.6  ;;  %vm311_vm6 = vcmp.lt.f32.partialorder %v4190_v30, 1.0  ;;  %vm312_vm7 = vcmp.lt.f32.partialorder %v4198_v28, 1.0  ;;  %v5170_v2 = vld [vmem:[#allocation11_spill] sm:$0xff] }
  0xf2   :  { %2993 = vmatprep.subr.msk.bf16.mxu0 %vm5160_vm3, %v4174_v23  ;;  %v4205_v39 = vadd.f32 %v1182_v45, %v1166_v33  ;;  %vm319_vm8 = vmand %vm303_vm2, %vm311_vm6  ;;  %v4208_v7 = vadd.f32 -0.2, %v4190_v30  ;;  %v4211_v10 = vadd.f32 -0.2, %v4198_v28  ;;  %v791_v55 = vsub.f32 1.0, %v4190_v30 }
  0xf3   :  { %5159 = vst [vmem:[#allocation18_spill] sm:$0xff] %v4193_v11  ;;  %v1501_v43 = vmul.f32 %v1493_v58, %v4193_v11  ;;  %vm320_vm0 = vmand %vm304_vm5, %vm312_vm7  ;;  %v4216_v15 = vsel %vm319_vm8, 1.0, %v5080_v5  ;;  %v792_v31 = vsub.f32 1.0, %v4198_v28  ;;  %v1191_v9 = vmul.f32 1.25, %v3868_v57 }
  0xf4   :  { %5161 = vst [vmem:[#allocation21_spill] sm:$0xff] %v4205_v39  ;;  %5162 = vst [vmem:[#allocation22_spill] sm:$0xff] %v4208_v7  ;;  %v1502_v46 = vmul.f32 %v1494_v41, %v4205_v39  ;;  %v4222_v12 = vsel %vm320_vm0, 1.0, %v5080_v5  ;;  %v775_v42 = vmul.f32 2.5, %v4208_v7  ;;  %v776_v16 = vmul.f32 2.5, %v4211_v10 }
  0xf5   :  { %v1509_v6 = vadd.f32 %v1501_v43, %v1485_v24  ;;  %v799_v33 = vmul.f32 2.5, %v791_v55  ;;  %v800_v38 = vmul.f32 2.5, %v792_v31  ;;  %v1192_v35 = vmul.f32 1.25, %v3871_v3  ;;  %v5163_v43 = vld [vmem:[#allocation25_spill] sm:$0xff] }
  0xf6   :  { %v1510_v18 = vadd.f32 %v1502_v46, %v1486_v62  ;;  %v783_v26 = vmul.f32 %v775_v42, %v3876_v61  ;;  %v784_v17 = vmul.f32 %v776_v16, %v3883_v40  ;;  %v1199_v32 = vmul.f32 %v1191_v9, %v3897_v48 }
  0xf7   :  { %v807_v58 = vmul.f32 %v799_v33, %v4216_v15  ;;  %v808_v41 = vmul.f32 %v800_v38, %v4222_v12  ;;  %v1200_v25 = vmul.f32 %v1192_v35, %v3899_v13  ;;  %v1207_v45 = vmul.f32 1.25, %v791_v55 }
  0xf8   :  { %v2089_v39 = vpack.c.bf16 %v1510_v18, %v1509_v6  ;;  %v1208_v24 = vmul.f32 1.25, %v792_v31  ;;  %v1511_v11 = vmul.f32 0.8333333, %v5163_v43  ;;  %v1512_v34 = vmul.f32 0.8333333, %v3776_v59  ;;  %v5167_v18 = vld [vmem:[#allocation4_spill] sm:$0xff] }
  0xf9   :  { %v4235_v62 = vadd.f32 %v807_v58, %v783_v26  ;;  %v4237_v61 = vadd.f32 %v808_v41, %v784_v17  ;;  %v1527_v40 = vmul.f32 0.8333333, %v791_v55  ;;  %v1528_v46 = vmul.f32 0.8333333, %v792_v31  ;;  %v5168_v41 = vld [vmem:[#allocation5_spill] sm:$0xff] }
  0xfa   :  { %2922 = vmatmul.mubr.msk.bf16.gmra.mxu0 %vm5164_vm9, %v2089_v39  ;;  %v1519_v48 = vmul.f32 %v1511_v11, %v3919_v56  ;;  %v1520_v9 = vmul.f32 %v1512_v34, %v3921_v20  ;;  %vm305_vm11 = vcmp.ge.f32.partialorder %v3730_v37, 0.6  ;;  %vm306_vm10 = vcmp.ge.f32.partialorder %v3738_v63, 0.6  ;;  %vm5176_vm9 = vmmov %vm5147_vm1 }
  0xfb   :  { %v1215_v13 = vmul.f32 %v1207_v45, %v4235_v62  ;;  %v1216_v59 = vmul.f32 %v1208_v24, %v4237_v61  ;;  %vm313_vm12 = vcmp.lt.f32.partialorder %v3730_v37, 1.0  ;;  %vm314_vm13 = vcmp.lt.f32.partialorder %v3738_v63, 1.0 }
  0xfc   :  { %vm321_vm15 = vmand %vm305_vm11, %vm313_vm12  ;;  %v4249_v55 = vadd.f32 -0.2, %v3730_v37  ;;  %v4252_v56 = vadd.f32 -0.2, %v3738_v63  ;;  %v793_v20 = vsub.f32 1.0, %v3730_v37  ;;  %v794_v34 = vsub.f32 1.0, %v3738_v63 }
  0xfd   :  { %v4256_v11 = vadd.f32 %v1215_v13, %v1199_v32  ;;  %v4258_v39 = vadd.f32 %v1216_v59, %v1200_v25  ;;  %vm322_vm14 = vmand %vm306_vm10, %vm314_vm13  ;;  %v4261_v31 = vsel %vm321_vm15, 1.0, %v5080_v5  ;;  %v1193_v42 = vmul.f32 1.25, %v3924_v49  ;;  %v5169_v13 = vld [vmem:[#allocation2_spill] sm:$0xff] }
  0xfe   :  { %5165 = vst [vmem:[#allocation19_spill] sm:$0xff] %v4249_v55  ;;  %5166 = vst [vmem:[#allocation20_spill] sm:$0xff] %v4252_v56  ;;  %v4265_v16 = vsel %vm322_vm14, 1.0, %v5080_v5  ;;  %v777_v6 = vmul.f32 2.5, %v4249_v55  ;;  %v778_v33 = vmul.f32 2.5, %v4252_v56  ;;  %v801_v37 = vmul.f32 2.5, %v793_v20 }
  0xff   :  { %v1535_v63 = vmul.f32 %v1527_v40, %v4256_v11  ;;  %v1536_v38 = vmul.f32 %v1528_v46, %v4258_v39  ;;  %v802_v35 = vmul.f32 2.5, %v794_v34  ;;  %v1194_v26 = vmul.f32 1.25, %v5167_v18  ;;  %vm5180_vm15 = vmmov %vm5147_vm1 }
 0x100   :  { %v785_v17 = vmul.f32 %v777_v6, %v3930_v54  ;;  %v786_v32 = vmul.f32 %v778_v33, %v3940_v51  ;;  %v809_v58 = vmul.f32 %v801_v37, %v4261_v31  ;;  %v1201_v25 = vmul.f32 %v1193_v42, %v5168_v41  ;;  %v5171_v51 = vld [vmem:[#allocation12_spill] sm:$0xff] }
 0x101   :  { %v1543_v45 = vadd.f32 %v1535_v63, %v1519_v48  ;;  %v1544_v24 = vadd.f32 %v1536_v38, %v1520_v9  ;;  %v810_v43 = vmul.f32 %v802_v35, %v4265_v16  ;;  %v1202_v59 = vmul.f32 %v1194_v26, %v5169_v13  ;;  %v5172_v48 = vld [vmem:[#allocation14_spill] sm:$0xff]  ;;  %v5174_v35 = vld [vmem:[#allocation9_spill] sm:$0xff] }
 0x102   :  { %v4278_v40 = vadd.f32 %v809_v58, %v785_v17  ;;  %v1209_v46 = vmul.f32 1.25, %v793_v20  ;;  %v1210_v47 = vmul.f32 1.25, %v794_v34  ;;  %v1513_v50 = vmul.f32 0.8333333, %v5170_v2 }
 0x103   :  { %v2196_v27 = vpack.c.bf16 %v1544_v24, %v1543_v45  ;;  %v4281_v54 = vadd.f32 %v810_v43, %v786_v32  ;;  %v1514_v6 = vmul.f32 0.8333333, %v5171_v51  ;;  %v1529_v33 = vmul.f32 0.8333333, %v793_v20 }
 0x104   :  { %v1217_v42 = vmul.f32 %v1209_v46, %v4278_v40  ;;  %v1521_v9 = vmul.f32 %v1513_v50, %v5172_v48  ;;  %v1530_v37 = vmul.f32 0.8333333, %v794_v34  ;;  %v2451_v63 = vsel %vm5147_vm1, %v4075_v4, 0 }
 0x105   :  { %2929 = vmatprep.mubr.msk.bf16.mxu1 %vm5173_vm4, %v2196_v27  ;;  %v1218_v38 = vmul.f32 %v1210_v47, %v4281_v54  ;;  %v1522_v2 = vmul.f32 %v1514_v6, %v5174_v35  ;;  %vm335_vm2 = vcmp.ge.f32.partialorder %v4190_v30, 1.0  ;;  %vm336_vm5 = vcmp.ge.f32.partialorder %v4198_v28, 1.0  ;;  %vm5186_vm4 = vmmov %vm5147_vm1 }
 0x106   :  { %v4293_v26 = vadd.f32 %v1217_v42, %v1201_v25  ;;  %vm343_vm6 = vcmp.lt.f32.partialorder %v4190_v30, 1.4  ;;  %vm344_vm7 = vcmp.lt.f32.partialorder %v4198_v28, 1.4  ;;  %v4298_v50 = vadd.f32 -0.6, %v4190_v30 }
 0x107   :  { %v4300_v4 = vadd.f32 %v1218_v38, %v1202_v59  ;;  %vm351_vm3 = vmand %vm335_vm2, %vm343_vm6  ;;  %v4303_v47 = vadd.f32 -0.6, %v4198_v28  ;;  %v847_v27 = vsub.f32 1.4, %v4190_v30  ;;  %v848_v20 = vsub.f32 1.4, %v4198_v28 }
 0x108   :  { %v1537_v34 = vmul.f32 %v1529_v33, %v4293_v26  ;;  %vm352_vm8 = vmand %vm336_vm5, %vm344_vm7  ;;  %v4309_v17 = vsel %vm351_vm3, 1.0, %v5080_v5  ;;  %v831_v32 = vmul.f32 2.5, %v4298_v50  ;;  %v1231_v58 = vmul.f32 1.25, %v4208_v7 }
 0x109   :  { %v1538_v41 = vmul.f32 %v1530_v37, %v4300_v4  ;;  %v4315_v25 = vsel %vm352_vm8, 1.0, %v5080_v5  ;;  %v832_v45 = vmul.f32 2.5, %v4303_v47  ;;  %v855_v24 = vmul.f32 2.5, %v847_v27 }
 0x10a   :  { %v1545_v43 = vadd.f32 %v1537_v34, %v1521_v9  ;;  %v839_v13 = vmul.f32 %v831_v32, %v4216_v15  ;;  %v856_v59 = vmul.f32 2.5, %v848_v20  ;;  %v1232_v46 = vmul.f32 1.25, %v4211_v10 }
 0x10b   :  { %v1546_v51 = vadd.f32 %v1538_v41, %v1522_v2  ;;  %v840_v6 = vmul.f32 %v832_v45, %v4222_v12  ;;  %v863_v33 = vmul.f32 %v855_v24, %v4309_v17  ;;  %v1239_v42 = vmul.f32 %v1231_v58, %v4235_v62  ;;  %v4332_v12 = vld [vmem:[%s4971_s2 + $0x60] sm:$0xff]  }
 0x10c   :  { %v864_v48 = vmul.f32 %v856_v59, %v4315_v25  ;;  %v1240_v37 = vmul.f32 %v1232_v46, %v4237_v61  ;;  %v1247_v38 = vmul.f32 1.25, %v847_v27  ;;  %v1248_v35 = vmul.f32 1.25, %v848_v20  ;;  %v4339_v61 = vld [vmem:[%s4973_s0 + $0x10] sm:$0xff] }
 0x10d   :  { %v2197_v7 = vpack.c.bf16 %v1546_v51, %v1545_v43  ;;  %v4325_v9 = vadd.f32 %v863_v33, %v839_v13  ;;  %v1551_v15 = vmul.f32 0.8333333, %v3868_v57  ;;  %v1552_v34 = vmul.f32 0.8333333, %v3871_v3  ;;  %5175 = vst [vmem:[#allocation23_spill] sm:$0xff] %v4339_v61 }
 0x10e   :  { %v4334_v2 = vadd.f32 %v864_v48, %v840_v6  ;;  %v1567_v62 = vmul.f32 0.8333333, %v847_v27  ;;  %v1568_v32 = vmul.f32 0.8333333, %v848_v20  ;;  %vm337_vm0 = vcmp.ge.f32.partialorder %v4339_v61, 1.0  ;;  %v4349_v27 = vld [vmem:[%s4973_s0 + $0x18] sm:$0xff] }
 0x10f   :  { %2930 = vmatmul.mubr.msk.bf16.vlgmr.msra.gmra.mxu1 %vm5176_vm9, %v2197_v7  ;;  %v1255_v57 = vmul.f32 %v1247_v38, %v4325_v9  ;;  %v1559_v3 = vmul.f32 %v1551_v15, %v4256_v11  ;;  %v1560_v58 = vmul.f32 %v1552_v34, %v4258_v39  ;;  %5177 = vst [vmem:[#allocation24_spill] sm:$0xff] %v4349_v27  ;;  %vm338_vm11 = vcmp.ge.f32.partialorder %v4349_v27, 1.0  ;;  %vm5193_vm9 = vmmov %vm5147_vm1 }
 0x110   :  { %2950 = vmatpush3.bf16.xpose.msra.mxu1 %v2451_v63  ;;  %v1256_v20 = vmul.f32 %v1248_v35, %v4334_v2  ;;  %vm345_vm10 = vcmp.lt.f32.partialorder %v4339_v61, 1.4  ;;  %vm346_vm12 = vcmp.lt.f32.partialorder %v4349_v27, 1.4  ;;  %v4356_v7 = vadd.f32 -0.6, %v4339_v61 }
 0x111   :  { %v4358_v11 = vadd.f32 %v1255_v57, %v1239_v42  ;;  %vm353_vm13 = vmand %vm337_vm0, %vm345_vm10  ;;  %v4361_v39 = vadd.f32 -0.6, %v4349_v27  ;;  %v849_v41 = vsub.f32 1.4, %v4339_v61  ;;  %v850_v45 = vsub.f32 1.4, %v4349_v27  ;;  %2992 = vmatprep.subr.msk.bf16.mxu1 %vm5180_vm15, %v4332_v12 }
 0x112   :  { %5178 = vst [vmem:[#allocation25_spill] sm:$0xff] %v4356_v7  ;;  %v4367_v63 = vadd.f32 %v1256_v20, %v1240_v37  ;;  %vm354_vm14 = vmand %vm338_vm11, %vm346_vm12  ;;  %v4370_v24 = vsel %vm353_vm13, 1.0, %v5080_v5  ;;  %v833_v43 = vmul.f32 2.5, %v4356_v7  ;;  %v1233_v13 = vmul.f32 1.25, %v4249_v55 }
 0x113   :  { %5179 = vst [vmem:[#allocation4_spill] sm:$0xff] %v4361_v39  ;;  %5181 = vst [vmem:[#allocation5_spill] sm:$0xff] %v4370_v24  ;;  %v1575_v59 = vmul.f32 %v1567_v62, %v4358_v11  ;;  %v4376_v46 = vsel %vm354_vm14, 1.0, %v5080_v5  ;;  %v834_v51 = vmul.f32 2.5, %v4361_v39  ;;  %v857_v6 = vmul.f32 2.5, %v849_v41 }
 0x114   :  { %5182 = vst [vmem:[#allocation2_spill] sm:$0xff] %v4376_v46  ;;  %v1576_v33 = vmul.f32 %v1568_v32, %v4367_v63  ;;  %v841_v42 = vmul.f32 %v833_v43, %v4261_v31  ;;  %v858_v48 = vmul.f32 2.5, %v850_v45  ;;  %v1234_v37 = vmul.f32 1.25, %v4252_v56  ;;  %vm5196_vm15 = vmmov %vm5147_vm1 }
 0x115   :  { %v1583_v38 = vadd.f32 %v1575_v59, %v1559_v3  ;;  %v842_v35 = vmul.f32 %v834_v51, %v4265_v16  ;;  %v865_v15 = vmul.f32 %v857_v6, %v4370_v24  ;;  %v1241_v34 = vmul.f32 %v1233_v13, %v4278_v40 }
 0x116   :  { %v1584_v62 = vadd.f32 %v1576_v33, %v1560_v58  ;;  %v866_v57 = vmul.f32 %v858_v48, %v4376_v46  ;;  %v1242_v20 = vmul.f32 %v1234_v37, %v4281_v54  ;;  %v1249_v55 = vmul.f32 1.25, %v849_v41 }
 0x117   :  { %v4387_v39 = vadd.f32 %v865_v15, %v841_v42  ;;  %v1250_v32 = vmul.f32 1.25, %v850_v45  ;;  %v1553_v31 = vmul.f32 0.8333333, %v3924_v49  ;;  %v1554_v43 = vmul.f32 0.8333333, %v5167_v18  ;;  %v5187_v18 = vld [vmem:[#allocation3_spill] sm:$0xff] }
 0x118   :  { %v2306_v3 = vpack.c.bf16 %v1584_v62, %v1583_v38  ;;  %v4391_v59 = vadd.f32 %v866_v57, %v842_v35  ;;  %v1569_v16 = vmul.f32 0.8333333, %v849_v41  ;;  %v1570_v51 = vmul.f32 0.8333333, %v850_v45  ;;  %v5190_v62 = vld [vmem:[#allocation7_spill] sm:$0xff] }
 0x119   :  { %5183 = vst [vmem:[#allocation11_spill] sm:$0xff] %v4387_v39  ;;  %v1257_v40 = vmul.f32 %v1249_v55, %v4387_v39  ;;  %v1561_v58 = vmul.f32 %v1553_v31, %v4293_v26  ;;  %v1562_v13 = vmul.f32 %v1554_v43, %v4300_v4  ;;  %v4398_v54 = vsel %vm5147_vm1, %v4174_v23, 0  ;;  %v5191_v43 = vld [vmem:[#allocation8_spill] sm:$0xff] }
 0x11a   :  { %5184 = vst [vmem:[#allocation12_spill] sm:$0xff] %v4391_v59  ;;  %5185 = vst [vmem:[#allocation14_spill] sm:$0xff] %v4398_v54  ;;  %2941 = vmatprep.mubr.msk.bf16.mxu0 %vm5186_vm4, %v2306_v3  ;;  %v1258_v49 = vmul.f32 %v1250_v32, %v4391_v59  ;;  %vm307_vm2 = vcmp.ge.f32.partialorder %v3962_v44, 0.6  ;;  %vm308_vm5 = vcmp.ge.f32.partialorder %v5187_v18, 0.6 }
 0x11b   :  { %vm315_vm6 = vcmp.lt.f32.partialorder %v3962_v44, 1.0  ;;  %v4405_v41 = vadd.f32 %v1257_v40, %v1241_v34  ;;  %vm316_vm7 = vcmp.lt.f32.partialorder %v5187_v18, 1.0  ;;  %v4409_v55 = vadd.f32 -0.2, %v3962_v44  ;;  %v5192_v59 = vld [vmem:[#allocation6_spill] sm:$0xff]  ;;  %vm5202_vm4 = vmmov %vm5147_vm1 }
 0x11c   :  { %vm323_vm3 = vmand %vm307_vm2, %vm315_vm6  ;;  %v4412_v26 = vadd.f32 -0.2, %v5187_v18  ;;  %v4414_v4 = vadd.f32 %v1258_v49, %v1242_v20  ;;  %v795_v6 = vsub.f32 1.0, %v3962_v44  ;;  %v796_v33 = vsub.f32 1.0, %v5187_v18 }
 0x11d   :  { %5188 = vst [vmem:[#allocation9_spill] sm:$0xff] %v4405_v41  ;;  %vm324_vm8 = vmand %vm308_vm5, %vm316_vm7  ;;  %v4417_v45 = vsel %vm323_vm3, 1.0, %v5080_v5  ;;  %v1577_v42 = vmul.f32 %v1569_v16, %v4405_v41  ;;  %v779_v37 = vmul.f32 2.5, %v4409_v55  ;;  %v1195_v57 = vmul.f32 1.25, %v5190_v62 }
 0x11e   :  { %5189 = vst [vmem:[#allocation3_spill] sm:$0xff] %v4414_v4  ;;  %v4423_v48 = vsel %vm324_vm8, 1.0, %v5080_v5  ;;  %v780_v38 = vmul.f32 2.5, %v4412_v26  ;;  %v1578_v35 = vmul.f32 %v1570_v51, %v4414_v4  ;;  %v803_v15 = vmul.f32 2.5, %v795_v6  ;;  %vm5205_vm3 = vmmov %vm5147_vm1 }
 0x11f   :  { %v804_v34 = vmul.f32 2.5, %v796_v33  ;;  %v1585_v20 = vadd.f32 %v1577_v42, %v1561_v58  ;;  %v787_v32 = vmul.f32 %v779_v37, %v4107_v36  ;;  %v1196_v3 = vmul.f32 1.25, %v5191_v43 }
 0x120   :  { %v788_v31 = vmul.f32 %v780_v38, %v4113_v60  ;;  %v1586_v16 = vadd.f32 %v1578_v35, %v1562_v13  ;;  %v811_v40 = vmul.f32 %v803_v15, %v4417_v45  ;;  %v1203_v41 = vmul.f32 %v1195_v57, %v4125_v53  ;;  %v4445_v13 = vld [vmem:[%s4971_s2 + $0x70] sm:$0xff]  }
 0x121   :  { %v812_v49 = vmul.f32 %v804_v34, %v4423_v48  ;;  %v1204_v51 = vmul.f32 %v1196_v3, %v4127_v14  ;;  %v1211_v4 = vmul.f32 1.25, %v795_v6  ;;  %v1212_v56 = vmul.f32 1.25, %v796_v33 }
 0x122   :  { %v1515_v39 = vmul.f32 0.8333333, %v5192_v59  ;;  %v2307_v58 = vpack.c.bf16 %v1586_v16, %v1585_v20  ;;  %v4437_v42 = vadd.f32 %v811_v40, %v787_v32  ;;  %v1516_v60 = vmul.f32 0.8333333, %v3984_v1  ;;  %v5197_v40 = vld [vmem:[#allocation16_spill] sm:$0xff] }
 0x123   :  { %v4439_v36 = vadd.f32 %v812_v49, %v788_v31  ;;  %v1531_v37 = vmul.f32 0.8333333, %v795_v6  ;;  %v1532_v14 = vmul.f32 0.8333333, %v796_v33  ;;  %vm309_vm0 = vcmp.ge.f32.partialorder %v4024_v0, 0.6 }
 0x124   :  { %v1523_v53 = vmul.f32 %v1515_v39, %v4146_v8  ;;  %2942 = vmatmul.mubr.msk.bf16.vlgmr.msra.gmra.mxu0 %vm5193_vm9, %v2307_v58  ;;  %v1219_v59 = vmul.f32 %v1211_v4, %v4437_v42  ;;  %v1524_v35 = vmul.f32 %v1516_v60, %v4148_v21  ;;  %vm310_vm11 = vcmp.ge.f32.partialorder %v4030_v22, 0.6 }
 0x125   :  { %v1220_v38 = vmul.f32 %v1212_v56, %v4439_v36  ;;  %2962 = vmatpush3.bf16.xpose.msra.mxu0 %v4398_v54  ;;  %vm317_vm10 = vcmp.lt.f32.partialorder %v4024_v0, 1.0  ;;  %vm318_vm12 = vcmp.lt.f32.partialorder %v4030_v22, 1.0  ;;  %v4458_v1 = vadd.f32 -0.2, %v4024_v0 }
 0x126   :  { %v4461_v8 = vadd.f32 -0.2, %v4030_v22  ;;  %v4463_v39 = vadd.f32 %v1219_v59, %v1203_v41  ;;  %vm325_vm13 = vmand %vm309_vm0, %vm317_vm10  ;;  %v797_v21 = vsub.f32 1.0, %v4024_v0  ;;  %v798_v56 = vsub.f32 1.0, %v4030_v22  ;;  %2995 = vmatprep.subr.msk.bf16.mxu0 %vm5196_vm15, %v4445_v13  ;;  %v5198_v59 = vld [vmem:[#allocation15_spill] sm:$0xff] }
 0x127   :  { %5194 = vst [vmem:[#allocation7_spill] sm:$0xff] %v4458_v1  ;;  %v4465_v4 = vadd.f32 %v1220_v38, %v1204_v51  ;;  %vm326_vm14 = vmand %vm310_vm11, %vm318_vm12  ;;  %v4472_v6 = vsel %vm325_vm13, 1.0, %v5080_v5  ;;  %v781_v33 = vmul.f32 2.5, %v4458_v1  ;;  %v1197_v41 = vmul.f32 1.25, %v4140_v19 }
 0x128   :  { %5195 = vst [vmem:[#allocation8_spill] sm:$0xff] %v4461_v8  ;;  %v782_v15 = vmul.f32 2.5, %v4461_v8  ;;  %v1539_v34 = vmul.f32 %v1531_v37, %v4463_v39  ;;  %v4480_v20 = vsel %vm326_vm14, 1.0, %v5080_v5  ;;  %v805_v32 = vmul.f32 2.5, %v797_v21  ;;  %vm5206_vm11 = vmmov %vm5147_vm1 }
 0x129   :  { %v1540_v57 = vmul.f32 %v1532_v14, %v4465_v4  ;;  %v789_v31 = vmul.f32 %v781_v33, %v4151_v52  ;;  %v806_v16 = vmul.f32 2.5, %v798_v56  ;;  %v1198_v49 = vmul.f32 1.25, %v5197_v40  ;;  %v5199_v14 = vld [vmem:[#allocation17_spill] sm:$0xff]  ;;  %v5200_v52 = vld [vmem:[#allocation10_spill] sm:$0xff] }
 0x12a   :  { %v790_v3 = vmul.f32 %v782_v15, %v4155_v29  ;;  %v1547_v51 = vadd.f32 %v1539_v34, %v1523_v53  ;;  %v813_v60 = vmul.f32 %v805_v32, %v4472_v6  ;;  %v1205_v38 = vmul.f32 %v1197_v41, %v5198_v59  ;;  %v5201_v33 = vld [vmem:[#allocation13_spill] sm:$0xff] }
 0x12b   :  { %v1548_v58 = vadd.f32 %v1540_v57, %v1524_v35  ;;  %v814_v37 = vmul.f32 %v806_v16, %v4480_v20  ;;  %v1206_v54 = vmul.f32 %v1198_v49, %v5199_v14  ;;  %v1213_v46 = vmul.f32 1.25, %v797_v21  ;;  %v5203_v57 = vld [vmem:[#allocation18_spill] sm:$0xff]  ;;  %v5204_v16 = vld [vmem:[#allocation21_spill] sm:$0xff] }
 0x12c   :  { %v1214_v24 = vmul.f32 1.25, %v798_v56  ;;  %v4489_v27 = vadd.f32 %v813_v60, %v789_v31  ;;  %v1517_v29 = vmul.f32 0.8333333, %v5200_v52  ;;  %v1518_v15 = vmul.f32 0.8333333, %v5201_v33 }
 0x12d   :  { %v2198_v7 = vpack.c.bf16 %v1548_v58, %v1547_v51  ;;  %v4493_v61 = vadd.f32 %v814_v37, %v790_v3  ;;  %v1533_v53 = vmul.f32 0.8333333, %v797_v21  ;;  %v1534_v35 = vmul.f32 0.8333333, %v798_v56 }
 0x12e   :  { %v2448_v41 = vsel %vm5147_vm1, %v4332_v12, 0  ;;  %v1221_v34 = vmul.f32 %v1213_v46, %v4489_v27  ;;  %v1525_v32 = vmul.f32 %v1517_v29, %v5203_v57  ;;  %v1526_v31 = vmul.f32 %v1518_v15, %v5204_v16 }
 0x12f   :  { %2933 = vmatprep.mubr.msk.bf16.mxu1 %vm5202_vm4, %v2198_v7  ;;  %2952 = vmatpush3.bf16.xpose.msra.mxu1 %v2448_v41  ;;  %vm339_vm2 = vcmp.ge.f32.partialorder %v3962_v44, 1.0  ;;  %v1222_v49 = vmul.f32 %v1214_v24, %v4493_v61  ;;  %vm340_vm5 = vcmp.ge.f32.partialorder %v5187_v18, 1.0  ;;  %vm347_vm6 = vcmp.lt.f32.partialorder %v3962_v44, 1.4  ;;  %vm5210_vm4 = vmmov %vm5147_vm1 }
 0x130   :  { %vm348_vm7 = vcmp.lt.f32.partialorder %v5187_v18, 1.4  ;;  %2994 = vmatprep.subr.msk.bf16.mxu1 %vm5205_vm3, %v4174_v23  ;;  %v4508_v12 = vadd.f32 %v1221_v34, %v1205_v38  ;;  %vm355_vm8 = vmand %vm339_vm2, %vm347_vm6  ;;  %v4511_v7 = vadd.f32 -0.6, %v3962_v44  ;;  %v4514_v46 = vadd.f32 -0.6, %v5187_v18 }
 0x131   :  { %v851_v24 = vsub.f32 1.4, %v3962_v44  ;;  %v4517_v21 = vadd.f32 %v1222_v49, %v1206_v54  ;;  %vm356_vm0 = vmand %vm340_vm5, %vm348_vm7  ;;  %v4520_v56 = vsel %vm355_vm8, 1.0, %v5080_v5  ;;  %v852_v3 = vsub.f32 1.4, %v5187_v18 }
 0x132   :  { %v1235_v23 = vmul.f32 1.25, %v4409_v55  ;;  %v1541_v51 = vmul.f32 %v1533_v53, %v4508_v12  ;;  %v4526_v58 = vsel %vm356_vm0, 1.0, %v5080_v5  ;;  %v835_v60 = vmul.f32 2.5, %v4511_v7 }
 0x133   :  { %v836_v59 = vmul.f32 2.5, %v4514_v46  ;;  %v1542_v44 = vmul.f32 %v1534_v35, %v4517_v21  ;;  %v859_v54 = vmul.f32 2.5, %v851_v24  ;;  %v860_v38 = vmul.f32 2.5, %v852_v3 }
 0x134   :  { %v1236_v37 = vmul.f32 1.25, %v4412_v26  ;;  %v1549_v14 = vadd.f32 %v1541_v51, %v1525_v32  ;;  %v843_v18 = vmul.f32 %v835_v60, %v4417_v45  ;;  %v1243_v53 = vmul.f32 %v1235_v23, %v4437_v42 }
 0x135   :  { %v844_v52 = vmul.f32 %v836_v59, %v4423_v48  ;;  %v1550_v29 = vadd.f32 %v1542_v44, %v1526_v31  ;;  %v867_v33 = vmul.f32 %v859_v54, %v4520_v56  ;;  %v868_v15 = vmul.f32 %v860_v38, %v4526_v58 }
 0x136   :  { %v1251_v41 = vmul.f32 1.25, %v851_v24  ;;  %v1252_v34 = vmul.f32 1.25, %v852_v3  ;;  %v1555_v35 = vmul.f32 0.8333333, %v5190_v62  ;;  %v1556_v57 = vmul.f32 0.8333333, %v5191_v43 }
 0x137   :  { %v2199_v16 = vpack.c.bf16 %v1550_v29, %v1549_v14  ;;  %v4539_v49 = vadd.f32 %v867_v33, %v843_v18  ;;  %v4541_v32 = vadd.f32 %v868_v15, %v844_v52  ;;  %v1244_v45 = vmul.f32 %v1236_v37, %v4439_v36 }
 0x138   :  { %v1563_v48 = vmul.f32 %v1555_v35, %v4463_v39  ;;  %v1571_v31 = vmul.f32 0.8333333, %v851_v24  ;;  %v1572_v51 = vmul.f32 0.8333333, %v852_v3  ;;  %vm341_vm9 = vcmp.ge.f32.partialorder %v4024_v0, 1.0 }
 0x139   :  { %2934 = vmatmul.mubr.msk.bf16.gmra.mxu1 %vm5206_vm11, %v2199_v16  ;;  %v1259_v42 = vmul.f32 %v1251_v41, %v4539_v49  ;;  %v1260_v62 = vmul.f32 %v1252_v34, %v4541_v32  ;;  %vm342_vm10 = vcmp.ge.f32.partialorder %v4030_v22, 1.0  ;;  %vm349_vm12 = vcmp.lt.f32.partialorder %v4024_v0, 1.4 }
 0x13a   :  { %v1564_v43 = vmul.f32 %v1556_v57, %v4465_v4  ;;  %vm350_vm13 = vcmp.lt.f32.partialorder %v4030_v22, 1.4  ;;  %vm357_vm15 = vmand %vm341_vm9, %vm349_vm12  ;;  %v4554_v36 = vadd.f32 -0.6, %v4024_v0  ;;  %v4557_v39 = vadd.f32 -0.6, %v4030_v22 }
 0x13b   :  { %v4559_v24 = vadd.f32 %v1259_v42, %v1243_v53  ;;  %v4561_v3 = vadd.f32 %v1260_v62, %v1244_v45  ;;  %vm358_vm14 = vmand %vm342_vm10, %vm350_vm13  ;;  %v4564_v23 = vsel %vm357_vm15, 1.0, %v5080_v5  ;;  %v853_v60 = vsub.f32 1.4, %v4024_v0 }
 0x13c   :  { %5207 = vst [vmem:[#allocation6_spill] sm:$0xff] %v4557_v39  ;;  %v4568_v4 = vsel %vm358_vm14, 1.0, %v5080_v5  ;;  %v837_v59 = vmul.f32 2.5, %v4554_v36  ;;  %v838_v44 = vmul.f32 2.5, %v4557_v39  ;;  %v854_v54 = vsub.f32 1.4, %v4030_v22  ;;  %vm5215_vm9 = vmmov %vm5147_vm1 }
 0x13d   :  { %v1579_v38 = vmul.f32 %v1571_v31, %v4559_v24  ;;  %v1580_v37 = vmul.f32 %v1572_v51, %v4561_v3  ;;  %v861_v14 = vmul.f32 2.5, %v853_v60  ;;  %v1237_v18 = vmul.f32 1.25, %v4458_v1 }
 0x13e   :  { %v845_v52 = vmul.f32 %v837_v59, %v4472_v6  ;;  %v846_v0 = vmul.f32 %v838_v44, %v4480_v20  ;;  %v862_v29 = vmul.f32 2.5, %v854_v54  ;;  %v1238_v33 = vmul.f32 1.25, %v4461_v8 }
 0x13f   :  { %v1587_v15 = vadd.f32 %v1579_v38, %v1563_v48  ;;  %v1588_v53 = vadd.f32 %v1580_v37, %v1564_v43  ;;  %v869_v41 = vmul.f32 %v861_v14, %v4564_v23  ;;  %v1245_v22 = vmul.f32 %v1237_v18, %v4489_v27 }
 0x140   :  { %v870_v34 = vmul.f32 %v862_v29, %v4568_v4  ;;  %v1246_v35 = vmul.f32 %v1238_v33, %v4493_v61  ;;  %v1253_v57 = vmul.f32 1.25, %v853_v60  ;;  %v1254_v16 = vmul.f32 1.25, %v854_v54 }
 0x141   :  { %v2308_v45 = vpack.c.bf16 %v1588_v53, %v1587_v15  ;;  %v4583_v31 = vadd.f32 %v869_v41, %v845_v52  ;;  %v1557_v6 = vmul.f32 0.8333333, %v4140_v19  ;;  %v1558_v20 = vmul.f32 0.8333333, %v5197_v40 }
 0x142   :  { %v4587_v51 = vadd.f32 %v870_v34, %v846_v0  ;;  %v1573_v48 = vmul.f32 0.8333333, %v853_v60  ;;  %v1574_v42 = vmul.f32 0.8333333, %v854_v54  ;;  %v4591_v27 = vsel %vm5147_vm1, %v4445_v13, 0 }
 0x143   :  { %5208 = vst [vmem:[#allocation16_spill] sm:$0xff] %v4583_v31  ;;  %2945 = vmatprep.mubr.msk.bf16.mxu0 %vm5210_vm4, %v2308_v45  ;;  %v1261_v61 = vmul.f32 %v1253_v57, %v4583_v31  ;;  %v1565_v62 = vmul.f32 %v1557_v6, %v4508_v12  ;;  %v1566_v43 = vmul.f32 %v1558_v20, %v4517_v21  ;;  %vm367_vm2 = vcmp.ge.f32.partialorder %v4190_v30, 1.4 }
 0x144   :  { %5209 = vst [vmem:[#allocation15_spill] sm:$0xff] %v4587_v51  ;;  %2964 = vmatpush3.bf16.xpose.msra.mxu0 %v4591_v27  ;;  %v1262_v19 = vmul.f32 %v1254_v16, %v4587_v51  ;;  %vm368_vm5 = vcmp.ge.f32.partialorder %v4198_v28, 1.4  ;;  %vm375_vm6 = vcmp.lt.f32.partialorder %v4190_v30, 1.8  ;;  %v4606_v60 = vadd.f32 -1.0, %v4190_v30 }
 0x145   :  { %vm376_vm7 = vcmp.lt.f32.partialorder %v4198_v28, 1.8  ;;  %v4603_v40 = vadd.f32 %v1261_v61, %v1245_v22  ;;  %vm383_vm3 = vmand %vm367_vm2, %vm375_vm6  ;;  %v4609_v12 = vadd.f32 -1.0, %v4198_v28  ;;  %v903_v21 = vsub.f32 1.8, %v4190_v30 }
 0x146   :  { %v4612_v59 = vadd.f32 %v1262_v19, %v1246_v35  ;;  %vm384_vm8 = vmand %vm368_vm5, %vm376_vm7  ;;  %v4615_v44 = vsel %vm383_vm3, 1.0, %v5080_v5  ;;  %v904_v54 = vsub.f32 1.8, %v4198_v28  ;;  %v1271_v38 = vmul.f32 1.25, %v4298_v50 }
 0x147   :  { %5211 = vst [vmem:[#allocation17_spill] sm:$0xff] %v4603_v40  ;;  %v1581_v37 = vmul.f32 %v1573_v48, %v4603_v40  ;;  %v4621_v14 = vsel %vm384_vm8, 1.0, %v5080_v5  ;;  %v887_v18 = vmul.f32 2.5, %v4606_v60  ;;  %v888_v52 = vmul.f32 2.5, %v4609_v12  ;;  %v5213_v48 = vld [vmem:[#allocation22_spill] sm:$0xff]  ;;  %v5221_v40 = vld [vmem:[#allocation11_spill] sm:$0xff]  ;;  %vm5227_vm8 = vmmov %vm5147_vm1 }
 0x148   :  { %5212 = vst [vmem:[#allocation10_spill] sm:$0xff] %v4612_v59  ;;  %v1582_v0 = vmul.f32 %v1574_v42, %v4612_v59  ;;  %v911_v29 = vmul.f32 2.5, %v903_v21  ;;  %v912_v33 = vmul.f32 2.5, %v904_v54  ;;  %v1272_v15 = vmul.f32 1.25, %v4303_v47 }
 0x149   :  { %v1589_v53 = vadd.f32 %v1581_v37, %v1565_v62  ;;  %v895_v41 = vmul.f32 %v887_v18, %v4309_v17  ;;  %v896_v22 = vmul.f32 %v888_v52, %v4315_v25  ;;  %v1279_v34 = vmul.f32 %v1271_v38, %v4325_v9  ;;  %v5214_v37 = vld [vmem:[#allocation23_spill] sm:$0xff] }
 0x14a   :  { %v1590_v35 = vadd.f32 %v1582_v0, %v1566_v43  ;;  %v919_v57 = vmul.f32 %v911_v29, %v4615_v44  ;;  %v920_v16 = vmul.f32 %v912_v33, %v4621_v14  ;;  %v1280_v45 = vmul.f32 %v1272_v15, %v4334_v2 }
 0x14b   :  { %v1287_v6 = vmul.f32 1.25, %v903_v21  ;;  %v1288_v20 = vmul.f32 1.25, %v904_v54  ;;  %v1591_v42 = vmul.f32 0.8333333, %v5213_v48  ;;  %v1592_v61 = vmul.f32 0.8333333, %v4211_v10 }
 0x14c   :  { %v2309_v62 = vpack.c.bf16 %v1590_v35, %v1589_v53  ;;  %v4635_v19 = vadd.f32 %v919_v57, %v895_v41  ;;  %v4637_v17 = vadd.f32 %v920_v16, %v896_v22  ;;  %v1607_v25 = vmul.f32 0.8333333, %v903_v21  ;;  %v5216_v10 = vld [vmem:[#allocation24_spill] sm:$0xff]  ;;  %v5217_v57 = vld [vmem:[#allocation25_spill] sm:$0xff] }
 0x14d   :  { %v1599_v9 = vmul.f32 %v1591_v42, %v4358_v11  ;;  %v1600_v43 = vmul.f32 %v1592_v61, %v4367_v63  ;;  %v1608_v38 = vmul.f32 0.8333333, %v904_v54  ;;  %vm369_vm0 = vcmp.ge.f32.partialorder %v5214_v37, 1.4  ;;  %v5220_v61 = vld [vmem:[#allocation4_spill] sm:$0xff] }
 0x14e   :  { %2946 = vmatmul.mubr.msk.bf16.gmra.mxu0 %vm5215_vm9, %v2309_v62  ;;  %v1295_v2 = vmul.f32 %v1287_v6, %v4635_v19  ;;  %v1296_v18 = vmul.f32 %v1288_v20, %v4637_v17  ;;  %vm370_vm11 = vcmp.ge.f32.partialorder %v5216_v10, 1.4  ;;  %vm377_vm10 = vcmp.lt.f32.partialorder %v5214_v37, 1.8  ;;  %v5219_v20 = vld [vmem:[#allocation2_spill] sm:$0xff] }
 0x14f   :  { %vm378_vm12 = vcmp.lt.f32.partialorder %v5216_v10, 1.8  ;;  %vm385_vm13 = vmand %vm369_vm0, %vm377_vm10  ;;  %v4649_v11 = vadd.f32 -1.0, %v5214_v37  ;;  %v4652_v63 = vadd.f32 -1.0, %v5216_v10  ;;  %v905_v21 = vsub.f32 1.8, %v5214_v37 }
 0x150   :  { %v4655_v54 = vadd.f32 %v1295_v2, %v1279_v34  ;;  %v4657_v52 = vadd.f32 %v1296_v18, %v1280_v45  ;;  %vm386_vm15 = vmand %vm370_vm11, %vm378_vm12  ;;  %v4660_v0 = vsel %vm385_vm13, 1.0, %v5080_v5  ;;  %v906_v29 = vsub.f32 1.8, %v5216_v10  ;;  %v5218_v45 = vld [vmem:[#allocation5_spill] sm:$0xff] }
 0x151   :  { %v4664_v33 = vsel %vm386_vm15, 1.0, %v5080_v5  ;;  %v889_v15 = vmul.f32 2.5, %v4649_v11  ;;  %v890_v53 = vmul.f32 2.5, %v4652_v63  ;;  %v913_v41 = vmul.f32 2.5, %v905_v21  ;;  %vm5229_vm12 = vmmov %vm5147_vm1 }
 0x152   :  { %v1615_v22 = vmul.f32 %v1607_v25, %v4655_v54  ;;  %v1616_v34 = vmul.f32 %v1608_v38, %v4657_v52  ;;  %v914_v35 = vmul.f32 2.5, %v906_v29  ;;  %v1273_v16 = vmul.f32 1.25, %v5217_v57  ;;  %v5222_v38 = vld [vmem:[#allocation12_spill] sm:$0xff] }
 0x153   :  { %v897_v6 = vmul.f32 %v889_v15, %v5218_v45  ;;  %v898_v48 = vmul.f32 %v890_v53, %v5219_v20  ;;  %v921_v42 = vmul.f32 %v913_v41, %v4660_v0  ;;  %v1274_v62 = vmul.f32 1.25, %v5220_v61  ;;  %v5223_v53 = vld [vmem:[#allocation19_spill] sm:$0xff]  ;;  %v5224_v41 = vld [vmem:[#allocation20_spill] sm:$0xff] }
 0x154   :  { %v1623_v2 = vadd.f32 %v1615_v22, %v1599_v9  ;;  %v1624_v18 = vadd.f32 %v1616_v34, %v1600_v43  ;;  %v922_v59 = vmul.f32 %v914_v35, %v4664_v33  ;;  %v1281_v8 = vmul.f32 %v1273_v16, %v5221_v40  ;;  %v5225_v34 = vld [vmem:[#allocation9_spill] sm:$0xff]  ;;  %v5226_v16 = vld [vmem:[#allocation3_spill] sm:$0xff] }
 0x155   :  { %v4677_v25 = vadd.f32 %v921_v42, %v897_v6  ;;  %v1282_v1 = vmul.f32 %v1274_v62, %v5222_v38  ;;  %v1289_v51 = vmul.f32 1.25, %v905_v21  ;;  %v1290_v31 = vmul.f32 1.25, %v906_v29 }
 0x156   :  { %v2416_v39 = vpack.c.bf16 %v1624_v18, %v1623_v2  ;;  %v4680_v15 = vadd.f32 %v922_v59, %v898_v48  ;;  %v1593_v45 = vmul.f32 0.8333333, %v5223_v53  ;;  %v1594_v20 = vmul.f32 0.8333333, %v5224_v41  ;;  %v4706_v53 = vpop.f32.mrf.mxu0 }
 0x157   :  { %v1297_v9 = vmul.f32 %v1289_v51, %v4677_v25  ;;  %v1609_v43 = vmul.f32 0.8333333, %v905_v21  ;;  %v1610_v22 = vmul.f32 0.8333333, %v906_v29  ;;  %vm399_vm14 = vcmp.ge.f32.partialorder %v4190_v30, 1.8 }
 0x158   :  { %2953 = vmatprep.mubr.msk.bf16.mxu1 %vm5147_vm1, %v2416_v39  ;;  %v1298_v40 = vmul.f32 %v1290_v31, %v4680_v15  ;;  %v1601_v35 = vmul.f32 %v1593_v45, %v5225_v34  ;;  %v1602_v6 = vmul.f32 %v1594_v20, %v5226_v16  ;;  %vm400_vm4 = vcmp.ge.f32.partialorder %v4198_v28, 1.8 }
 0x159   :  { %v4691_v59 = vadd.f32 %v1297_v9, %v1281_v8  ;;  %vm407_vm2 = vcmp.lt.f32.partialorder %v4190_v30, 2.2  ;;  %vm408_vm5 = vcmp.lt.f32.partialorder %v4198_v28, 2.2  ;;  %v2721_v51 = vadd.f32 -1.4, %v4190_v30 }
 0x15a   :  { %v4696_v21 = vadd.f32 %v1298_v40, %v1282_v1  ;;  %vm415_vm6 = vmand %vm399_vm14, %vm407_vm2  ;;  %v2722_v39 = vadd.f32 -1.4, %v4198_v28  ;;  %v959_v31 = vsub.f32 2.2, %v4190_v30  ;;  %v960_v29 = vsub.f32 2.2, %v4198_v28 }
 0x15b   :  { %v1617_v48 = vmul.f32 %v1609_v43, %v4691_v59  ;;  %vm416_vm7 = vmand %vm400_vm4, %vm408_vm5  ;;  %v423_v8 = vsel %vm415_vm6, 1.0, %v5080_v5  ;;  %v943_v42 = vmul.f32 2.5, %v2721_v51  ;;  %v1311_v62 = vmul.f32 1.25, %v4606_v60 }
 0x15c   :  { %v1618_v2 = vmul.f32 %v1610_v22, %v4696_v21  ;;  %v424_v1 = vsel %vm416_vm7, 1.0, %v5080_v5  ;;  %v944_v18 = vmul.f32 2.5, %v2722_v39  ;;  %v967_v38 = vmul.f32 2.5, %v959_v31  ;;  %vm5230_vm14 = vmmov %vm5147_vm1 }
 0x15d   :  { %v1625_v45 = vadd.f32 %v1617_v48, %v1601_v35  ;;  %v951_v30 = vmul.f32 %v943_v42, %v4615_v44  ;;  %v968_v28 = vmul.f32 2.5, %v960_v29  ;;  %v1312_v41 = vmul.f32 1.25, %v4609_v12  ;;  %v4715_v48 = vpop.f32.mrf.mxu0 }
 0x15e   :  { %v1626_v20 = vadd.f32 %v1618_v2, %v1602_v6  ;;  %v952_v9 = vmul.f32 %v944_v18, %v4621_v14  ;;  %v975_v43 = vmul.f32 %v967_v38, %v423_v8  ;;  %v1319_v60 = vmul.f32 %v1311_v62, %v4635_v19  ;;  %v5228_v8 = vld [vmem:[#allocation14_spill] sm:$0xff] }
 0x15f   :  { %v976_v40 = vmul.f32 %v968_v28, %v424_v1  ;;  %v1320_v22 = vmul.f32 %v1312_v41, %v4637_v17  ;;  %v1327_v34 = vmul.f32 1.25, %v959_v31  ;;  %v1328_v16 = vmul.f32 1.25, %v960_v29 }
 0x160   :  { %v2417_v51 = vpack.c.bf16 %v1626_v20, %v1625_v45  ;;  %v983_v39 = vadd.f32 %v975_v43, %v951_v30  ;;  %v1631_v35 = vmul.f32 0.8333333, %v4298_v50  ;;  %v1632_v44 = vmul.f32 0.8333333, %v4303_v47 }
 0x161   :  { %v984_v12 = vadd.f32 %v976_v40, %v952_v9  ;;  %v1647_v6 = vmul.f32 0.8333333, %v959_v31  ;;  %v1648_v42 = vmul.f32 0.8333333, %v960_v29  ;;  %vm401_vm3 = vcmp.ge.f32.partialorder %v5214_v37, 1.8 }
 0x162   :  { %2954 = vmatmul.mubr.msk.bf16.vlgmr.msra.gmra.mxu1 %vm5227_vm8, %v2417_v51  ;;  %v1335_v14 = vmul.f32 %v1327_v34, %v983_v39  ;;  %v1639_v19 = vmul.f32 %v1631_v35, %v4655_v54  ;;  %v1640_v17 = vmul.f32 %v1632_v44, %v4657_v52  ;;  %vm402_vm0 = vcmp.ge.f32.partialorder %v5216_v10, 1.8  ;;  %v4731_v52 = vpop.f32.mrf.mxu0 }
 0x163   :  { %2975 = vmatpush3.bf16.xpose.msra.mxu1 %v5228_v8  ;;  %v1336_v50 = vmul.f32 %v1328_v16, %v984_v12  ;;  %vm409_vm9 = vcmp.lt.f32.partialorder %v5214_v37, 2.2  ;;  %vm410_vm11 = vcmp.lt.f32.partialorder %v5216_v10, 2.2  ;;  %v2723_v47 = vadd.f32 -1.4, %v5214_v37 }
 0x164   :  { %v1343_v31 = vadd.f32 %v1335_v14, %v1319_v60  ;;  %vm417_vm10 = vmand %vm401_vm3, %vm409_vm9  ;;  %v2724_v29 = vadd.f32 -1.4, %v5216_v10  ;;  %v961_v62 = vsub.f32 2.2, %v5214_v37  ;;  %v962_v54 = vsub.f32 2.2, %v5216_v10  ;;  %2996 = vmatprep.subr.msk.bf16.mxu1 %vm5229_vm12, %v4445_v13 }
 0x165   :  { %v1344_v2 = vadd.f32 %v1336_v50, %v1320_v22  ;;  %vm418_vm13 = vmand %vm402_vm0, %vm410_vm11  ;;  %v425_v1 = vsel %vm417_vm10, 1.0, %v5080_v5  ;;  %v945_v18 = vmul.f32 2.5, %v2723_v47  ;;  %v1313_v38 = vmul.f32 1.25, %v4649_v11  ;;  %v4740_v22 = vpop.f32.mrf.mxu0 }
 0x166   :  { %v1655_v45 = vmul.f32 %v1647_v6, %v1343_v31  ;;  %v426_v30 = vsel %vm418_vm13, 1.0, %v5080_v5  ;;  %v946_v28 = vmul.f32 2.5, %v2724_v29  ;;  %v969_v41 = vmul.f32 2.5, %v961_v62  ;;  %vm5231_vm3 = vmmov %vm5227_vm8 }
 0x167   :  { %v1656_v37 = vmul.f32 %v1648_v42, %v1344_v2  ;;  %v953_v10 = vmul.f32 %v945_v18, %v4660_v0  ;;  %v970_v20 = vmul.f32 2.5, %v962_v54  ;;  %v1314_v13 = vmul.f32 1.25, %v4652_v63 }
 0x168   :  { %v1663_v9 = vadd.f32 %v1655_v45, %v1639_v19  ;;  %v954_v43 = vmul.f32 %v946_v28, %v4664_v33  ;;  %v977_v60 = vmul.f32 %v969_v41, %v425_v1  ;;  %v1321_v40 = vmul.f32 %v1313_v38, %v4677_v25 }
 0x169   :  { %v1664_v11 = vadd.f32 %v1656_v37, %v1640_v17  ;;  %v978_v34 = vmul.f32 %v970_v20, %v426_v30  ;;  %v1322_v16 = vmul.f32 %v1314_v13, %v4680_v15  ;;  %v1329_v51 = vmul.f32 1.25, %v961_v62  ;;  %v4751_v15 = vld [vmem:[%s4973_s0 + $0x20] sm:$0xff] }
 0x16a   :  { %v985_v39 = vadd.f32 %v977_v60, %v953_v10  ;;  %v1330_v35 = vmul.f32 1.25, %v962_v54  ;;  %v1633_v0 = vmul.f32 0.8333333, %v5217_v57  ;;  %v1634_v44 = vmul.f32 0.8333333, %v5220_v61  ;;  %v4754_v57 = vpop.f32.mrf.mxu0 }
 0x16b   :  { %v2526_v63 = vpack.c.bf16 %v1664_v11, %v1663_v9  ;;  %v986_v12 = vadd.f32 %v978_v34, %v954_v43  ;;  %v1649_v6 = vmul.f32 0.8333333, %v961_v62  ;;  %v1650_v33 = vmul.f32 0.8333333, %v962_v54  ;;  %2976 = vmatpush3.bf16.xpose.msra.mxu1 %v4591_v27  ;;  %v4760_v27 = vld [vmem:[%s4973_s0 + $0x28] sm:$0xff] }
 0x16c   :  { %v1337_v25 = vmul.f32 %v1329_v51, %v985_v39  ;;  %v1641_v42 = vmul.f32 %v1633_v0, %v4691_v59  ;;  %v1642_v14 = vmul.f32 %v1634_v44, %v4696_v21  ;;  %vm371_vm15 = vcmp.ge.f32.partialorder %v4751_v15, 1.4  ;;  %v4782_v1 = vpop.f32.mrf.mxu0  ;;  %v3063_v44 = vld [vmem:[%s4973_s0 + $0x38] sm:$0xff] }
 0x16d   :  { %2965 = vmatprep.mubr.msk.bf16.mxu0 %vm5230_vm14, %v2526_v63  ;;  %v1338_v61 = vmul.f32 %v1330_v35, %v986_v12  ;;  %vm372_vm1 = vcmp.ge.f32.partialorder %v4760_v27, 1.4  ;;  %vm379_vm4 = vcmp.lt.f32.partialorder %v4751_v15, 1.8  ;;  %vm380_vm2 = vcmp.lt.f32.partialorder %v4760_v27, 1.8 }
 0x16e   :  { %v1345_v59 = vadd.f32 %v1337_v25, %v1321_v40  ;;  %vm387_vm5 = vmand %vm371_vm15, %vm379_vm4  ;;  %v4766_v21 = vadd.f32 -1.0, %v4751_v15  ;;  %v4769_v19 = vadd.f32 -1.0, %v4760_v27  ;;  %v907_v17 = vsub.f32 1.8, %v4751_v15  ;;  %v4792_v34 = vpop.f32.mrf.mxu0 }
 0x16f   :  { %v1346_v8 = vadd.f32 %v1338_v61, %v1322_v16  ;;  %vm388_vm6 = vmand %vm372_vm1, %vm380_vm2  ;;  %v4773_v50 = vsel %vm387_vm5, 1.0, %v5080_v5  ;;  %v908_v47 = vsub.f32 1.8, %v4760_v27  ;;  %v1275_v31 = vmul.f32 1.25, %v4511_v7 }
 0x170   :  { %v1657_v29 = vmul.f32 %v1649_v6, %v1345_v59  ;;  %v4778_v62 = vsel %vm388_vm6, 1.0, %v5080_v5  ;;  %v891_v54 = vmul.f32 2.5, %v4766_v21  ;;  %v892_v2 = vmul.f32 2.5, %v4769_v19  ;;  %vm5232_vm2 = vmmov %vm5231_vm3 }
 0x171   :  { %v1658_v18 = vmul.f32 %v1650_v33, %v1346_v8  ;;  %v915_v38 = vmul.f32 2.5, %v907_v17  ;;  %v916_v45 = vmul.f32 2.5, %v908_v47  ;;  %v1276_v30 = vmul.f32 1.25, %v4514_v46 }
 0x172   :  { %v1665_v28 = vadd.f32 %v1657_v29, %v1641_v42  ;;  %v899_v41 = vmul.f32 %v891_v54, %v4520_v56  ;;  %v900_v37 = vmul.f32 %v892_v2, %v4526_v58  ;;  %v1283_v9 = vmul.f32 %v1275_v31, %v4539_v49  ;;  %v3062_v49 = vld [vmem:[%s4973_s0 + $0x30] sm:$0xff]  ;;  %v4818_v42 = vpop.f32.mrf.mxu1 }
 0x173   :  { %v1666_v10 = vadd.f32 %v1658_v18, %v1642_v14  ;;  %v923_v20 = vmul.f32 %v915_v38, %v4773_v50  ;;  %v924_v13 = vmul.f32 %v916_v45, %v4778_v62  ;;  %v1291_v43 = vmul.f32 1.25, %v907_v17 }
 0x174   :  { %v1292_v60 = vmul.f32 1.25, %v908_v47  ;;  %v1595_v40 = vmul.f32 0.8333333, %v4409_v55  ;;  %v1596_v11 = vmul.f32 0.8333333, %v4412_v26  ;;  %v1284_v58 = vmul.f32 %v1276_v30, %v4541_v32 }
 0x175   :  { %v2527_v16 = vpack.c.bf16 %v1666_v10, %v1665_v28  ;;  %v4794_v51 = vadd.f32 %v923_v20, %v899_v41  ;;  %v4796_v56 = vadd.f32 %v924_v13, %v900_v37  ;;  %v1611_v35 = vmul.f32 0.8333333, %v907_v17  ;;  %v4829_v10 = vpop.f32.mrf.mxu1 }
 0x176   :  { %v1603_v39 = vmul.f32 %v1595_v40, %v4559_v24  ;;  %v1612_v0 = vmul.f32 0.8333333, %v908_v47  ;;  %vm373_vm7 = vcmp.ge.f32.partialorder %v3062_v49, 1.4  ;;  %vm374_vm8 = vcmp.ge.f32.partialorder %v3063_v44, 1.4  ;;  %v4810_v24 = vpop.f32.mrf.mxu0 }
 0x177   :  { %2966 = vmatmul.mubr.msk.bf16.vlgmr.msra.gmra.mxu0 %vm5231_vm3, %v2527_v16  ;;  %v1299_v55 = vmul.f32 %v1291_v43, %v4794_v51  ;;  %v1300_v26 = vmul.f32 %v1292_v60, %v4796_v56  ;;  %vm381_vm0 = vcmp.lt.f32.partialorder %v3062_v49, 1.8  ;;  %v1604_v32 = vmul.f32 %v1596_v11, %v4561_v3 }
 0x178   :  { %vm382_vm9 = vcmp.lt.f32.partialorder %v3063_v44, 1.8  ;;  %vm389_vm11 = vmand %vm373_vm7, %vm381_vm0  ;;  %vm405_vm10 = vcmp.ge.f32.partialorder %v3062_v49, 1.8  ;;  %vm406_vm12 = vcmp.ge.f32.partialorder %v3063_v44, 1.8  ;;  %v4825_v54 = vpop.f32.mrf.mxu0 }
 0x179   :  { %v4812_v63 = vadd.f32 %v1299_v55, %v1283_v9  ;;  %v4814_v12 = vadd.f32 %v1300_v26, %v1284_v58  ;;  %vm390_vm13 = vmand %vm374_vm8, %vm382_vm9  ;;  %v397_v6 = vsel %vm389_vm11, 1.0, %v5080_v5  ;;  %vm413_vm15 = vcmp.lt.f32.partialorder %v3062_v49, 2.2 }
 0x17a   :  { %v398_v33 = vsel %vm390_vm13, 1.0, %v5080_v5  ;;  %vm414_vm14 = vcmp.lt.f32.partialorder %v3063_v44, 2.2  ;;  %vm421_vm1 = vmand %vm405_vm10, %vm413_vm15  ;;  %v2719_v25 = vadd.f32 -1.0, %v3062_v49  ;;  %v2720_v3 = vadd.f32 -1.0, %v3063_v44  ;;  %v4832_v58 = vpop.f32.mrf.mxu0 }
 0x17b   :  { %v1619_v14 = vmul.f32 %v1611_v35, %v4812_v63  ;;  %v1620_v61 = vmul.f32 %v1612_v0, %v4814_v12  ;;  %vm422_vm4 = vmand %vm406_vm12, %vm414_vm14  ;;  %v429_v59 = vsel %vm421_vm1, 1.0, %v5080_v5  ;;  %v909_v17 = vsub.f32 1.8, %v3062_v49  ;;  %v5233_v35 = vld [vmem:[#allocation6_spill] sm:$0xff] }
 0x17c   :  { %v430_v8 = vsel %vm422_vm4, 1.0, %v5080_v5  ;;  %v893_v47 = vmul.f32 2.5, %v2719_v25  ;;  %v894_v31 = vmul.f32 2.5, %v2720_v3  ;;  %v910_v29 = vsub.f32 1.8, %v3063_v44  ;;  %vm5241_vm9 = vmmov %vm5232_vm2 }
 0x17d   :  { %v1627_v2 = vadd.f32 %v1619_v14, %v1603_v39  ;;  %v1628_v18 = vadd.f32 %v1620_v61, %v1604_v32  ;;  %v917_v38 = vmul.f32 2.5, %v909_v17  ;;  %v2727_v45 = vadd.f32 -1.4, %v3062_v49  ;;  %v5234_v14 = vld [vmem:[#allocation16_spill] sm:$0xff]  ;;  %vm5242_vm11 = vmmov %vm5232_vm2 }
 0x17e   :  { %v901_v30 = vmul.f32 %v893_v47, %v4564_v23  ;;  %v902_v28 = vmul.f32 %v894_v31, %v4568_v4  ;;  %v918_v41 = vmul.f32 2.5, %v910_v29  ;;  %v2728_v37 = vadd.f32 -1.4, %v3063_v44  ;;  %vm5243_vm10 = vmmov %vm5232_vm2 }
 0x17f   :  { %v2418_v20 = vpack.c.bf16 %v1628_v18, %v1627_v2  ;;  %v925_v13 = vmul.f32 %v917_v38, %v397_v6  ;;  %v949_v9 = vmul.f32 2.5, %v2727_v45  ;;  %v965_v43 = vsub.f32 2.2, %v3062_v49  ;;  %v4837_v49 = vpop.f32.mrf.mxu1 }
 0x180   :  { %v926_v60 = vmul.f32 %v918_v41, %v398_v33  ;;  %v950_v40 = vmul.f32 2.5, %v2728_v37  ;;  %v966_v11 = vsub.f32 2.2, %v3063_v44  ;;  %v1277_v16 = vmul.f32 1.25, %v4554_v36  ;;  %v5235_v44 = vld [vmem:[#allocation15_spill] sm:$0xff] }
 0x181   :  { %2957 = vmatprep.mubr.msk.bf16.mxu1 %vm5232_vm2, %v2418_v20  ;;  %v933_v23 = vadd.f32 %v925_v13, %v901_v30  ;;  %v957_v39 = vmul.f32 %v949_v9, %v397_v6  ;;  %v973_v4 = vmul.f32 2.5, %v965_v43  ;;  %v1278_v0 = vmul.f32 1.25, %v5233_v35  ;;  %v4840_v6 = vpop.f32.mrf.mxu0 }
 0x182   :  { %v934_v55 = vadd.f32 %v926_v60, %v902_v28  ;;  %v958_v26 = vmul.f32 %v950_v40, %v398_v33  ;;  %v974_v32 = vmul.f32 2.5, %v966_v11  ;;  %v1285_v61 = vmul.f32 %v1277_v16, %v5234_v14  ;;  %5236 = vst [vmem:[#allocation13_spill] sm:$0xff] %v4840_v6  ;;  %v5237_v40 = vld [vmem:[#allocation7_spill] sm:$0xff] }
 0x183   :  { %v981_v47 = vmul.f32 %v973_v4, %v429_v59  ;;  %v1286_v31 = vmul.f32 %v1278_v0, %v5235_v44  ;;  %v1293_v2 = vmul.f32 1.25, %v909_v17  ;;  %v1294_v18 = vmul.f32 1.25, %v910_v29  ;;  %v4843_v59 = vpop.f32.mrf.mxu1 }
 0x184   :  { %v982_v38 = vmul.f32 %v974_v32, %v430_v8  ;;  %v1317_v45 = vmul.f32 1.25, %v2719_v25  ;;  %v1318_v41 = vmul.f32 1.25, %v2720_v3  ;;  %v1333_v30 = vmul.f32 1.25, %v965_v43  ;;  %v5238_v8 = vld [vmem:[#allocation8_spill] sm:$0xff]  ;;  %v5239_v32 = vld [vmem:[#allocation17_spill] sm:$0xff] }
 0x185   :  { %v989_v37 = vadd.f32 %v981_v47, %v957_v39  ;;  %v1301_v20 = vmul.f32 %v1293_v2, %v933_v23  ;;  %v1302_v28 = vmul.f32 %v1294_v18, %v934_v55  ;;  %v1334_v33 = vmul.f32 1.25, %v966_v11  ;;  %v4847_v47 = vpop.f32.mrf.mxu0 }
 0x186   :  { %v990_v13 = vadd.f32 %v982_v38, %v958_v26  ;;  %v1325_v9 = vmul.f32 %v1317_v45, %v933_v23  ;;  %v1326_v60 = vmul.f32 %v1318_v41, %v934_v55  ;;  %v1597_v16 = vmul.f32 0.8333333, %v5237_v40  ;;  %v5240_v26 = vld [vmem:[#allocation10_spill] sm:$0xff]  ;;  %v2887_v41 = vpop.f32.mrf.mxu1 }
 0x187   :  { %v1309_v4 = vadd.f32 %v1301_v20, %v1285_v61  ;;  %v1310_v0 = vadd.f32 %v1302_v28, %v1286_v31  ;;  %v1341_v14 = vmul.f32 %v1333_v30, %v989_v37  ;;  %v1598_v25 = vmul.f32 0.8333333, %v5238_v8 }
 0x188   :  { %v1342_v3 = vmul.f32 %v1334_v33, %v990_v13  ;;  %v1605_v44 = vmul.f32 %v1597_v16, %v5239_v32  ;;  %v1613_v6 = vmul.f32 0.8333333, %v909_v17  ;;  %v1614_v39 = vmul.f32 0.8333333, %v910_v29  ;;  %v2899_v33 = vpop.f32.mrf.mxu0 }
 0x189   :  { %v1349_v2 = vadd.f32 %v1341_v14, %v1325_v9  ;;  %v1606_v23 = vmul.f32 %v1598_v25, %v5240_v26  ;;  %v1637_v55 = vmul.f32 0.8333333, %v4554_v36  ;;  %v1638_v18 = vmul.f32 0.8333333, %v5233_v35  ;;  %v1851_v9 = vpop.f32.mrf.mxu1 }
 0x18a   :  { %v1350_v38 = vadd.f32 %v1342_v3, %v1326_v60  ;;  %v1621_v61 = vmul.f32 %v1613_v6, %v1309_v4  ;;  %v1622_v31 = vmul.f32 %v1614_v39, %v1310_v0  ;;  %v1653_v45 = vmul.f32 0.8333333, %v965_v43  ;;  %v1953_v3 = vpop.f32.mrf.mxu0 }
 0x18b   :  { %v1645_v30 = vmul.f32 %v1637_v55, %v1309_v4  ;;  %v1646_v37 = vmul.f32 %v1638_v18, %v1310_v0  ;;  %v1654_v20 = vmul.f32 0.8333333, %v966_v11  ;;  %vm403_vm5 = vcmp.ge.f32.partialorder %v4751_v15, 1.8 }
 0x18c   :  { %v1629_v17 = vadd.f32 %v1621_v61, %v1605_v44  ;;  %v1630_v29 = vadd.f32 %v1622_v31, %v1606_v23  ;;  %v1661_v28 = vmul.f32 %v1653_v45, %v1349_v2  ;;  %vm404_vm6 = vcmp.ge.f32.partialorder %v4760_v27, 1.8  ;;  %v2888_v23 = vpop.f32.mrf.mxu1  ;;  %v2900_v31 = vpop.f32.mrf.mxu0 }
 0x18d   :  { %v1662_v13 = vmul.f32 %v1654_v20, %v1350_v38  ;;  %vm411_vm7 = vcmp.lt.f32.partialorder %v4751_v15, 2.2  ;;  %vm412_vm3 = vcmp.lt.f32.partialorder %v4760_v27, 2.2  ;;  %v2725_v36 = vadd.f32 -1.4, %v4751_v15 }
 0x18e   :  { %v1669_v43 = vadd.f32 %v1661_v28, %v1645_v30  ;;  %v2419_v35 = vpack.c.bf16 %v1630_v29, %v1629_v17  ;;  %vm419_vm8 = vmand %vm403_vm5, %vm411_vm7  ;;  %v2726_v11 = vadd.f32 -1.4, %v4760_v27  ;;  %v963_v6 = vsub.f32 2.2, %v4751_v15 }
 0x18f   :  { %v1670_v60 = vadd.f32 %v1662_v13, %v1646_v37  ;;  %vm420_vm0 = vmand %vm404_vm6, %vm412_vm3  ;;  %v427_v40 = vsel %vm419_vm8, 1.0, %v5080_v5  ;;  %v947_v16 = vmul.f32 2.5, %v2725_v36  ;;  %v964_v4 = vsub.f32 2.2, %v4760_v27  ;;  %v1956_v13 = vpop.f32.mrf.mxu0 }
 0x190   :  { %2958 = vmatmul.mubr.msk.bf16.gmra.mxu1 %vm5241_vm9, %v2419_v35  ;;  %v428_v0 = vsel %vm420_vm0, 1.0, %v5080_v5  ;;  %v948_v14 = vmul.f32 2.5, %v2726_v11  ;;  %v971_v8 = vmul.f32 2.5, %v963_v6  ;;  %v1315_v25 = vmul.f32 1.25, %v4766_v21 }
 0x191   :  { %v955_v32 = vmul.f32 %v947_v16, %v4773_v50  ;;  %v972_v15 = vmul.f32 2.5, %v964_v4  ;;  %v1316_v44 = vmul.f32 1.25, %v4769_v19  ;;  %v1331_v26 = vmul.f32 1.25, %v963_v6 }
 0x192   :  { %v956_v39 = vmul.f32 %v948_v14, %v4778_v62  ;;  %v979_v2 = vmul.f32 %v971_v8, %v427_v40  ;;  %v1323_v55 = vmul.f32 %v1315_v25, %v4794_v51  ;;  %v1332_v18 = vmul.f32 1.25, %v964_v4  ;;  %v1854_v62 = vpop.f32.mrf.mxu1 }
 0x193   :  { %v980_v27 = vmul.f32 %v972_v15, %v428_v0  ;;  %v1635_v38 = vmul.f32 0.8333333, %v4511_v7  ;;  %v1636_v21 = vmul.f32 0.8333333, %v4514_v46  ;;  %v2529_v61 = vpack.c.bf16 %v1670_v60, %v1669_v43  ;;  %v2919_v60 = vpop.f32.mrf.mxu0 }
 0x194   :  { %v987_v5 = vadd.f32 %v979_v2, %v955_v32  ;;  %v1324_v45 = vmul.f32 %v1316_v44, %v4796_v56  ;;  %v1651_v30 = vmul.f32 0.8333333, %v963_v6  ;;  %v1652_v20 = vmul.f32 0.8333333, %v964_v4 }
 0x195   :  { %v988_v50 = vadd.f32 %v980_v27, %v956_v39  ;;  %v1860_v17 = vadd.f32 %v2887_v41, %v4754_v57  ;;  %v1852_v51 = vadd.f32 %v1851_v9, %v4782_v1  ;;  %v1643_v28 = vmul.f32 %v1635_v38, %v4812_v63  ;;  %v2157_v16 = vpop.f32.mrf.mxu0 }
 0x196   :  { %v1339_v19 = vmul.f32 %v1331_v26, %v987_v5  ;;  %v1644_v7 = vmul.f32 %v1636_v21, %v4814_v12  ;;  %v1863_v46 = vadd.f32 %v2888_v23, %v4792_v34  ;;  %v1855_v35 = vadd.f32 %v1854_v62, %v4810_v24  ;;  %v2907_v34 = vpop.f32.mrf.mxu1 }
 0x197   :  { %v1340_v37 = vmul.f32 %v1332_v18, %v988_v50  ;;  %v4876_v43 = vadd.f32 %v2899_v33, %v1860_v17  ;;  %v4878_v56 = vadd.f32 %v1953_v3, %v1852_v51  ;;  %v2920_v4 = vpop.f32.mrf.mxu0  ;;  %v1844_v21 = vadd.f32 %v4818_v42, %v4706_v53  ;;  %v5244_v42 = vld [vmem:[#allocation13_spill] sm:$0xff] }
 0x198   :  { %v1347_v29 = vadd.f32 %v1339_v19, %v1323_v55  ;;  %v4881_v6 = vadd.f32 %v2900_v31, %v1863_v46  ;;  %v4883_v1 = vadd.f32 %v1956_v13, %v1855_v35  ;;  %v2047_v12 = vpop.f32.mrf.mxu1  ;;  %v1836_v50 = vadd.f32 %v4829_v10, %v4715_v48 }
 0x199   :  { %v1348_v36 = vadd.f32 %v1340_v37, %v1324_v45  ;;  %v2160_v14 = vpop.f32.mrf.mxu0  ;;  %v1970_v45 = vadd.f32 %v4825_v54, %v1844_v21  ;;  %v1847_v19 = vadd.f32 %v4837_v49, %v4731_v52  ;;  %vm2636_vm12 = vcmask 261120  }
 0x19a   :  { %v1659_v11 = vmul.f32 %v1651_v30, %v1347_v29  ;;  %v2908_v33 = vpop.f32.mrf.mxu1  ;;  %v1968_v37 = vadd.f32 %v4832_v58, %v1836_v50 }
 0x19b   :  { %v1660_v57 = vmul.f32 %v1652_v20, %v1348_v36  ;;  %v1839_v20 = vadd.f32 %v4843_v59, %v4740_v22  ;;  %v2080_v53 = vadd.f32 %v2907_v34, %v1970_v45  ;;  %v1971_v17 = vadd.f32 %v5244_v42, %v1847_v19 }
 0x19c   :  { %v1667_v41 = vadd.f32 %v1659_v11, %v1643_v28  ;;  %v2050_v40 = vpop.f32.mrf.mxu1  ;;  %v2078_v51 = vadd.f32 %v2047_v12, %v1968_v37 }
 0x19d   :  { %v1668_v63 = vadd.f32 %v1660_v57, %v1644_v7  ;;  %v1969_v48 = vadd.f32 %v4847_v47, %v1839_v20  ;;  %v2190_v54 = vadd.f32 %v2919_v60, %v2080_v53  ;;  %v2081_v10 = vadd.f32 %v2908_v33, %v1971_v17 }
 0x19e   :  { %v2188_v7 = vadd.f32 %v2157_v16, %v2078_v51 }
 0x19f   :  { %v2528_v9 = vpack.c.bf16 %v1668_v63, %v1667_v41  ;;  %v2079_v52 = vadd.f32 %v2050_v40, %v1969_v48  ;;  %v2191_v36 = vadd.f32 %v2920_v4, %v2081_v10 }
 0x1a1   :  { %2969 = vmatprep.mubr.msk.bf16.mxu1 %vm5242_vm11, %v2528_v9  ;;  %v2189_v35 = vadd.f32 %v2160_v14, %v2079_v52 }
 0x1a2   :  { %2970 = vmatmul.mubr.msk.bf16.vlgmr.msra.gmra.mxu1 %vm5243_vm10, %v2529_v61 }
 0x1a5   :  { %v4887_v24 = vpop.f32.mrf.mxu1 }
 0x1a7   :  { %v4889_v0 = vpop.f32.mrf.mxu1 }
 0x1a9   :  { %v4891_v8 = vpop.f32.mrf.mxu1 }
 0x1aa   :  { %v2085_v45 = vadd.f32 %v4891_v8, %v4881_v6 }
 0x1ab   :  { %v4895_v3 = vpop.f32.mrf.mxu1 }
 0x1ac   :  { %v2083_v20 = vadd.f32 %v4895_v3, %v4883_v1 }
 0x1ba   :  { %v4893_v25 = vpop.f32.mrf.mxu0 }
 0x1bc   :  { %v4897_v32 = vpop.f32.mrf.mxu0 }
 0x1be   :  { %v4899_v44 = vpop.f32.mrf.mxu0 }
 0x1bf   :  { %v2195_v42 = vadd.f32 %v4899_v44, %v2085_v45 }
 0x1c0   :  { %v4901_v2 = vpop.f32.mrf.mxu0 }
 0x1cf   :  { %v2931_v15 = vpop.f32.mrf.mxu1 }
 0x1d0   :  { %v2300_v49 = vadd.f32 %v2931_v15, %v2190_v54 }
 0x1d1   :  { %v2267_v39 = vpop.f32.mrf.mxu1 }
 0x1d2   :  { %v2298_v58 = vadd.f32 %v2267_v39, %v2188_v7 }
 0x1d3   :  { %v2932_v26 = vpop.f32.mrf.mxu1 }
 0x1d4   :  { %v2301_v22 = vadd.f32 %v2932_v26, %v2191_v36 }
 0x1d5   :  { %v2270_v27 = vpop.f32.mrf.mxu1 }
 0x1d6   :  { %v2299_v63 = vadd.f32 %v2270_v27, %v2189_v35 }
 0x1e4   :  { %v2943_v23 = vpop.f32.mrf.mxu0 }
 0x1e5   :  { %v2410_v11 = vadd.f32 %v2943_v23, %v2300_v49 }
 0x1e6   :  { %v2377_v55 = vpop.f32.mrf.mxu0 }
 0x1e7   :  { %v2408_v41 = vadd.f32 %v2377_v55, %v2298_v58 }
 0x1e8   :  { %v2944_v5 = vpop.f32.mrf.mxu0 }
 0x1e9   :  { %v2411_v34 = vadd.f32 %v2944_v5, %v2301_v22  ;;  %v2084_v5 = vadd.f32 %v4887_v24, %v4876_v43 }
 0x1ea   :  { %v2380_v61 = vpop.f32.mrf.mxu0 }
 0x1eb   :  { %v2409_v60 = vadd.f32 %v2380_v61, %v2299_v63  ;;  %v2082_v61 = vadd.f32 %v4889_v0, %v4878_v56  ;;  %v2194_v50 = vadd.f32 %v4893_v25, %v2084_v5  ;;  %v2193_v56 = vadd.f32 %v4901_v2, %v2083_v20 }
 0x1ed   :  { %v2192_v37 = vadd.f32 %v4897_v32, %v2082_v61 }
 0x1f9   :  { %v4903_v18 = vpop.f32.mrf.mxu1 }
 0x1fa   :  { %v2304_v53 = vadd.f32 %v4903_v18, %v2194_v50 }
 0x1fb   :  { %v4905_v38 = vpop.f32.mrf.mxu1 }
 0x1fc   :  { %v2302_v43 = vadd.f32 %v4905_v38, %v2192_v37 }
 0x1fd   :  { %v4909_v31 = vpop.f32.mrf.mxu1 }
 0x1fe   :  { %v2305_v25 = vadd.f32 %v4909_v31, %v2195_v42 }
 0x1ff   :  { %v4916_v62 = vpop.f32.mrf.mxu1 }
 0x200   :  { %v2303_v6 = vadd.f32 %v4916_v62, %v2193_v56 }
 0x20e   :  { %v2947_v30 = vpop.f32.mrf.mxu0 }
 0x20f   :  { %v2414_v0 = vadd.f32 %v2947_v30, %v2304_v53 }
 0x210   :  { %v2393_v29 = vpop.f32.mrf.mxu0 }
 0x211   :  { %v2412_v17 = vadd.f32 %v2393_v29, %v2302_v43 }
 0x212   :  { %v2948_v46 = vpop.f32.mrf.mxu0 }
 0x213   :  { %v2415_v51 = vadd.f32 %v2948_v46, %v2305_v25 }
 0x214   :  { %v2396_v59 = vpop.f32.mrf.mxu0 }
 0x215   :  { %v2413_v18 = vadd.f32 %v2396_v59, %v2303_v6 }
 0x222   :  { %v2955_v28 = vpop.f32.mrf.mxu1 }
 0x223   :  { %v2520_v9 = vadd.f32 %v2955_v28, %v2410_v11 }
 0x224   :  { %v2487_v13 = vpop.f32.mrf.mxu1 }
 0x225   :  { %v2518_v12 = vadd.f32 %v2487_v13, %v2408_v41 }
 0x226   :  { %v2956_v57 = vpop.f32.mrf.mxu1 }
 0x227   :  { %v2521_v16 = vadd.f32 %v2956_v57, %v2411_v34 }
 0x228   :  { %v2490_v33 = vpop.f32.mrf.mxu1 }
 0x229   :  { %v2519_v14 = vadd.f32 %v2490_v33, %v2409_v60 }
 0x237   :  { %v2967_v47 = vpop.f32.mrf.mxu0 }
 0x238   :  { %v2630_v40 = vadd.f32 %v2967_v47, %v2520_v9 }
 0x239   :  { %v2597_v15 = vpop.f32.mrf.mxu0 }
 0x23a   :  { %2639 = vst.msk [vmem:[%s4974_s3 + $0x10] sm:$0xff] %vm2636_vm12, %v2630_v40  ;;  %v2628_v4 = vadd.f32 %v2597_v15, %v2518_v12 }
 0x23b   :  { %v2968_v39 = vpop.f32.mrf.mxu0 }
 0x23c   :  { %2637 = vst.msk [vmem:[%s4974_s3] sm:$0xff] %vm2636_vm12, %v2628_v4  ;;  %v2631_v26 = vadd.f32 %v2968_v39, %v2521_v16 }
 0x23d   :  { %v2600_v23 = vpop.f32.mrf.mxu0 }
 0x23e   :  { %2640 = vst.msk [vmem:[%s4974_s3 + $0x18] sm:$0xff] %vm2636_vm12, %v2631_v26  ;;  %v2629_v27 = vadd.f32 %v2600_v23, %v2519_v14 }
 0x240   :  { %2638 = vst.msk [vmem:[%s4974_s3 + $0x8] sm:$0xff] %vm2636_vm12, %v2629_v27 }
 0x250   :  { %v2959_v55 = vpop.f32.mrf.mxu1 }
 0x251   :  { %v2524_v8 = vadd.f32 %v2959_v55, %v2414_v0 }
 0x252   :  { %v2503_v21 = vpop.f32.mrf.mxu1 }
 0x253   :  { %v2522_v28 = vadd.f32 %v2503_v21, %v2412_v17 }
 0x254   :  { %v2960_v19 = vpop.f32.mrf.mxu1 }
 0x255   :  { %v2525_v48 = vadd.f32 %v2960_v19, %v2415_v51 }
 0x256   :  { %v2506_v24 = vpop.f32.mrf.mxu1 }
 0x257   :  { %v2523_v38 = vadd.f32 %v2506_v24, %v2413_v18 }
 0x262   :  { %v2971_v32 = vpop.f32.mrf.mxu1 }
 0x263   :  { %v2634_v1 = vadd.f32 %v2971_v32, %v2524_v8 }
 0x264   :  { %v2613_v3 = vpop.f32.mrf.mxu1 }
 0x265   :  { %2643 = vst.msk [vmem:[%s4974_s3 + $0x30] sm:$0xff] %vm2636_vm12, %v2634_v1  ;;  %v2632_v44 = vadd.f32 %v2613_v3, %v2522_v28 }
 0x266   :  { %v2972_v2 = vpop.f32.mrf.mxu1 }
 0x267   :  { %2641 = vst.msk [vmem:[%s4974_s3 + $0x20] sm:$0xff] %vm2636_vm12, %v2632_v44  ;;  %v2635_v31 = vadd.f32 %v2972_v2, %v2525_v48 }
 0x268   :  { %v2616_v30 = vpop.f32.mrf.mxu1 }
 0x269   :  { %2644 = vst.msk [vmem:[%s4974_s3 + $0x38] sm:$0xff] %vm2636_vm12, %v2635_v31  ;;  %v2633_v62 = vadd.f32 %v2616_v30, %v2523_v38 }
 0x26b   :  { %2642 = vst.msk [vmem:[%s4974_s3 + $0x28] sm:$0xff] %vm2636_vm12, %v2633_v62 }

</bundles_post_ra>
